<compile_context>
chip_gen: v7x
topology: tpu7x:2x2x1
jax: 0.10.0
libtpu: 0.0.40
codegen_flags: <defaults>
</compile_context>

<pallas_src>
import jax
import jax.numpy as jnp
from jax.experimental import pallas as pl
from jax.experimental.pallas import tpu as pltpu
import numpy as np

BETA = 0.9
THRESH = 1.0
NUM_STEPS = 25
NUM_HIDDEN = 100
NUM_OUTPUTS = 2

H_PAD = 128    # num_hidden padded to full lane width
OUT_PAD = 128  # num_outputs padded to full lane width


def _lif(cur, mem):
    """snntorch Leaky step (subtract reset, threshold=1.0)."""
    reset = (mem > THRESH).astype(jnp.float32)
    mem_new = BETA * mem + cur - reset * THRESH
    spk = (mem_new > THRESH).astype(jnp.float32)
    return spk, mem_new


def snn_kernel(x_ref, w1_ref, b1_ref, w2_ref, b2_ref, w3_ref, b3_ref,
               spk_ref, mem_ref, spk1_buf, spk2_buf):
    bb = x_ref.shape[0]  # batch block (static)

    # fc1(x) is constant across time steps -> compute once.
    cur1 = jnp.dot(x_ref[...], w1_ref[...],
                   preferred_element_type=jnp.float32) + b1_ref[...]

    # ---- layer 1 recurrence: pure VPU, fully unrolled; spikes -> VMEM buffer ----
    mem1 = jnp.zeros((bb, H_PAD), jnp.float32)
    for t in range(NUM_STEPS):
        spk1, mem1 = _lif(cur1, mem1)
        spk1_buf[pl.ds(t * bb, bb), :] = spk1

    # ---- fc2 for ALL time steps in one MXU matmul: (T*bb, 128) @ (128, 128) ----
    cur2_all = jnp.dot(spk1_buf[...], w2_ref[...],
                       preferred_element_type=jnp.float32) + b2_ref[...]

    # ---- layer 2 recurrence ----
    mem2 = jnp.zeros((bb, H_PAD), jnp.float32)
    for t in range(NUM_STEPS):
        spk2, mem2 = _lif(cur2_all[t * bb:(t + 1) * bb, :], mem2)
        spk2_buf[pl.ds(t * bb, bb), :] = spk2

    # ---- fc3 for ALL time steps in one MXU matmul: (T*bb, 128) @ (128, 128) ----
    cur3_all = jnp.dot(spk2_buf[...], w3_ref[...],
                       preferred_element_type=jnp.float32) + b3_ref[...]

    # ---- layer 3 recurrence; per-step lane-dense (bb, 128) unmasked stores ----
    mem3 = jnp.zeros((bb, OUT_PAD), jnp.float32)
    for t in range(NUM_STEPS):
        spk3, mem3 = _lif(cur3_all[t * bb:(t + 1) * bb, :], mem3)
        spk_ref[t] = spk3
        mem_ref[t] = mem3


def _pad2(a, rows, cols):
    return jnp.pad(a, ((0, rows - a.shape[0]), (0, cols - a.shape[1])))


def net_forward(x, params):
    """x: (B, num_inputs); weights pre-transposed to (fan_in, fan_out)."""
    w1, b1, w2, b2, w3, b3 = params
    B, ni = x.shape

    # Zero-pad hidden (100 -> 128) and output (2 -> 128) dims. Exact: padded
    # weight/bias entries are zero, so padded lanes stay identically zero.
    w1p = _pad2(w1, ni, H_PAD)
    b1p = _pad2(b1, 1, H_PAD)
    w2p = _pad2(w2, H_PAD, H_PAD)
    b2p = _pad2(b2, 1, H_PAD)
    w3p = _pad2(w3, H_PAD, OUT_PAD)
    b3p = _pad2(b3, 1, OUT_PAD)

    # One grid step per batch block; "parallel" lets v7x shard across its 2 TCs
    # at realistic batch sizes (grid == 1 for the tiny demo batch).
    bb = B if B <= 128 else 128
    assert B % bb == 0, "batch must be divisible by the batch block"
    grid = (B // bb,)

    def full(shape):
        return pl.BlockSpec(shape, lambda i, _n=len(shape): (0,) * _n)

    out_spec = pl.BlockSpec((NUM_STEPS, bb, OUT_PAD), lambda i: (0, i, 0))
    out_shape = (jax.ShapeDtypeStruct((NUM_STEPS, B, OUT_PAD), jnp.float32),
                 jax.ShapeDtypeStruct((NUM_STEPS, B, OUT_PAD), jnp.float32))

    spk_pad, mem_pad = pl.pallas_call(
        snn_kernel,
        out_shape=out_shape,
        grid=grid,
        in_specs=[
            pl.BlockSpec((bb, ni), lambda i: (i, 0)),   # x: blocked over batch
            full((ni, H_PAD)),                          # w1
            full((1, H_PAD)),                           # b1
            full((H_PAD, H_PAD)),                       # w2
            full((1, H_PAD)),                           # b2
            full((H_PAD, OUT_PAD)),                     # w3
            full((1, OUT_PAD)),                         # b3
        ],
        out_specs=(out_spec, out_spec),
        scratch_shapes=[pltpu.VMEM((NUM_STEPS * bb, H_PAD), jnp.float32),
                        pltpu.VMEM((NUM_STEPS * bb, H_PAD), jnp.float32)],
        compiler_params=pltpu.CompilerParams(
            dimension_semantics=("parallel",)),
    )(x, w1p, b1p, w2p, b2p, w3p, b3p)

    # Slice off the padded lanes -> (num_steps, B, num_outputs), matching torch.stack(dim=0).
    return spk_pad[:, :, :NUM_OUTPUTS], mem_pad[:, :, :NUM_OUTPUTS]


def init_params(key, num_inputs):
    # PyTorch nn.Linear default init: U(-1/sqrt(fan_in), 1/sqrt(fan_in)) for W and b.
    def linear(k, fan_in, fan_out):
        kw, kb = jax.random.split(k)
        bound = 1.0 / np.sqrt(fan_in)
        w = jax.random.uniform(kw, (fan_in, fan_out), jnp.float32, -bound, bound)
        b = jax.random.uniform(kb, (1, fan_out), jnp.float32, -bound, bound)
        return w, b

    k1, k2, k3 = jax.random.split(key, 3)
    w1, b1 = linear(k1, num_inputs, NUM_HIDDEN)
    w2, b2 = linear(k2, NUM_HIDDEN, NUM_HIDDEN)
    w3, b3 = linear(k3, NUM_HIDDEN, NUM_OUTPUTS)
    return (w1, b1, w2, b2, w3, b3)


def reference_forward(x, params):
    # Pure-JAX reference of the PyTorch forward (for validation), unpadded.
    w1, b1, w2, b2, w3, b3 = params
    B = x.shape[0]
    mem1 = jnp.zeros((B, NUM_HIDDEN), jnp.float32)
    mem2 = jnp.zeros((B, NUM_HIDDEN), jnp.float32)
    mem3 = jnp.zeros((B, NUM_OUTPUTS), jnp.float32)
    spk_rec, mem_rec = [], []
    for _ in range(NUM_STEPS):
        cur1 = x @ w1 + b1
        spk1, mem1 = _lif(cur1, mem1)
        cur2 = spk1 @ w2 + b2
        spk2, mem2 = _lif(cur2, mem2)
        cur3 = spk2 @ w3 + b3
        spk3, mem3 = _lif(cur3, mem3)
        spk_rec.append(spk3)
        mem_rec.append(mem3)
    return jnp.stack(spk_rec, 0), jnp.stack(mem_rec, 0)


if __name__ == "__main__":
    key = jax.random.PRNGKey(0)
    kx, kp = jax.random.split(key)

    batch = 8
    num_inputs = 16   # number of CSV features (dataset-dependent in the original)

    x = jax.random.normal(kx, (batch, num_inputs), jnp.float32)
    params = init_params(kp, num_inputs)

    spk3_rec, mem3_rec = net_forward(x, params)
    jax.block_until_ready((spk3_rec, mem3_rec))

    spk_ref, mem_ref = reference_forward(x, params)
    np.testing.assert_allclose(np.asarray(spk3_rec), np.asarray(spk_ref), atol=1e-5)
    np.testing.assert_allclose(np.asarray(mem3_rec), np.asarray(mem_ref), atol=1e-5)

    assert spk3_rec.shape == (NUM_STEPS, batch, NUM_OUTPUTS)
    assert mem3_rec.shape == (NUM_STEPS, batch, NUM_OUTPUTS)
    print("KERNEL_OK")
</pallas_src>

<mosaic_0001>
module attributes {stable_mosaic.version = 11 : i64} {
  func.func @snn_kernel(%arg0: i32, %arg1: memref<8x16xf32, #tpu.memory_space<vmem>>, %arg2: memref<16x128xf32, #tpu.memory_space<vmem>>, %arg3: memref<1x128xf32, #tpu.memory_space<vmem>>, %arg4: memref<128x128xf32, #tpu.memory_space<vmem>>, %arg5: memref<1x128xf32, #tpu.memory_space<vmem>>, %arg6: memref<128x128xf32, #tpu.memory_space<vmem>>, %arg7: memref<1x128xf32, #tpu.memory_space<vmem>>, %arg8: memref<25x8x128xf32, #tpu.memory_space<vmem>>, %arg9: memref<25x8x128xf32, #tpu.memory_space<vmem>>, %arg10: memref<200x128xf32, #tpu.memory_space<vmem>>, %arg11: memref<200x128xf32, #tpu.memory_space<vmem>>) attributes {dimension_semantics = [#tpu.dimension_semantics<parallel>], iteration_bounds = array<i64: 1>, scalar_prefetch = 0 : i64, scratch_operands = 2 : i64, tpu.core_type = #tpu.core_type<tc>, window_params = [{transform_indices = @transform_0, window_bounds = array<i64: 8, 16>}, {pipeline_mode = #tpu.pipeline_mode<synchronous>, transform_indices = @transform_1, window_bounds = array<i64: 16, 128>}, {pipeline_mode = #tpu.pipeline_mode<synchronous>, transform_indices = @transform_2, window_bounds = array<i64: 1, 128>}, {pipeline_mode = #tpu.pipeline_mode<synchronous>, transform_indices = @transform_3, window_bounds = array<i64: 128, 128>}, {pipeline_mode = #tpu.pipeline_mode<synchronous>, transform_indices = @transform_4, window_bounds = array<i64: 1, 128>}, {pipeline_mode = #tpu.pipeline_mode<synchronous>, transform_indices = @transform_5, window_bounds = array<i64: 128, 128>}, {pipeline_mode = #tpu.pipeline_mode<synchronous>, transform_indices = @transform_6, window_bounds = array<i64: 1, 128>}, {transform_indices = @transform_7, window_bounds = array<i64: 25, 8, 128>}, {transform_indices = @transform_8, window_bounds = array<i64: 25, 8, 128>}]} {
    %c0 = arith.constant 0 : index
    %c0_0 = arith.constant 0 : index
    %0 = vector.load %arg1[%c0, %c0_0] : memref<8x16xf32, #tpu.memory_space<vmem>>, vector<8x16xf32>
    %c0_1 = arith.constant 0 : index
    %c0_2 = arith.constant 0 : index
    %1 = vector.load %arg2[%c0_1, %c0_2] : memref<16x128xf32, #tpu.memory_space<vmem>>, vector<16x128xf32>
    %cst = arith.constant dense<0.000000e+00> : vector<8x128xf32>
    %2 = tpu.matmul %0, %1, %cst {dimension_numbers = #tpu.dot_dimension_numbers<[1], [0], [0], [1], [0, 0, 1, 1], [], []>} : vector<8x16xf32>, vector<16x128xf32>, vector<8x128xf32> -> vector<8x128xf32>
    %c0_3 = arith.constant 0 : index
    %c0_4 = arith.constant 0 : index
    %3 = vector.load %arg3[%c0_3, %c0_4] : memref<1x128xf32, #tpu.memory_space<vmem>>, vector<1x128xf32>
    %4 = vector.broadcast %3 : vector<1x128xf32> to vector<8x128xf32>
    %5 = arith.addf %2, %4 : vector<8x128xf32>
    %cst_5 = arith.constant 0.000000e+00 : f32
    %6 = vector.broadcast %cst_5 : f32 to vector<8x128xf32>
    %cst_6 = arith.constant 1.000000e+00 : f32
    %7 = vector.broadcast %cst_6 : f32 to vector<8x128xf32>
    %8 = arith.cmpf ogt, %6, %7 : vector<8x128xf32>
    %9 = arith.extui %8 : vector<8x128xi1> to vector<8x128xi32>
    %10 = arith.sitofp %9 : vector<8x128xi32> to vector<8x128xf32>
    %cst_7 = arith.constant 0.899999976 : f32
    %11 = vector.broadcast %cst_7 : f32 to vector<8x128xf32>
    %12 = arith.mulf %11, %6 : vector<8x128xf32>
    %13 = arith.addf %12, %5 : vector<8x128xf32>
    %cst_8 = arith.constant 1.000000e+00 : f32
    %14 = vector.broadcast %cst_8 : f32 to vector<8x128xf32>
    %15 = arith.mulf %10, %14 : vector<8x128xf32>
    %16 = arith.subf %13, %15 : vector<8x128xf32>
    %cst_9 = arith.constant 1.000000e+00 : f32
    %17 = vector.broadcast %cst_9 : f32 to vector<8x128xf32>
    %18 = arith.cmpf ogt, %16, %17 : vector<8x128xf32>
    %19 = arith.extui %18 : vector<8x128xi1> to vector<8x128xi32>
    %20 = arith.sitofp %19 : vector<8x128xi32> to vector<8x128xf32>
    %c0_10 = arith.constant 0 : index
    %c0_11 = arith.constant 0 : index
    %21 = vector.load %arg10[%c0_10, %c0_11] : memref<200x128xf32, #tpu.memory_space<vmem>>, vector<8x128xf32>
    tpu.vector_store %arg10[%c0_10, %c0_11], %20 {strides = array<i32>} : memref<200x128xf32, #tpu.memory_space<vmem>>, vector<8x128xf32>,
    %cst_12 = arith.constant 1.000000e+00 : f32
    %22 = vector.broadcast %cst_12 : f32 to vector<8x128xf32>
    %23 = arith.cmpf ogt, %16, %22 : vector<8x128xf32>
    %24 = arith.extui %23 : vector<8x128xi1> to vector<8x128xi32>
    %25 = arith.sitofp %24 : vector<8x128xi32> to vector<8x128xf32>
    %cst_13 = arith.constant 0.899999976 : f32
    %26 = vector.broadcast %cst_13 : f32 to vector<8x128xf32>
    %27 = arith.mulf %26, %16 : vector<8x128xf32>
    %28 = arith.addf %27, %5 : vector<8x128xf32>
    %cst_14 = arith.constant 1.000000e+00 : f32
    %29 = vector.broadcast %cst_14 : f32 to vector<8x128xf32>
    %30 = arith.mulf %25, %29 : vector<8x128xf32>
    %31 = arith.subf %28, %30 : vector<8x128xf32>
    %cst_15 = arith.constant 1.000000e+00 : f32
    %32 = vector.broadcast %cst_15 : f32 to vector<8x128xf32>
    %33 = arith.cmpf ogt, %31, %32 : vector<8x128xf32>
    %34 = arith.extui %33 : vector<8x128xi1> to vector<8x128xi32>
    %35 = arith.sitofp %34 : vector<8x128xi32> to vector<8x128xf32>
    %c8 = arith.constant 8 : index
    %c0_16 = arith.constant 0 : index
    %36 = vector.load %arg10[%c8, %c0_16] : memref<200x128xf32, #tpu.memory_space<vmem>>, vector<8x128xf32>
    tpu.vector_store %arg10[%c8, %c0_16], %35 {strides = array<i32>} : memref<200x128xf32, #tpu.memory_space<vmem>>, vector<8x128xf32>,
    %cst_17 = arith.constant 1.000000e+00 : f32
    %37 = vector.broadcast %cst_17 : f32 to vector<8x128xf32>
    %38 = arith.cmpf ogt, %31, %37 : vector<8x128xf32>
    %39 = arith.extui %38 : vector<8x128xi1> to vector<8x128xi32>
    %40 = arith.sitofp %39 : vector<8x128xi32> to vector<8x128xf32>
    %cst_18 = arith.constant 0.899999976 : f32
    %41 = vector.broadcast %cst_18 : f32 to vector<8x128xf32>
    %42 = arith.mulf %41, %31 : vector<8x128xf32>
    %43 = arith.addf %42, %5 : vector<8x128xf32>
    %cst_19 = arith.constant 1.000000e+00 : f32
    %44 = vector.broadcast %cst_19 : f32 to vector<8x128xf32>
    %45 = arith.mulf %40, %44 : vector<8x128xf32>
    %46 = arith.subf %43, %45 : vector<8x128xf32>
    %cst_20 = arith.constant 1.000000e+00 : f32
    %47 = vector.broadcast %cst_20 : f32 to vector<8x128xf32>
    %48 = arith.cmpf ogt, %46, %47 : vector<8x128xf32>
    %49 = arith.extui %48 : vector<8x128xi1> to vector<8x128xi32>
    %50 = arith.sitofp %49 : vector<8x128xi32> to vector<8x128xf32>
    %c16 = arith.constant 16 : index
    %c0_21 = arith.constant 0 : index
    %51 = vector.load %arg10[%c16, %c0_21] : memref<200x128xf32, #tpu.memory_space<vmem>>, vector<8x128xf32>
    tpu.vector_store %arg10[%c16, %c0_21], %50 {strides = array<i32>} : memref<200x128xf32, #tpu.memory_space<vmem>>, vector<8x128xf32>,
    %cst_22 = arith.constant 1.000000e+00 : f32
    %52 = vector.broadcast %cst_22 : f32 to vector<8x128xf32>
    %53 = arith.cmpf ogt, %46, %52 : vector<8x128xf32>
    %54 = arith.extui %53 : vector<8x128xi1> to vector<8x128xi32>
    %55 = arith.sitofp %54 : vector<8x128xi32> to vector<8x128xf32>
    %cst_23 = arith.constant 0.899999976 : f32
    %56 = vector.broadcast %cst_23 : f32 to vector<8x128xf32>
    %57 = arith.mulf %56, %46 : vector<8x128xf32>
    %58 = arith.addf %57, %5 : vector<8x128xf32>
    %cst_24 = arith.constant 1.000000e+00 : f32
    %59 = vector.broadcast %cst_24 : f32 to vector<8x128xf32>
    %60 = arith.mulf %55, %59 : vector<8x128xf32>
    %61 = arith.subf %58, %60 : vector<8x128xf32>
    %cst_25 = arith.constant 1.000000e+00 : f32
    %62 = vector.broadcast %cst_25 : f32 to vector<8x128xf32>
    %63 = arith.cmpf ogt, %61, %62 : vector<8x128xf32>
    %64 = arith.extui %63 : vector<8x128xi1> to vector<8x128xi32>
    %65 = arith.sitofp %64 : vector<8x128xi32> to vector<8x128xf32>
    %c24 = arith.constant 24 : index
    %c0_26 = arith.constant 0 : index
    %66 = vector.load %arg10[%c24, %c0_26] : memref<200x128xf32, #tpu.memory_space<vmem>>, vector<8x128xf32>
    tpu.vector_store %arg10[%c24, %c0_26], %65 {strides = array<i32>} : memref<200x128xf32, #tpu.memory_space<vmem>>, vector<8x128xf32>,
    %cst_27 = arith.constant 1.000000e+00 : f32
    %67 = vector.broadcast %cst_27 : f32 to vector<8x128xf32>
    %68 = arith.cmpf ogt, %61, %67 : vector<8x128xf32>
    %69 = arith.extui %68 : vector<8x128xi1> to vector<8x128xi32>
    %70 = arith.sitofp %69 : vector<8x128xi32> to vector<8x128xf32>
    %cst_28 = arith.constant 0.899999976 : f32
    %71 = vector.broadcast %cst_28 : f32 to vector<8x128xf32>
    %72 = arith.mulf %71, %61 : vector<8x128xf32>
    %73 = arith.addf %72, %5 : vector<8x128xf32>
    %cst_29 = arith.constant 1.000000e+00 : f32
    %74 = vector.broadcast %cst_29 : f32 to vector<8x128xf32>
    %75 = arith.mulf %70, %74 : vector<8x128xf32>
    %76 = arith.subf %73, %75 : vector<8x128xf32>
    %cst_30 = arith.constant 1.000000e+00 : f32
    %77 = vector.broadcast %cst_30 : f32 to vector<8x128xf32>
    %78 = arith.cmpf ogt, %76, %77 : vector<8x128xf32>
    %79 = arith.extui %78 : vector<8x128xi1> to vector<8x128xi32>
    %80 = arith.sitofp %79 : vector<8x128xi32> to vector<8x128xf32>
    %c32 = arith.constant 32 : index
    %c0_31 = arith.constant 0 : index
    %81 = vector.load %arg10[%c32, %c0_31] : memref<200x128xf32, #tpu.memory_space<vmem>>, vector<8x128xf32>
    tpu.vector_store %arg10[%c32, %c0_31], %80 {strides = array<i32>} : memref<200x128xf32, #tpu.memory_space<vmem>>, vector<8x128xf32>,
    %cst_32 = arith.constant 1.000000e+00 : f32
    %82 = vector.broadcast %cst_32 : f32 to vector<8x128xf32>
    %83 = arith.cmpf ogt, %76, %82 : vector<8x128xf32>
    %84 = arith.extui %83 : vector<8x128xi1> to vector<8x128xi32>
    %85 = arith.sitofp %84 : vector<8x128xi32> to vector<8x128xf32>
    %cst_33 = arith.constant 0.899999976 : f32
    %86 = vector.broadcast %cst_33 : f32 to vector<8x128xf32>
    %87 = arith.mulf %86, %76 : vector<8x128xf32>
    %88 = arith.addf %87, %5 : vector<8x128xf32>
    %cst_34 = arith.constant 1.000000e+00 : f32
    %89 = vector.broadcast %cst_34 : f32 to vector<8x128xf32>
    %90 = arith.mulf %85, %89 : vector<8x128xf32>
    %91 = arith.subf %88, %90 : vector<8x128xf32>
    %cst_35 = arith.constant 1.000000e+00 : f32
    %92 = vector.broadcast %cst_35 : f32 to vector<8x128xf32>
    %93 = arith.cmpf ogt, %91, %92 : vector<8x128xf32>
    %94 = arith.extui %93 : vector<8x128xi1> to vector<8x128xi32>
    %95 = arith.sitofp %94 : vector<8x128xi32> to vector<8x128xf32>
    %c40 = arith.constant 40 : index
    %c0_36 = arith.constant 0 : index
    %96 = vector.load %arg10[%c40, %c0_36] : memref<200x128xf32, #tpu.memory_space<vmem>>, vector<8x128xf32>
    tpu.vector_store %arg10[%c40, %c0_36], %95 {strides = array<i32>} : memref<200x128xf32, #tpu.memory_space<vmem>>, vector<8x128xf32>,
    %cst_37 = arith.constant 1.000000e+00 : f32
    %97 = vector.broadcast %cst_37 : f32 to vector<8x128xf32>
    %98 = arith.cmpf ogt, %91, %97 : vector<8x128xf32>
    %99 = arith.extui %98 : vector<8x128xi1> to vector<8x128xi32>
    %100 = arith.sitofp %99 : vector<8x128xi32> to vector<8x128xf32>
    %cst_38 = arith.constant 0.899999976 : f32
    %101 = vector.broadcast %cst_38 : f32 to vector<8x128xf32>
    %102 = arith.mulf %101, %91 : vector<8x128xf32>
    %103 = arith.addf %102, %5 : vector<8x128xf32>
    %cst_39 = arith.constant 1.000000e+00 : f32
    %104 = vector.broadcast %cst_39 : f32 to vector<8x128xf32>
    %105 = arith.mulf %100, %104 : vector<8x128xf32>
    %106 = arith.subf %103, %105 : vector<8x128xf32>
    %cst_40 = arith.constant 1.000000e+00 : f32
    %107 = vector.broadcast %cst_40 : f32 to vector<8x128xf32>
    %108 = arith.cmpf ogt, %106, %107 : vector<8x128xf32>
    %109 = arith.extui %108 : vector<8x128xi1> to vector<8x128xi32>
    %110 = arith.sitofp %109 : vector<8x128xi32> to vector<8x128xf32>
    %c48 = arith.constant 48 : index
    %c0_41 = arith.constant 0 : index
    %111 = vector.load %arg10[%c48, %c0_41] : memref<200x128xf32, #tpu.memory_space<vmem>>, vector<8x128xf32>
    tpu.vector_store %arg10[%c48, %c0_41], %110 {strides = array<i32>} : memref<200x128xf32, #tpu.memory_space<vmem>>, vector<8x128xf32>,
    %cst_42 = arith.constant 1.000000e+00 : f32
    %112 = vector.broadcast %cst_42 : f32 to vector<8x128xf32>
    %113 = arith.cmpf ogt, %106, %112 : vector<8x128xf32>
    %114 = arith.extui %113 : vector<8x128xi1> to vector<8x128xi32>
    %115 = arith.sitofp %114 : vector<8x128xi32> to vector<8x128xf32>
    %cst_43 = arith.constant 0.899999976 : f32
    %116 = vector.broadcast %cst_43 : f32 to vector<8x128xf32>
    %117 = arith.mulf %116, %106 : vector<8x128xf32>
    %118 = arith.addf %117, %5 : vector<8x128xf32>
    %cst_44 = arith.constant 1.000000e+00 : f32
    %119 = vector.broadcast %cst_44 : f32 to vector<8x128xf32>
    %120 = arith.mulf %115, %119 : vector<8x128xf32>
    %121 = arith.subf %118, %120 : vector<8x128xf32>
    %cst_45 = arith.constant 1.000000e+00 : f32
    %122 = vector.broadcast %cst_45 : f32 to vector<8x128xf32>
    %123 = arith.cmpf ogt, %121, %122 : vector<8x128xf32>
    %124 = arith.extui %123 : vector<8x128xi1> to vector<8x128xi32>
    %125 = arith.sitofp %124 : vector<8x128xi32> to vector<8x128xf32>
    %c56 = arith.constant 56 : index
    %c0_46 = arith.constant 0 : index
    %126 = vector.load %arg10[%c56, %c0_46] : memref<200x128xf32, #tpu.memory_space<vmem>>, vector<8x128xf32>
    tpu.vector_store %arg10[%c56, %c0_46], %125 {strides = array<i32>} : memref<200x128xf32, #tpu.memory_space<vmem>>, vector<8x128xf32>,
    %cst_47 = arith.constant 1.000000e+00 : f32
    %127 = vector.broadcast %cst_47 : f32 to vector<8x128xf32>
    %128 = arith.cmpf ogt, %121, %127 : vector<8x128xf32>
    %129 = arith.extui %128 : vector<8x128xi1> to vector<8x128xi32>
    %130 = arith.sitofp %129 : vector<8x128xi32> to vector<8x128xf32>
    %cst_48 = arith.constant 0.899999976 : f32
    %131 = vector.broadcast %cst_48 : f32 to vector<8x128xf32>
    %132 = arith.mulf %131, %121 : vector<8x128xf32>
    %133 = arith.addf %132, %5 : vector<8x128xf32>
    %cst_49 = arith.constant 1.000000e+00 : f32
    %134 = vector.broadcast %cst_49 : f32 to vector<8x128xf32>
    %135 = arith.mulf %130, %134 : vector<8x128xf32>
    %136 = arith.subf %133, %135 : vector<8x128xf32>
    %cst_50 = arith.constant 1.000000e+00 : f32
    %137 = vector.broadcast %cst_50 : f32 to vector<8x128xf32>
    %138 = arith.cmpf ogt, %136, %137 : vector<8x128xf32>
    %139 = arith.extui %138 : vector<8x128xi1> to vector<8x128xi32>
    %140 = arith.sitofp %139 : vector<8x128xi32> to vector<8x128xf32>
    %c64 = arith.constant 64 : index
    %c0_51 = arith.constant 0 : index
    %141 = vector.load %arg10[%c64, %c0_51] : memref<200x128xf32, #tpu.memory_space<vmem>>, vector<8x128xf32>
    tpu.vector_store %arg10[%c64, %c0_51], %140 {strides = array<i32>} : memref<200x128xf32, #tpu.memory_space<vmem>>, vector<8x128xf32>,
    %cst_52 = arith.constant 1.000000e+00 : f32
    %142 = vector.broadcast %cst_52 : f32 to vector<8x128xf32>
    %143 = arith.cmpf ogt, %136, %142 : vector<8x128xf32>
    %144 = arith.extui %143 : vector<8x128xi1> to vector<8x128xi32>
    %145 = arith.sitofp %144 : vector<8x128xi32> to vector<8x128xf32>
    %cst_53 = arith.constant 0.899999976 : f32
    %146 = vector.broadcast %cst_53 : f32 to vector<8x128xf32>
    %147 = arith.mulf %146, %136 : vector<8x128xf32>
    %148 = arith.addf %147, %5 : vector<8x128xf32>
    %cst_54 = arith.constant 1.000000e+00 : f32
    %149 = vector.broadcast %cst_54 : f32 to vector<8x128xf32>
    %150 = arith.mulf %145, %149 : vector<8x128xf32>
    %151 = arith.subf %148, %150 : vector<8x128xf32>
    %cst_55 = arith.constant 1.000000e+00 : f32
    %152 = vector.broadcast %cst_55 : f32 to vector<8x128xf32>
    %153 = arith.cmpf ogt, %151, %152 : vector<8x128xf32>
    %154 = arith.extui %153 : vector<8x128xi1> to vector<8x128xi32>
    %155 = arith.sitofp %154 : vector<8x128xi32> to vector<8x128xf32>
    %c72 = arith.constant 72 : index
    %c0_56 = arith.constant 0 : index
    %156 = vector.load %arg10[%c72, %c0_56] : memref<200x128xf32, #tpu.memory_space<vmem>>, vector<8x128xf32>
    tpu.vector_store %arg10[%c72, %c0_56], %155 {strides = array<i32>} : memref<200x128xf32, #tpu.memory_space<vmem>>, vector<8x128xf32>,
    %cst_57 = arith.constant 1.000000e+00 : f32
    %157 = vector.broadcast %cst_57 : f32 to vector<8x128xf32>
    %158 = arith.cmpf ogt, %151, %157 : vector<8x128xf32>
    %159 = arith.extui %158 : vector<8x128xi1> to vector<8x128xi32>
    %160 = arith.sitofp %159 : vector<8x128xi32> to vector<8x128xf32>
    %cst_58 = arith.constant 0.899999976 : f32
    %161 = vector.broadcast %cst_58 : f32 to vector<8x128xf32>
    %162 = arith.mulf %161, %151 : vector<8x128xf32>
    %163 = arith.addf %162, %5 : vector<8x128xf32>
    %cst_59 = arith.constant 1.000000e+00 : f32
    %164 = vector.broadcast %cst_59 : f32 to vector<8x128xf32>
    %165 = arith.mulf %160, %164 : vector<8x128xf32>
    %166 = arith.subf %163, %165 : vector<8x128xf32>
    %cst_60 = arith.constant 1.000000e+00 : f32
    %167 = vector.broadcast %cst_60 : f32 to vector<8x128xf32>
    %168 = arith.cmpf ogt, %166, %167 : vector<8x128xf32>
    %169 = arith.extui %168 : vector<8x128xi1> to vector<8x128xi32>
    %170 = arith.sitofp %169 : vector<8x128xi32> to vector<8x128xf32>
    %c80 = arith.constant 80 : index
    %c0_61 = arith.constant 0 : index
    %171 = vector.load %arg10[%c80, %c0_61] : memref<200x128xf32, #tpu.memory_space<vmem>>, vector<8x128xf32>
    tpu.vector_store %arg10[%c80, %c0_61], %170 {strides = array<i32>} : memref<200x128xf32, #tpu.memory_space<vmem>>, vector<8x128xf32>,
    %cst_62 = arith.constant 1.000000e+00 : f32
    %172 = vector.broadcast %cst_62 : f32 to vector<8x128xf32>
    %173 = arith.cmpf ogt, %166, %172 : vector<8x128xf32>
    %174 = arith.extui %173 : vector<8x128xi1> to vector<8x128xi32>
    %175 = arith.sitofp %174 : vector<8x128xi32> to vector<8x128xf32>
    %cst_63 = arith.constant 0.899999976 : f32
    %176 = vector.broadcast %cst_63 : f32 to vector<8x128xf32>
    %177 = arith.mulf %176, %166 : vector<8x128xf32>
    %178 = arith.addf %177, %5 : vector<8x128xf32>
    %cst_64 = arith.constant 1.000000e+00 : f32
    %179 = vector.broadcast %cst_64 : f32 to vector<8x128xf32>
    %180 = arith.mulf %175, %179 : vector<8x128xf32>
    %181 = arith.subf %178, %180 : vector<8x128xf32>
    %cst_65 = arith.constant 1.000000e+00 : f32
    %182 = vector.broadcast %cst_65 : f32 to vector<8x128xf32>
    %183 = arith.cmpf ogt, %181, %182 : vector<8x128xf32>
    %184 = arith.extui %183 : vector<8x128xi1> to vector<8x128xi32>
    %185 = arith.sitofp %184 : vector<8x128xi32> to vector<8x128xf32>
    %c88 = arith.constant 88 : index
    %c0_66 = arith.constant 0 : index
    %186 = vector.load %arg10[%c88, %c0_66] : memref<200x128xf32, #tpu.memory_space<vmem>>, vector<8x128xf32>
    tpu.vector_store %arg10[%c88, %c0_66], %185 {strides = array<i32>} : memref<200x128xf32, #tpu.memory_space<vmem>>, vector<8x128xf32>,
    %cst_67 = arith.constant 1.000000e+00 : f32
    %187 = vector.broadcast %cst_67 : f32 to vector<8x128xf32>
    %188 = arith.cmpf ogt, %181, %187 : vector<8x128xf32>
    %189 = arith.extui %188 : vector<8x128xi1> to vector<8x128xi32>
    %190 = arith.sitofp %189 : vector<8x128xi32> to vector<8x128xf32>
    %cst_68 = arith.constant 0.899999976 : f32
    %191 = vector.broadcast %cst_68 : f32 to vector<8x128xf32>
    %192 = arith.mulf %191, %181 : vector<8x128xf32>
    %193 = arith.addf %192, %5 : vector<8x128xf32>
    %cst_69 = arith.constant 1.000000e+00 : f32
    %194 = vector.broadcast %cst_69 : f32 to vector<8x128xf32>
    %195 = arith.mulf %190, %194 : vector<8x128xf32>
    %196 = arith.subf %193, %195 : vector<8x128xf32>
    %cst_70 = arith.constant 1.000000e+00 : f32
    %197 = vector.broadcast %cst_70 : f32 to vector<8x128xf32>
    %198 = arith.cmpf ogt, %196, %197 : vector<8x128xf32>
    %199 = arith.extui %198 : vector<8x128xi1> to vector<8x128xi32>
    %200 = arith.sitofp %199 : vector<8x128xi32> to vector<8x128xf32>
    %c96 = arith.constant 96 : index
    %c0_71 = arith.constant 0 : index
    %201 = vector.load %arg10[%c96, %c0_71] : memref<200x128xf32, #tpu.memory_space<vmem>>, vector<8x128xf32>
    tpu.vector_store %arg10[%c96, %c0_71], %200 {strides = array<i32>} : memref<200x128xf32, #tpu.memory_space<vmem>>, vector<8x128xf32>,
    %cst_72 = arith.constant 1.000000e+00 : f32
    %202 = vector.broadcast %cst_72 : f32 to vector<8x128xf32>
    %203 = arith.cmpf ogt, %196, %202 : vector<8x128xf32>
    %204 = arith.extui %203 : vector<8x128xi1> to vector<8x128xi32>
    %205 = arith.sitofp %204 : vector<8x128xi32> to vector<8x128xf32>
    %cst_73 = arith.constant 0.899999976 : f32
    %206 = vector.broadcast %cst_73 : f32 to vector<8x128xf32>
    %207 = arith.mulf %206, %196 : vector<8x128xf32>
    %208 = arith.addf %207, %5 : vector<8x128xf32>
    %cst_74 = arith.constant 1.000000e+00 : f32
    %209 = vector.broadcast %cst_74 : f32 to vector<8x128xf32>
    %210 = arith.mulf %205, %209 : vector<8x128xf32>
    %211 = arith.subf %208, %210 : vector<8x128xf32>
    %cst_75 = arith.constant 1.000000e+00 : f32
    %212 = vector.broadcast %cst_75 : f32 to vector<8x128xf32>
    %213 = arith.cmpf ogt, %211, %212 : vector<8x128xf32>
    %214 = arith.extui %213 : vector<8x128xi1> to vector<8x128xi32>
    %215 = arith.sitofp %214 : vector<8x128xi32> to vector<8x128xf32>
    %c104 = arith.constant 104 : index
    %c0_76 = arith.constant 0 : index
    %216 = vector.load %arg10[%c104, %c0_76] : memref<200x128xf32, #tpu.memory_space<vmem>>, vector<8x128xf32>
    tpu.vector_store %arg10[%c104, %c0_76], %215 {strides = array<i32>} : memref<200x128xf32, #tpu.memory_space<vmem>>, vector<8x128xf32>,
    %cst_77 = arith.constant 1.000000e+00 : f32
    %217 = vector.broadcast %cst_77 : f32 to vector<8x128xf32>
    %218 = arith.cmpf ogt, %211, %217 : vector<8x128xf32>
    %219 = arith.extui %218 : vector<8x128xi1> to vector<8x128xi32>
    %220 = arith.sitofp %219 : vector<8x128xi32> to vector<8x128xf32>
    %cst_78 = arith.constant 0.899999976 : f32
    %221 = vector.broadcast %cst_78 : f32 to vector<8x128xf32>
    %222 = arith.mulf %221, %211 : vector<8x128xf32>
    %223 = arith.addf %222, %5 : vector<8x128xf32>
    %cst_79 = arith.constant 1.000000e+00 : f32
    %224 = vector.broadcast %cst_79 : f32 to vector<8x128xf32>
    %225 = arith.mulf %220, %224 : vector<8x128xf32>
    %226 = arith.subf %223, %225 : vector<8x128xf32>
    %cst_80 = arith.constant 1.000000e+00 : f32
    %227 = vector.broadcast %cst_80 : f32 to vector<8x128xf32>
    %228 = arith.cmpf ogt, %226, %227 : vector<8x128xf32>
    %229 = arith.extui %228 : vector<8x128xi1> to vector<8x128xi32>
    %230 = arith.sitofp %229 : vector<8x128xi32> to vector<8x128xf32>
    %c112 = arith.constant 112 : index
    %c0_81 = arith.constant 0 : index
    %231 = vector.load %arg10[%c112, %c0_81] : memref<200x128xf32, #tpu.memory_space<vmem>>, vector<8x128xf32>
    tpu.vector_store %arg10[%c112, %c0_81], %230 {strides = array<i32>} : memref<200x128xf32, #tpu.memory_space<vmem>>, vector<8x128xf32>,
    %cst_82 = arith.constant 1.000000e+00 : f32
    %232 = vector.broadcast %cst_82 : f32 to vector<8x128xf32>
    %233 = arith.cmpf ogt, %226, %232 : vector<8x128xf32>
    %234 = arith.extui %233 : vector<8x128xi1> to vector<8x128xi32>
    %235 = arith.sitofp %234 : vector<8x128xi32> to vector<8x128xf32>
    %cst_83 = arith.constant 0.899999976 : f32
    %236 = vector.broadcast %cst_83 : f32 to vector<8x128xf32>
    %237 = arith.mulf %236, %226 : vector<8x128xf32>
    %238 = arith.addf %237, %5 : vector<8x128xf32>
    %cst_84 = arith.constant 1.000000e+00 : f32
    %239 = vector.broadcast %cst_84 : f32 to vector<8x128xf32>
    %240 = arith.mulf %235, %239 : vector<8x128xf32>
    %241 = arith.subf %238, %240 : vector<8x128xf32>
    %cst_85 = arith.constant 1.000000e+00 : f32
    %242 = vector.broadcast %cst_85 : f32 to vector<8x128xf32>
    %243 = arith.cmpf ogt, %241, %242 : vector<8x128xf32>
    %244 = arith.extui %243 : vector<8x128xi1> to vector<8x128xi32>
    %245 = arith.sitofp %244 : vector<8x128xi32> to vector<8x128xf32>
    %c120 = arith.constant 120 : index
    %c0_86 = arith.constant 0 : index
    %246 = vector.load %arg10[%c120, %c0_86] : memref<200x128xf32, #tpu.memory_space<vmem>>, vector<8x128xf32>
    tpu.vector_store %arg10[%c120, %c0_86], %245 {strides = array<i32>} : memref<200x128xf32, #tpu.memory_space<vmem>>, vector<8x128xf32>,
    %cst_87 = arith.constant 1.000000e+00 : f32
    %247 = vector.broadcast %cst_87 : f32 to vector<8x128xf32>
    %248 = arith.cmpf ogt, %241, %247 : vector<8x128xf32>
    %249 = arith.extui %248 : vector<8x128xi1> to vector<8x128xi32>
    %250 = arith.sitofp %249 : vector<8x128xi32> to vector<8x128xf32>
    %cst_88 = arith.constant 0.899999976 : f32
    %251 = vector.broadcast %cst_88 : f32 to vector<8x128xf32>
    %252 = arith.mulf %251, %241 : vector<8x128xf32>
    %253 = arith.addf %252, %5 : vector<8x128xf32>
    %cst_89 = arith.constant 1.000000e+00 : f32
    %254 = vector.broadcast %cst_89 : f32 to vector<8x128xf32>
    %255 = arith.mulf %250, %254 : vector<8x128xf32>
    %256 = arith.subf %253, %255 : vector<8x128xf32>
    %cst_90 = arith.constant 1.000000e+00 : f32
    %257 = vector.broadcast %cst_90 : f32 to vector<8x128xf32>
    %258 = arith.cmpf ogt, %256, %257 : vector<8x128xf32>
    %259 = arith.extui %258 : vector<8x128xi1> to vector<8x128xi32>
    %260 = arith.sitofp %259 : vector<8x128xi32> to vector<8x128xf32>
    %c128 = arith.constant 128 : index
    %c0_91 = arith.constant 0 : index
    %261 = vector.load %arg10[%c128, %c0_91] : memref<200x128xf32, #tpu.memory_space<vmem>>, vector<8x128xf32>
    tpu.vector_store %arg10[%c128, %c0_91], %260 {strides = array<i32>} : memref<200x128xf32, #tpu.memory_space<vmem>>, vector<8x128xf32>,
    %cst_92 = arith.constant 1.000000e+00 : f32
    %262 = vector.broadcast %cst_92 : f32 to vector<8x128xf32>
    %263 = arith.cmpf ogt, %256, %262 : vector<8x128xf32>
    %264 = arith.extui %263 : vector<8x128xi1> to vector<8x128xi32>
    %265 = arith.sitofp %264 : vector<8x128xi32> to vector<8x128xf32>
    %cst_93 = arith.constant 0.899999976 : f32
    %266 = vector.broadcast %cst_93 : f32 to vector<8x128xf32>
    %267 = arith.mulf %266, %256 : vector<8x128xf32>
    %268 = arith.addf %267, %5 : vector<8x128xf32>
    %cst_94 = arith.constant 1.000000e+00 : f32
    %269 = vector.broadcast %cst_94 : f32 to vector<8x128xf32>
    %270 = arith.mulf %265, %269 : vector<8x128xf32>
    %271 = arith.subf %268, %270 : vector<8x128xf32>
    %cst_95 = arith.constant 1.000000e+00 : f32
    %272 = vector.broadcast %cst_95 : f32 to vector<8x128xf32>
    %273 = arith.cmpf ogt, %271, %272 : vector<8x128xf32>
    %274 = arith.extui %273 : vector<8x128xi1> to vector<8x128xi32>
    %275 = arith.sitofp %274 : vector<8x128xi32> to vector<8x128xf32>
    %c136 = arith.constant 136 : index
    %c0_96 = arith.constant 0 : index
    %276 = vector.load %arg10[%c136, %c0_96] : memref<200x128xf32, #tpu.memory_space<vmem>>, vector<8x128xf32>
    tpu.vector_store %arg10[%c136, %c0_96], %275 {strides = array<i32>} : memref<200x128xf32, #tpu.memory_space<vmem>>, vector<8x128xf32>,
    %cst_97 = arith.constant 1.000000e+00 : f32
    %277 = vector.broadcast %cst_97 : f32 to vector<8x128xf32>
    %278 = arith.cmpf ogt, %271, %277 : vector<8x128xf32>
    %279 = arith.extui %278 : vector<8x128xi1> to vector<8x128xi32>
    %280 = arith.sitofp %279 : vector<8x128xi32> to vector<8x128xf32>
    %cst_98 = arith.constant 0.899999976 : f32
    %281 = vector.broadcast %cst_98 : f32 to vector<8x128xf32>
    %282 = arith.mulf %281, %271 : vector<8x128xf32>
    %283 = arith.addf %282, %5 : vector<8x128xf32>
    %cst_99 = arith.constant 1.000000e+00 : f32
    %284 = vector.broadcast %cst_99 : f32 to vector<8x128xf32>
    %285 = arith.mulf %280, %284 : vector<8x128xf32>
    %286 = arith.subf %283, %285 : vector<8x128xf32>
    %cst_100 = arith.constant 1.000000e+00 : f32
    %287 = vector.broadcast %cst_100 : f32 to vector<8x128xf32>
    %288 = arith.cmpf ogt, %286, %287 : vector<8x128xf32>
    %289 = arith.extui %288 : vector<8x128xi1> to vector<8x128xi32>
    %290 = arith.sitofp %289 : vector<8x128xi32> to vector<8x128xf32>
    %c144 = arith.constant 144 : index
    %c0_101 = arith.constant 0 : index
    %291 = vector.load %arg10[%c144, %c0_101] : memref<200x128xf32, #tpu.memory_space<vmem>>, vector<8x128xf32>
    tpu.vector_store %arg10[%c144, %c0_101], %290 {strides = array<i32>} : memref<200x128xf32, #tpu.memory_space<vmem>>, vector<8x128xf32>,
    %cst_102 = arith.constant 1.000000e+00 : f32
    %292 = vector.broadcast %cst_102 : f32 to vector<8x128xf32>
    %293 = arith.cmpf ogt, %286, %292 : vector<8x128xf32>
    %294 = arith.extui %293 : vector<8x128xi1> to vector<8x128xi32>
    %295 = arith.sitofp %294 : vector<8x128xi32> to vector<8x128xf32>
    %cst_103 = arith.constant 0.899999976 : f32
    %296 = vector.broadcast %cst_103 : f32 to vector<8x128xf32>
    %297 = arith.mulf %296, %286 : vector<8x128xf32>
    %298 = arith.addf %297, %5 : vector<8x128xf32>
    %cst_104 = arith.constant 1.000000e+00 : f32
    %299 = vector.broadcast %cst_104 : f32 to vector<8x128xf32>
    %300 = arith.mulf %295, %299 : vector<8x128xf32>
    %301 = arith.subf %298, %300 : vector<8x128xf32>
    %cst_105 = arith.constant 1.000000e+00 : f32
    %302 = vector.broadcast %cst_105 : f32 to vector<8x128xf32>
    %303 = arith.cmpf ogt, %301, %302 : vector<8x128xf32>
    %304 = arith.extui %303 : vector<8x128xi1> to vector<8x128xi32>
    %305 = arith.sitofp %304 : vector<8x128xi32> to vector<8x128xf32>
    %c152 = arith.constant 152 : index
    %c0_106 = arith.constant 0 : index
    %306 = vector.load %arg10[%c152, %c0_106] : memref<200x128xf32, #tpu.memory_space<vmem>>, vector<8x128xf32>
    tpu.vector_store %arg10[%c152, %c0_106], %305 {strides = array<i32>} : memref<200x128xf32, #tpu.memory_space<vmem>>, vector<8x128xf32>,
    %cst_107 = arith.constant 1.000000e+00 : f32
    %307 = vector.broadcast %cst_107 : f32 to vector<8x128xf32>
    %308 = arith.cmpf ogt, %301, %307 : vector<8x128xf32>
    %309 = arith.extui %308 : vector<8x128xi1> to vector<8x128xi32>
    %310 = arith.sitofp %309 : vector<8x128xi32> to vector<8x128xf32>
    %cst_108 = arith.constant 0.899999976 : f32
    %311 = vector.broadcast %cst_108 : f32 to vector<8x128xf32>
    %312 = arith.mulf %311, %301 : vector<8x128xf32>
    %313 = arith.addf %312, %5 : vector<8x128xf32>
    %cst_109 = arith.constant 1.000000e+00 : f32
    %314 = vector.broadcast %cst_109 : f32 to vector<8x128xf32>
    %315 = arith.mulf %310, %314 : vector<8x128xf32>
    %316 = arith.subf %313, %315 : vector<8x128xf32>
    %cst_110 = arith.constant 1.000000e+00 : f32
    %317 = vector.broadcast %cst_110 : f32 to vector<8x128xf32>
    %318 = arith.cmpf ogt, %316, %317 : vector<8x128xf32>
    %319 = arith.extui %318 : vector<8x128xi1> to vector<8x128xi32>
    %320 = arith.sitofp %319 : vector<8x128xi32> to vector<8x128xf32>
    %c160 = arith.constant 160 : index
    %c0_111 = arith.constant 0 : index
    %321 = vector.load %arg10[%c160, %c0_111] : memref<200x128xf32, #tpu.memory_space<vmem>>, vector<8x128xf32>
    tpu.vector_store %arg10[%c160, %c0_111], %320 {strides = array<i32>} : memref<200x128xf32, #tpu.memory_space<vmem>>, vector<8x128xf32>,
    %cst_112 = arith.constant 1.000000e+00 : f32
    %322 = vector.broadcast %cst_112 : f32 to vector<8x128xf32>
    %323 = arith.cmpf ogt, %316, %322 : vector<8x128xf32>
    %324 = arith.extui %323 : vector<8x128xi1> to vector<8x128xi32>
    %325 = arith.sitofp %324 : vector<8x128xi32> to vector<8x128xf32>
    %cst_113 = arith.constant 0.899999976 : f32
    %326 = vector.broadcast %cst_113 : f32 to vector<8x128xf32>
    %327 = arith.mulf %326, %316 : vector<8x128xf32>
    %328 = arith.addf %327, %5 : vector<8x128xf32>
    %cst_114 = arith.constant 1.000000e+00 : f32
    %329 = vector.broadcast %cst_114 : f32 to vector<8x128xf32>
    %330 = arith.mulf %325, %329 : vector<8x128xf32>
    %331 = arith.subf %328, %330 : vector<8x128xf32>
    %cst_115 = arith.constant 1.000000e+00 : f32
    %332 = vector.broadcast %cst_115 : f32 to vector<8x128xf32>
    %333 = arith.cmpf ogt, %331, %332 : vector<8x128xf32>
    %334 = arith.extui %333 : vector<8x128xi1> to vector<8x128xi32>
    %335 = arith.sitofp %334 : vector<8x128xi32> to vector<8x128xf32>
    %c168 = arith.constant 168 : index
    %c0_116 = arith.constant 0 : index
    %336 = vector.load %arg10[%c168, %c0_116] : memref<200x128xf32, #tpu.memory_space<vmem>>, vector<8x128xf32>
    tpu.vector_store %arg10[%c168, %c0_116], %335 {strides = array<i32>} : memref<200x128xf32, #tpu.memory_space<vmem>>, vector<8x128xf32>,
    %cst_117 = arith.constant 1.000000e+00 : f32
    %337 = vector.broadcast %cst_117 : f32 to vector<8x128xf32>
    %338 = arith.cmpf ogt, %331, %337 : vector<8x128xf32>
    %339 = arith.extui %338 : vector<8x128xi1> to vector<8x128xi32>
    %340 = arith.sitofp %339 : vector<8x128xi32> to vector<8x128xf32>
    %cst_118 = arith.constant 0.899999976 : f32
    %341 = vector.broadcast %cst_118 : f32 to vector<8x128xf32>
    %342 = arith.mulf %341, %331 : vector<8x128xf32>
    %343 = arith.addf %342, %5 : vector<8x128xf32>
    %cst_119 = arith.constant 1.000000e+00 : f32
    %344 = vector.broadcast %cst_119 : f32 to vector<8x128xf32>
    %345 = arith.mulf %340, %344 : vector<8x128xf32>
    %346 = arith.subf %343, %345 : vector<8x128xf32>
    %cst_120 = arith.constant 1.000000e+00 : f32
    %347 = vector.broadcast %cst_120 : f32 to vector<8x128xf32>
    %348 = arith.cmpf ogt, %346, %347 : vector<8x128xf32>
    %349 = arith.extui %348 : vector<8x128xi1> to vector<8x128xi32>
    %350 = arith.sitofp %349 : vector<8x128xi32> to vector<8x128xf32>
    %c176 = arith.constant 176 : index
    %c0_121 = arith.constant 0 : index
    %351 = vector.load %arg10[%c176, %c0_121] : memref<200x128xf32, #tpu.memory_space<vmem>>, vector<8x128xf32>
    tpu.vector_store %arg10[%c176, %c0_121], %350 {strides = array<i32>} : memref<200x128xf32, #tpu.memory_space<vmem>>, vector<8x128xf32>,
    %cst_122 = arith.constant 1.000000e+00 : f32
    %352 = vector.broadcast %cst_122 : f32 to vector<8x128xf32>
    %353 = arith.cmpf ogt, %346, %352 : vector<8x128xf32>
    %354 = arith.extui %353 : vector<8x128xi1> to vector<8x128xi32>
    %355 = arith.sitofp %354 : vector<8x128xi32> to vector<8x128xf32>
    %cst_123 = arith.constant 0.899999976 : f32
    %356 = vector.broadcast %cst_123 : f32 to vector<8x128xf32>
    %357 = arith.mulf %356, %346 : vector<8x128xf32>
    %358 = arith.addf %357, %5 : vector<8x128xf32>
    %cst_124 = arith.constant 1.000000e+00 : f32
    %359 = vector.broadcast %cst_124 : f32 to vector<8x128xf32>
    %360 = arith.mulf %355, %359 : vector<8x128xf32>
    %361 = arith.subf %358, %360 : vector<8x128xf32>
    %cst_125 = arith.constant 1.000000e+00 : f32
    %362 = vector.broadcast %cst_125 : f32 to vector<8x128xf32>
    %363 = arith.cmpf ogt, %361, %362 : vector<8x128xf32>
    %364 = arith.extui %363 : vector<8x128xi1> to vector<8x128xi32>
    %365 = arith.sitofp %364 : vector<8x128xi32> to vector<8x128xf32>
    %c184 = arith.constant 184 : index
    %c0_126 = arith.constant 0 : index
    %366 = vector.load %arg10[%c184, %c0_126] : memref<200x128xf32, #tpu.memory_space<vmem>>, vector<8x128xf32>
    tpu.vector_store %arg10[%c184, %c0_126], %365 {strides = array<i32>} : memref<200x128xf32, #tpu.memory_space<vmem>>, vector<8x128xf32>,
    %cst_127 = arith.constant 1.000000e+00 : f32
    %367 = vector.broadcast %cst_127 : f32 to vector<8x128xf32>
    %368 = arith.cmpf ogt, %361, %367 : vector<8x128xf32>
    %369 = arith.extui %368 : vector<8x128xi1> to vector<8x128xi32>
    %370 = arith.sitofp %369 : vector<8x128xi32> to vector<8x128xf32>
    %cst_128 = arith.constant 0.899999976 : f32
    %371 = vector.broadcast %cst_128 : f32 to vector<8x128xf32>
    %372 = arith.mulf %371, %361 : vector<8x128xf32>
    %373 = arith.addf %372, %5 : vector<8x128xf32>
    %cst_129 = arith.constant 1.000000e+00 : f32
    %374 = vector.broadcast %cst_129 : f32 to vector<8x128xf32>
    %375 = arith.mulf %370, %374 : vector<8x128xf32>
    %376 = arith.subf %373, %375 : vector<8x128xf32>
    %cst_130 = arith.constant 1.000000e+00 : f32
    %377 = vector.broadcast %cst_130 : f32 to vector<8x128xf32>
    %378 = arith.cmpf ogt, %376, %377 : vector<8x128xf32>
    %379 = arith.extui %378 : vector<8x128xi1> to vector<8x128xi32>
    %380 = arith.sitofp %379 : vector<8x128xi32> to vector<8x128xf32>
    %c192 = arith.constant 192 : index
    %c0_131 = arith.constant 0 : index
    %381 = vector.load %arg10[%c192, %c0_131] : memref<200x128xf32, #tpu.memory_space<vmem>>, vector<8x128xf32>
    tpu.vector_store %arg10[%c192, %c0_131], %380 {strides = array<i32>} : memref<200x128xf32, #tpu.memory_space<vmem>>, vector<8x128xf32>,
    %c0_132 = arith.constant 0 : index
    %c0_133 = arith.constant 0 : index
    %382 = vector.load %arg10[%c0_132, %c0_133] : memref<200x128xf32, #tpu.memory_space<vmem>>, vector<200x128xf32>
    %c0_134 = arith.constant 0 : index
    %c0_135 = arith.constant 0 : index
    %383 = vector.load %arg4[%c0_134, %c0_135] : memref<128x128xf32, #tpu.memory_space<vmem>>, vector<128x128xf32>
    %cst_136 = arith.constant dense<0.000000e+00> : vector<200x128xf32>
    %384 = tpu.matmul %382, %383, %cst_136 {dimension_numbers = #tpu.dot_dimension_numbers<[1], [0], [0], [1], [0, 0, 1, 1], [], []>} : vector<200x128xf32>, vector<128x128xf32>, vector<200x128xf32> -> vector<200x128xf32>
    %c0_137 = arith.constant 0 : index
    %c0_138 = arith.constant 0 : index
    %385 = vector.load %arg5[%c0_137, %c0_138] : memref<1x128xf32, #tpu.memory_space<vmem>>, vector<1x128xf32>
    %386 = vector.broadcast %385 : vector<1x128xf32> to vector<200x128xf32>
    %387 = arith.addf %384, %386 : vector<200x128xf32>
    %cst_139 = arith.constant 0.000000e+00 : f32
    %388 = vector.broadcast %cst_139 : f32 to vector<8x128xf32>
    %389 = vector.extract_strided_slice %387 {offsets = [0, 0], sizes = [8, 128], strides = [1, 1]} : vector<200x128xf32> to vector<8x128xf32>
    %cst_140 = arith.constant 1.000000e+00 : f32
    %390 = vector.broadcast %cst_140 : f32 to vector<8x128xf32>
    %391 = arith.cmpf ogt, %388, %390 : vector<8x128xf32>
    %392 = arith.extui %391 : vector<8x128xi1> to vector<8x128xi32>
    %393 = arith.sitofp %392 : vector<8x128xi32> to vector<8x128xf32>
    %cst_141 = arith.constant 0.899999976 : f32
    %394 = vector.broadcast %cst_141 : f32 to vector<8x128xf32>
    %395 = arith.mulf %394, %388 : vector<8x128xf32>
    %396 = arith.addf %395, %389 : vector<8x128xf32>
    %cst_142 = arith.constant 1.000000e+00 : f32
    %397 = vector.broadcast %cst_142 : f32 to vector<8x128xf32>
    %398 = arith.mulf %393, %397 : vector<8x128xf32>
    %399 = arith.subf %396, %398 : vector<8x128xf32>
    %cst_143 = arith.constant 1.000000e+00 : f32
    %400 = vector.broadcast %cst_143 : f32 to vector<8x128xf32>
    %401 = arith.cmpf ogt, %399, %400 : vector<8x128xf32>
    %402 = arith.extui %401 : vector<8x128xi1> to vector<8x128xi32>
    %403 = arith.sitofp %402 : vector<8x128xi32> to vector<8x128xf32>
    %c0_144 = arith.constant 0 : index
    %c0_145 = arith.constant 0 : index
    %404 = vector.load %arg11[%c0_144, %c0_145] : memref<200x128xf32, #tpu.memory_space<vmem>>, vector<8x128xf32>
    tpu.vector_store %arg11[%c0_144, %c0_145], %403 {strides = array<i32>} : memref<200x128xf32, #tpu.memory_space<vmem>>, vector<8x128xf32>,
    %405 = vector.extract_strided_slice %387 {offsets = [8, 0], sizes = [8, 128], strides = [1, 1]} : vector<200x128xf32> to vector<8x128xf32>
    %cst_146 = arith.constant 1.000000e+00 : f32
    %406 = vector.broadcast %cst_146 : f32 to vector<8x128xf32>
    %407 = arith.cmpf ogt, %399, %406 : vector<8x128xf32>
    %408 = arith.extui %407 : vector<8x128xi1> to vector<8x128xi32>
    %409 = arith.sitofp %408 : vector<8x128xi32> to vector<8x128xf32>
    %cst_147 = arith.constant 0.899999976 : f32
    %410 = vector.broadcast %cst_147 : f32 to vector<8x128xf32>
    %411 = arith.mulf %410, %399 : vector<8x128xf32>
    %412 = arith.addf %411, %405 : vector<8x128xf32>
    %cst_148 = arith.constant 1.000000e+00 : f32
    %413 = vector.broadcast %cst_148 : f32 to vector<8x128xf32>
    %414 = arith.mulf %409, %413 : vector<8x128xf32>
    %415 = arith.subf %412, %414 : vector<8x128xf32>
    %cst_149 = arith.constant 1.000000e+00 : f32
    %416 = vector.broadcast %cst_149 : f32 to vector<8x128xf32>
    %417 = arith.cmpf ogt, %415, %416 : vector<8x128xf32>
    %418 = arith.extui %417 : vector<8x128xi1> to vector<8x128xi32>
    %419 = arith.sitofp %418 : vector<8x128xi32> to vector<8x128xf32>
    %c8_150 = arith.constant 8 : index
    %c0_151 = arith.constant 0 : index
    %420 = vector.load %arg11[%c8_150, %c0_151] : memref<200x128xf32, #tpu.memory_space<vmem>>, vector<8x128xf32>
    tpu.vector_store %arg11[%c8_150, %c0_151], %419 {strides = array<i32>} : memref<200x128xf32, #tpu.memory_space<vmem>>, vector<8x128xf32>,
    %421 = vector.extract_strided_slice %387 {offsets = [16, 0], sizes = [8, 128], strides = [1, 1]} : vector<200x128xf32> to vector<8x128xf32>
    %cst_152 = arith.constant 1.000000e+00 : f32
    %422 = vector.broadcast %cst_152 : f32 to vector<8x128xf32>
    %423 = arith.cmpf ogt, %415, %422 : vector<8x128xf32>
    %424 = arith.extui %423 : vector<8x128xi1> to vector<8x128xi32>
    %425 = arith.sitofp %424 : vector<8x128xi32> to vector<8x128xf32>
    %cst_153 = arith.constant 0.899999976 : f32
    %426 = vector.broadcast %cst_153 : f32 to vector<8x128xf32>
    %427 = arith.mulf %426, %415 : vector<8x128xf32>
    %428 = arith.addf %427, %421 : vector<8x128xf32>
    %cst_154 = arith.constant 1.000000e+00 : f32
    %429 = vector.broadcast %cst_154 : f32 to vector<8x128xf32>
    %430 = arith.mulf %425, %429 : vector<8x128xf32>
    %431 = arith.subf %428, %430 : vector<8x128xf32>
    %cst_155 = arith.constant 1.000000e+00 : f32
    %432 = vector.broadcast %cst_155 : f32 to vector<8x128xf32>
    %433 = arith.cmpf ogt, %431, %432 : vector<8x128xf32>
    %434 = arith.extui %433 : vector<8x128xi1> to vector<8x128xi32>
    %435 = arith.sitofp %434 : vector<8x128xi32> to vector<8x128xf32>
    %c16_156 = arith.constant 16 : index
    %c0_157 = arith.constant 0 : index
    %436 = vector.load %arg11[%c16_156, %c0_157] : memref<200x128xf32, #tpu.memory_space<vmem>>, vector<8x128xf32>
    tpu.vector_store %arg11[%c16_156, %c0_157], %435 {strides = array<i32>} : memref<200x128xf32, #tpu.memory_space<vmem>>, vector<8x128xf32>,
    %437 = vector.extract_strided_slice %387 {offsets = [24, 0], sizes = [8, 128], strides = [1, 1]} : vector<200x128xf32> to vector<8x128xf32>
    %cst_158 = arith.constant 1.000000e+00 : f32
    %438 = vector.broadcast %cst_158 : f32 to vector<8x128xf32>
    %439 = arith.cmpf ogt, %431, %438 : vector<8x128xf32>
    %440 = arith.extui %439 : vector<8x128xi1> to vector<8x128xi32>
    %441 = arith.sitofp %440 : vector<8x128xi32> to vector<8x128xf32>
    %cst_159 = arith.constant 0.899999976 : f32
    %442 = vector.broadcast %cst_159 : f32 to vector<8x128xf32>
    %443 = arith.mulf %442, %431 : vector<8x128xf32>
    %444 = arith.addf %443, %437 : vector<8x128xf32>
    %cst_160 = arith.constant 1.000000e+00 : f32
    %445 = vector.broadcast %cst_160 : f32 to vector<8x128xf32>
    %446 = arith.mulf %441, %445 : vector<8x128xf32>
    %447 = arith.subf %444, %446 : vector<8x128xf32>
    %cst_161 = arith.constant 1.000000e+00 : f32
    %448 = vector.broadcast %cst_161 : f32 to vector<8x128xf32>
    %449 = arith.cmpf ogt, %447, %448 : vector<8x128xf32>
    %450 = arith.extui %449 : vector<8x128xi1> to vector<8x128xi32>
    %451 = arith.sitofp %450 : vector<8x128xi32> to vector<8x128xf32>
    %c24_162 = arith.constant 24 : index
    %c0_163 = arith.constant 0 : index
    %452 = vector.load %arg11[%c24_162, %c0_163] : memref<200x128xf32, #tpu.memory_space<vmem>>, vector<8x128xf32>
    tpu.vector_store %arg11[%c24_162, %c0_163], %451 {strides = array<i32>} : memref<200x128xf32, #tpu.memory_space<vmem>>, vector<8x128xf32>,
    %453 = vector.extract_strided_slice %387 {offsets = [32, 0], sizes = [8, 128], strides = [1, 1]} : vector<200x128xf32> to vector<8x128xf32>
    %cst_164 = arith.constant 1.000000e+00 : f32
    %454 = vector.broadcast %cst_164 : f32 to vector<8x128xf32>
    %455 = arith.cmpf ogt, %447, %454 : vector<8x128xf32>
    %456 = arith.extui %455 : vector<8x128xi1> to vector<8x128xi32>
    %457 = arith.sitofp %456 : vector<8x128xi32> to vector<8x128xf32>
    %cst_165 = arith.constant 0.899999976 : f32
    %458 = vector.broadcast %cst_165 : f32 to vector<8x128xf32>
    %459 = arith.mulf %458, %447 : vector<8x128xf32>
    %460 = arith.addf %459, %453 : vector<8x128xf32>
    %cst_166 = arith.constant 1.000000e+00 : f32
    %461 = vector.broadcast %cst_166 : f32 to vector<8x128xf32>
    %462 = arith.mulf %457, %461 : vector<8x128xf32>
    %463 = arith.subf %460, %462 : vector<8x128xf32>
    %cst_167 = arith.constant 1.000000e+00 : f32
    %464 = vector.broadcast %cst_167 : f32 to vector<8x128xf32>
    %465 = arith.cmpf ogt, %463, %464 : vector<8x128xf32>
    %466 = arith.extui %465 : vector<8x128xi1> to vector<8x128xi32>
    %467 = arith.sitofp %466 : vector<8x128xi32> to vector<8x128xf32>
    %c32_168 = arith.constant 32 : index
    %c0_169 = arith.constant 0 : index
    %468 = vector.load %arg11[%c32_168, %c0_169] : memref<200x128xf32, #tpu.memory_space<vmem>>, vector<8x128xf32>
    tpu.vector_store %arg11[%c32_168, %c0_169], %467 {strides = array<i32>} : memref<200x128xf32, #tpu.memory_space<vmem>>, vector<8x128xf32>,
    %469 = vector.extract_strided_slice %387 {offsets = [40, 0], sizes = [8, 128], strides = [1, 1]} : vector<200x128xf32> to vector<8x128xf32>
    %cst_170 = arith.constant 1.000000e+00 : f32
    %470 = vector.broadcast %cst_170 : f32 to vector<8x128xf32>
    %471 = arith.cmpf ogt, %463, %470 : vector<8x128xf32>
    %472 = arith.extui %471 : vector<8x128xi1> to vector<8x128xi32>
    %473 = arith.sitofp %472 : vector<8x128xi32> to vector<8x128xf32>
    %cst_171 = arith.constant 0.899999976 : f32
    %474 = vector.broadcast %cst_171 : f32 to vector<8x128xf32>
    %475 = arith.mulf %474, %463 : vector<8x128xf32>
    %476 = arith.addf %475, %469 : vector<8x128xf32>
    %cst_172 = arith.constant 1.000000e+00 : f32
    %477 = vector.broadcast %cst_172 : f32 to vector<8x128xf32>
    %478 = arith.mulf %473, %477 : vector<8x128xf32>
    %479 = arith.subf %476, %478 : vector<8x128xf32>
    %cst_173 = arith.constant 1.000000e+00 : f32
    %480 = vector.broadcast %cst_173 : f32 to vector<8x128xf32>
    %481 = arith.cmpf ogt, %479, %480 : vector<8x128xf32>
    %482 = arith.extui %481 : vector<8x128xi1> to vector<8x128xi32>
    %483 = arith.sitofp %482 : vector<8x128xi32> to vector<8x128xf32>
    %c40_174 = arith.constant 40 : index
    %c0_175 = arith.constant 0 : index
    %484 = vector.load %arg11[%c40_174, %c0_175] : memref<200x128xf32, #tpu.memory_space<vmem>>, vector<8x128xf32>
    tpu.vector_store %arg11[%c40_174, %c0_175], %483 {strides = array<i32>} : memref<200x128xf32, #tpu.memory_space<vmem>>, vector<8x128xf32>,
    %485 = vector.extract_strided_slice %387 {offsets = [48, 0], sizes = [8, 128], strides = [1, 1]} : vector<200x128xf32> to vector<8x128xf32>
    %cst_176 = arith.constant 1.000000e+00 : f32
    %486 = vector.broadcast %cst_176 : f32 to vector<8x128xf32>
    %487 = arith.cmpf ogt, %479, %486 : vector<8x128xf32>
    %488 = arith.extui %487 : vector<8x128xi1> to vector<8x128xi32>
    %489 = arith.sitofp %488 : vector<8x128xi32> to vector<8x128xf32>
    %cst_177 = arith.constant 0.899999976 : f32
    %490 = vector.broadcast %cst_177 : f32 to vector<8x128xf32>
    %491 = arith.mulf %490, %479 : vector<8x128xf32>
    %492 = arith.addf %491, %485 : vector<8x128xf32>
    %cst_178 = arith.constant 1.000000e+00 : f32
    %493 = vector.broadcast %cst_178 : f32 to vector<8x128xf32>
    %494 = arith.mulf %489, %493 : vector<8x128xf32>
    %495 = arith.subf %492, %494 : vector<8x128xf32>
    %cst_179 = arith.constant 1.000000e+00 : f32
    %496 = vector.broadcast %cst_179 : f32 to vector<8x128xf32>
    %497 = arith.cmpf ogt, %495, %496 : vector<8x128xf32>
    %498 = arith.extui %497 : vector<8x128xi1> to vector<8x128xi32>
    %499 = arith.sitofp %498 : vector<8x128xi32> to vector<8x128xf32>
    %c48_180 = arith.constant 48 : index
    %c0_181 = arith.constant 0 : index
    %500 = vector.load %arg11[%c48_180, %c0_181] : memref<200x128xf32, #tpu.memory_space<vmem>>, vector<8x128xf32>
    tpu.vector_store %arg11[%c48_180, %c0_181], %499 {strides = array<i32>} : memref<200x128xf32, #tpu.memory_space<vmem>>, vector<8x128xf32>,
    %501 = vector.extract_strided_slice %387 {offsets = [56, 0], sizes = [8, 128], strides = [1, 1]} : vector<200x128xf32> to vector<8x128xf32>
    %cst_182 = arith.constant 1.000000e+00 : f32
    %502 = vector.broadcast %cst_182 : f32 to vector<8x128xf32>
    %503 = arith.cmpf ogt, %495, %502 : vector<8x128xf32>
    %504 = arith.extui %503 : vector<8x128xi1> to vector<8x128xi32>
    %505 = arith.sitofp %504 : vector<8x128xi32> to vector<8x128xf32>
    %cst_183 = arith.constant 0.899999976 : f32
    %506 = vector.broadcast %cst_183 : f32 to vector<8x128xf32>
    %507 = arith.mulf %506, %495 : vector<8x128xf32>
    %508 = arith.addf %507, %501 : vector<8x128xf32>
    %cst_184 = arith.constant 1.000000e+00 : f32
    %509 = vector.broadcast %cst_184 : f32 to vector<8x128xf32>
    %510 = arith.mulf %505, %509 : vector<8x128xf32>
    %511 = arith.subf %508, %510 : vector<8x128xf32>
    %cst_185 = arith.constant 1.000000e+00 : f32
    %512 = vector.broadcast %cst_185 : f32 to vector<8x128xf32>
    %513 = arith.cmpf ogt, %511, %512 : vector<8x128xf32>
    %514 = arith.extui %513 : vector<8x128xi1> to vector<8x128xi32>
    %515 = arith.sitofp %514 : vector<8x128xi32> to vector<8x128xf32>
    %c56_186 = arith.constant 56 : index
    %c0_187 = arith.constant 0 : index
    %516 = vector.load %arg11[%c56_186, %c0_187] : memref<200x128xf32, #tpu.memory_space<vmem>>, vector<8x128xf32>
    tpu.vector_store %arg11[%c56_186, %c0_187], %515 {strides = array<i32>} : memref<200x128xf32, #tpu.memory_space<vmem>>, vector<8x128xf32>,
    %517 = vector.extract_strided_slice %387 {offsets = [64, 0], sizes = [8, 128], strides = [1, 1]} : vector<200x128xf32> to vector<8x128xf32>
    %cst_188 = arith.constant 1.000000e+00 : f32
    %518 = vector.broadcast %cst_188 : f32 to vector<8x128xf32>
    %519 = arith.cmpf ogt, %511, %518 : vector<8x128xf32>
    %520 = arith.extui %519 : vector<8x128xi1> to vector<8x128xi32>
    %521 = arith.sitofp %520 : vector<8x128xi32> to vector<8x128xf32>
    %cst_189 = arith.constant 0.899999976 : f32
    %522 = vector.broadcast %cst_189 : f32 to vector<8x128xf32>
    %523 = arith.mulf %522, %511 : vector<8x128xf32>
    %524 = arith.addf %523, %517 : vector<8x128xf32>
    %cst_190 = arith.constant 1.000000e+00 : f32
    %525 = vector.broadcast %cst_190 : f32 to vector<8x128xf32>
    %526 = arith.mulf %521, %525 : vector<8x128xf32>
    %527 = arith.subf %524, %526 : vector<8x128xf32>
    %cst_191 = arith.constant 1.000000e+00 : f32
    %528 = vector.broadcast %cst_191 : f32 to vector<8x128xf32>
    %529 = arith.cmpf ogt, %527, %528 : vector<8x128xf32>
    %530 = arith.extui %529 : vector<8x128xi1> to vector<8x128xi32>
    %531 = arith.sitofp %530 : vector<8x128xi32> to vector<8x128xf32>
    %c64_192 = arith.constant 64 : index
    %c0_193 = arith.constant 0 : index
    %532 = vector.load %arg11[%c64_192, %c0_193] : memref<200x128xf32, #tpu.memory_space<vmem>>, vector<8x128xf32>
    tpu.vector_store %arg11[%c64_192, %c0_193], %531 {strides = array<i32>} : memref<200x128xf32, #tpu.memory_space<vmem>>, vector<8x128xf32>,
    %533 = vector.extract_strided_slice %387 {offsets = [72, 0], sizes = [8, 128], strides = [1, 1]} : vector<200x128xf32> to vector<8x128xf32>
    %cst_194 = arith.constant 1.000000e+00 : f32
    %534 = vector.broadcast %cst_194 : f32 to vector<8x128xf32>
    %535 = arith.cmpf ogt, %527, %534 : vector<8x128xf32>
    %536 = arith.extui %535 : vector<8x128xi1> to vector<8x128xi32>
    %537 = arith.sitofp %536 : vector<8x128xi32> to vector<8x128xf32>
    %cst_195 = arith.constant 0.899999976 : f32
    %538 = vector.broadcast %cst_195 : f32 to vector<8x128xf32>
    %539 = arith.mulf %538, %527 : vector<8x128xf32>
    %540 = arith.addf %539, %533 : vector<8x128xf32>
    %cst_196 = arith.constant 1.000000e+00 : f32
    %541 = vector.broadcast %cst_196 : f32 to vector<8x128xf32>
    %542 = arith.mulf %537, %541 : vector<8x128xf32>
    %543 = arith.subf %540, %542 : vector<8x128xf32>
    %cst_197 = arith.constant 1.000000e+00 : f32
    %544 = vector.broadcast %cst_197 : f32 to vector<8x128xf32>
    %545 = arith.cmpf ogt, %543, %544 : vector<8x128xf32>
    %546 = arith.extui %545 : vector<8x128xi1> to vector<8x128xi32>
    %547 = arith.sitofp %546 : vector<8x128xi32> to vector<8x128xf32>
    %c72_198 = arith.constant 72 : index
    %c0_199 = arith.constant 0 : index
    %548 = vector.load %arg11[%c72_198, %c0_199] : memref<200x128xf32, #tpu.memory_space<vmem>>, vector<8x128xf32>
    tpu.vector_store %arg11[%c72_198, %c0_199], %547 {strides = array<i32>} : memref<200x128xf32, #tpu.memory_space<vmem>>, vector<8x128xf32>,
    %549 = vector.extract_strided_slice %387 {offsets = [80, 0], sizes = [8, 128], strides = [1, 1]} : vector<200x128xf32> to vector<8x128xf32>
    %cst_200 = arith.constant 1.000000e+00 : f32
    %550 = vector.broadcast %cst_200 : f32 to vector<8x128xf32>
    %551 = arith.cmpf ogt, %543, %550 : vector<8x128xf32>
    %552 = arith.extui %551 : vector<8x128xi1> to vector<8x128xi32>
    %553 = arith.sitofp %552 : vector<8x128xi32> to vector<8x128xf32>
    %cst_201 = arith.constant 0.899999976 : f32
    %554 = vector.broadcast %cst_201 : f32 to vector<8x128xf32>
    %555 = arith.mulf %554, %543 : vector<8x128xf32>
    %556 = arith.addf %555, %549 : vector<8x128xf32>
    %cst_202 = arith.constant 1.000000e+00 : f32
    %557 = vector.broadcast %cst_202 : f32 to vector<8x128xf32>
    %558 = arith.mulf %553, %557 : vector<8x128xf32>
    %559 = arith.subf %556, %558 : vector<8x128xf32>
    %cst_203 = arith.constant 1.000000e+00 : f32
    %560 = vector.broadcast %cst_203 : f32 to vector<8x128xf32>
    %561 = arith.cmpf ogt, %559, %560 : vector<8x128xf32>
    %562 = arith.extui %561 : vector<8x128xi1> to vector<8x128xi32>
    %563 = arith.sitofp %562 : vector<8x128xi32> to vector<8x128xf32>
    %c80_204 = arith.constant 80 : index
    %c0_205 = arith.constant 0 : index
    %564 = vector.load %arg11[%c80_204, %c0_205] : memref<200x128xf32, #tpu.memory_space<vmem>>, vector<8x128xf32>
    tpu.vector_store %arg11[%c80_204, %c0_205], %563 {strides = array<i32>} : memref<200x128xf32, #tpu.memory_space<vmem>>, vector<8x128xf32>,
    %565 = vector.extract_strided_slice %387 {offsets = [88, 0], sizes = [8, 128], strides = [1, 1]} : vector<200x128xf32> to vector<8x128xf32>
    %cst_206 = arith.constant 1.000000e+00 : f32
    %566 = vector.broadcast %cst_206 : f32 to vector<8x128xf32>
    %567 = arith.cmpf ogt, %559, %566 : vector<8x128xf32>
    %568 = arith.extui %567 : vector<8x128xi1> to vector<8x128xi32>
    %569 = arith.sitofp %568 : vector<8x128xi32> to vector<8x128xf32>
    %cst_207 = arith.constant 0.899999976 : f32
    %570 = vector.broadcast %cst_207 : f32 to vector<8x128xf32>
    %571 = arith.mulf %570, %559 : vector<8x128xf32>
    %572 = arith.addf %571, %565 : vector<8x128xf32>
    %cst_208 = arith.constant 1.000000e+00 : f32
    %573 = vector.broadcast %cst_208 : f32 to vector<8x128xf32>
    %574 = arith.mulf %569, %573 : vector<8x128xf32>
    %575 = arith.subf %572, %574 : vector<8x128xf32>
    %cst_209 = arith.constant 1.000000e+00 : f32
    %576 = vector.broadcast %cst_209 : f32 to vector<8x128xf32>
    %577 = arith.cmpf ogt, %575, %576 : vector<8x128xf32>
    %578 = arith.extui %577 : vector<8x128xi1> to vector<8x128xi32>
    %579 = arith.sitofp %578 : vector<8x128xi32> to vector<8x128xf32>
    %c88_210 = arith.constant 88 : index
    %c0_211 = arith.constant 0 : index
    %580 = vector.load %arg11[%c88_210, %c0_211] : memref<200x128xf32, #tpu.memory_space<vmem>>, vector<8x128xf32>
    tpu.vector_store %arg11[%c88_210, %c0_211], %579 {strides = array<i32>} : memref<200x128xf32, #tpu.memory_space<vmem>>, vector<8x128xf32>,
    %581 = vector.extract_strided_slice %387 {offsets = [96, 0], sizes = [8, 128], strides = [1, 1]} : vector<200x128xf32> to vector<8x128xf32>
    %cst_212 = arith.constant 1.000000e+00 : f32
    %582 = vector.broadcast %cst_212 : f32 to vector<8x128xf32>
    %583 = arith.cmpf ogt, %575, %582 : vector<8x128xf32>
    %584 = arith.extui %583 : vector<8x128xi1> to vector<8x128xi32>
    %585 = arith.sitofp %584 : vector<8x128xi32> to vector<8x128xf32>
    %cst_213 = arith.constant 0.899999976 : f32
    %586 = vector.broadcast %cst_213 : f32 to vector<8x128xf32>
    %587 = arith.mulf %586, %575 : vector<8x128xf32>
    %588 = arith.addf %587, %581 : vector<8x128xf32>
    %cst_214 = arith.constant 1.000000e+00 : f32
    %589 = vector.broadcast %cst_214 : f32 to vector<8x128xf32>
    %590 = arith.mulf %585, %589 : vector<8x128xf32>
    %591 = arith.subf %588, %590 : vector<8x128xf32>
    %cst_215 = arith.constant 1.000000e+00 : f32
    %592 = vector.broadcast %cst_215 : f32 to vector<8x128xf32>
    %593 = arith.cmpf ogt, %591, %592 : vector<8x128xf32>
    %594 = arith.extui %593 : vector<8x128xi1> to vector<8x128xi32>
    %595 = arith.sitofp %594 : vector<8x128xi32> to vector<8x128xf32>
    %c96_216 = arith.constant 96 : index
    %c0_217 = arith.constant 0 : index
    %596 = vector.load %arg11[%c96_216, %c0_217] : memref<200x128xf32, #tpu.memory_space<vmem>>, vector<8x128xf32>
    tpu.vector_store %arg11[%c96_216, %c0_217], %595 {strides = array<i32>} : memref<200x128xf32, #tpu.memory_space<vmem>>, vector<8x128xf32>,
    %597 = vector.extract_strided_slice %387 {offsets = [104, 0], sizes = [8, 128], strides = [1, 1]} : vector<200x128xf32> to vector<8x128xf32>
    %cst_218 = arith.constant 1.000000e+00 : f32
    %598 = vector.broadcast %cst_218 : f32 to vector<8x128xf32>
    %599 = arith.cmpf ogt, %591, %598 : vector<8x128xf32>
    %600 = arith.extui %599 : vector<8x128xi1> to vector<8x128xi32>
    %601 = arith.sitofp %600 : vector<8x128xi32> to vector<8x128xf32>
    %cst_219 = arith.constant 0.899999976 : f32
    %602 = vector.broadcast %cst_219 : f32 to vector<8x128xf32>
    %603 = arith.mulf %602, %591 : vector<8x128xf32>
    %604 = arith.addf %603, %597 : vector<8x128xf32>
    %cst_220 = arith.constant 1.000000e+00 : f32
    %605 = vector.broadcast %cst_220 : f32 to vector<8x128xf32>
    %606 = arith.mulf %601, %605 : vector<8x128xf32>
    %607 = arith.subf %604, %606 : vector<8x128xf32>
    %cst_221 = arith.constant 1.000000e+00 : f32
    %608 = vector.broadcast %cst_221 : f32 to vector<8x128xf32>
    %609 = arith.cmpf ogt, %607, %608 : vector<8x128xf32>
    %610 = arith.extui %609 : vector<8x128xi1> to vector<8x128xi32>
    %611 = arith.sitofp %610 : vector<8x128xi32> to vector<8x128xf32>
    %c104_222 = arith.constant 104 : index
    %c0_223 = arith.constant 0 : index
    %612 = vector.load %arg11[%c104_222, %c0_223] : memref<200x128xf32, #tpu.memory_space<vmem>>, vector<8x128xf32>
    tpu.vector_store %arg11[%c104_222, %c0_223], %611 {strides = array<i32>} : memref<200x128xf32, #tpu.memory_space<vmem>>, vector<8x128xf32>,
    %613 = vector.extract_strided_slice %387 {offsets = [112, 0], sizes = [8, 128], strides = [1, 1]} : vector<200x128xf32> to vector<8x128xf32>
    %cst_224 = arith.constant 1.000000e+00 : f32
    %614 = vector.broadcast %cst_224 : f32 to vector<8x128xf32>
    %615 = arith.cmpf ogt, %607, %614 : vector<8x128xf32>
    %616 = arith.extui %615 : vector<8x128xi1> to vector<8x128xi32>
    %617 = arith.sitofp %616 : vector<8x128xi32> to vector<8x128xf32>
    %cst_225 = arith.constant 0.899999976 : f32
    %618 = vector.broadcast %cst_225 : f32 to vector<8x128xf32>
    %619 = arith.mulf %618, %607 : vector<8x128xf32>
    %620 = arith.addf %619, %613 : vector<8x128xf32>
    %cst_226 = arith.constant 1.000000e+00 : f32
    %621 = vector.broadcast %cst_226 : f32 to vector<8x128xf32>
    %622 = arith.mulf %617, %621 : vector<8x128xf32>
    %623 = arith.subf %620, %622 : vector<8x128xf32>
    %cst_227 = arith.constant 1.000000e+00 : f32
    %624 = vector.broadcast %cst_227 : f32 to vector<8x128xf32>
    %625 = arith.cmpf ogt, %623, %624 : vector<8x128xf32>
    %626 = arith.extui %625 : vector<8x128xi1> to vector<8x128xi32>
    %627 = arith.sitofp %626 : vector<8x128xi32> to vector<8x128xf32>
    %c112_228 = arith.constant 112 : index
    %c0_229 = arith.constant 0 : index
    %628 = vector.load %arg11[%c112_228, %c0_229] : memref<200x128xf32, #tpu.memory_space<vmem>>, vector<8x128xf32>
    tpu.vector_store %arg11[%c112_228, %c0_229], %627 {strides = array<i32>} : memref<200x128xf32, #tpu.memory_space<vmem>>, vector<8x128xf32>,
    %629 = vector.extract_strided_slice %387 {offsets = [120, 0], sizes = [8, 128], strides = [1, 1]} : vector<200x128xf32> to vector<8x128xf32>
    %cst_230 = arith.constant 1.000000e+00 : f32
    %630 = vector.broadcast %cst_230 : f32 to vector<8x128xf32>
    %631 = arith.cmpf ogt, %623, %630 : vector<8x128xf32>
    %632 = arith.extui %631 : vector<8x128xi1> to vector<8x128xi32>
    %633 = arith.sitofp %632 : vector<8x128xi32> to vector<8x128xf32>
    %cst_231 = arith.constant 0.899999976 : f32
    %634 = vector.broadcast %cst_231 : f32 to vector<8x128xf32>
    %635 = arith.mulf %634, %623 : vector<8x128xf32>
    %636 = arith.addf %635, %629 : vector<8x128xf32>
    %cst_232 = arith.constant 1.000000e+00 : f32
    %637 = vector.broadcast %cst_232 : f32 to vector<8x128xf32>
    %638 = arith.mulf %633, %637 : vector<8x128xf32>
    %639 = arith.subf %636, %638 : vector<8x128xf32>
    %cst_233 = arith.constant 1.000000e+00 : f32
    %640 = vector.broadcast %cst_233 : f32 to vector<8x128xf32>
    %641 = arith.cmpf ogt, %639, %640 : vector<8x128xf32>
    %642 = arith.extui %641 : vector<8x128xi1> to vector<8x128xi32>
    %643 = arith.sitofp %642 : vector<8x128xi32> to vector<8x128xf32>
    %c120_234 = arith.constant 120 : index
    %c0_235 = arith.constant 0 : index
    %644 = vector.load %arg11[%c120_234, %c0_235] : memref<200x128xf32, #tpu.memory_space<vmem>>, vector<8x128xf32>
    tpu.vector_store %arg11[%c120_234, %c0_235], %643 {strides = array<i32>} : memref<200x128xf32, #tpu.memory_space<vmem>>, vector<8x128xf32>,
    %645 = vector.extract_strided_slice %387 {offsets = [128, 0], sizes = [8, 128], strides = [1, 1]} : vector<200x128xf32> to vector<8x128xf32>
    %cst_236 = arith.constant 1.000000e+00 : f32
    %646 = vector.broadcast %cst_236 : f32 to vector<8x128xf32>
    %647 = arith.cmpf ogt, %639, %646 : vector<8x128xf32>
    %648 = arith.extui %647 : vector<8x128xi1> to vector<8x128xi32>
    %649 = arith.sitofp %648 : vector<8x128xi32> to vector<8x128xf32>
    %cst_237 = arith.constant 0.899999976 : f32
    %650 = vector.broadcast %cst_237 : f32 to vector<8x128xf32>
    %651 = arith.mulf %650, %639 : vector<8x128xf32>
    %652 = arith.addf %651, %645 : vector<8x128xf32>
    %cst_238 = arith.constant 1.000000e+00 : f32
    %653 = vector.broadcast %cst_238 : f32 to vector<8x128xf32>
    %654 = arith.mulf %649, %653 : vector<8x128xf32>
    %655 = arith.subf %652, %654 : vector<8x128xf32>
    %cst_239 = arith.constant 1.000000e+00 : f32
    %656 = vector.broadcast %cst_239 : f32 to vector<8x128xf32>
    %657 = arith.cmpf ogt, %655, %656 : vector<8x128xf32>
    %658 = arith.extui %657 : vector<8x128xi1> to vector<8x128xi32>
    %659 = arith.sitofp %658 : vector<8x128xi32> to vector<8x128xf32>
    %c128_240 = arith.constant 128 : index
    %c0_241 = arith.constant 0 : index
    %660 = vector.load %arg11[%c128_240, %c0_241] : memref<200x128xf32, #tpu.memory_space<vmem>>, vector<8x128xf32>
    tpu.vector_store %arg11[%c128_240, %c0_241], %659 {strides = array<i32>} : memref<200x128xf32, #tpu.memory_space<vmem>>, vector<8x128xf32>,
    %661 = vector.extract_strided_slice %387 {offsets = [136, 0], sizes = [8, 128], strides = [1, 1]} : vector<200x128xf32> to vector<8x128xf32>
    %cst_242 = arith.constant 1.000000e+00 : f32
    %662 = vector.broadcast %cst_242 : f32 to vector<8x128xf32>
    %663 = arith.cmpf ogt, %655, %662 : vector<8x128xf32>
    %664 = arith.extui %663 : vector<8x128xi1> to vector<8x128xi32>
    %665 = arith.sitofp %664 : vector<8x128xi32> to vector<8x128xf32>
    %cst_243 = arith.constant 0.899999976 : f32
    %666 = vector.broadcast %cst_243 : f32 to vector<8x128xf32>
    %667 = arith.mulf %666, %655 : vector<8x128xf32>
    %668 = arith.addf %667, %661 : vector<8x128xf32>
    %cst_244 = arith.constant 1.000000e+00 : f32
    %669 = vector.broadcast %cst_244 : f32 to vector<8x128xf32>
    %670 = arith.mulf %665, %669 : vector<8x128xf32>
    %671 = arith.subf %668, %670 : vector<8x128xf32>
    %cst_245 = arith.constant 1.000000e+00 : f32
    %672 = vector.broadcast %cst_245 : f32 to vector<8x128xf32>
    %673 = arith.cmpf ogt, %671, %672 : vector<8x128xf32>
    %674 = arith.extui %673 : vector<8x128xi1> to vector<8x128xi32>
    %675 = arith.sitofp %674 : vector<8x128xi32> to vector<8x128xf32>
    %c136_246 = arith.constant 136 : index
    %c0_247 = arith.constant 0 : index
    %676 = vector.load %arg11[%c136_246, %c0_247] : memref<200x128xf32, #tpu.memory_space<vmem>>, vector<8x128xf32>
    tpu.vector_store %arg11[%c136_246, %c0_247], %675 {strides = array<i32>} : memref<200x128xf32, #tpu.memory_space<vmem>>, vector<8x128xf32>,
    %677 = vector.extract_strided_slice %387 {offsets = [144, 0], sizes = [8, 128], strides = [1, 1]} : vector<200x128xf32> to vector<8x128xf32>
    %cst_248 = arith.constant 1.000000e+00 : f32
    %678 = vector.broadcast %cst_248 : f32 to vector<8x128xf32>
    %679 = arith.cmpf ogt, %671, %678 : vector<8x128xf32>
    %680 = arith.extui %679 : vector<8x128xi1> to vector<8x128xi32>
    %681 = arith.sitofp %680 : vector<8x128xi32> to vector<8x128xf32>
    %cst_249 = arith.constant 0.899999976 : f32
    %682 = vector.broadcast %cst_249 : f32 to vector<8x128xf32>
    %683 = arith.mulf %682, %671 : vector<8x128xf32>
    %684 = arith.addf %683, %677 : vector<8x128xf32>
    %cst_250 = arith.constant 1.000000e+00 : f32
    %685 = vector.broadcast %cst_250 : f32 to vector<8x128xf32>
    %686 = arith.mulf %681, %685 : vector<8x128xf32>
    %687 = arith.subf %684, %686 : vector<8x128xf32>
    %cst_251 = arith.constant 1.000000e+00 : f32
    %688 = vector.broadcast %cst_251 : f32 to vector<8x128xf32>
    %689 = arith.cmpf ogt, %687, %688 : vector<8x128xf32>
    %690 = arith.extui %689 : vector<8x128xi1> to vector<8x128xi32>
    %691 = arith.sitofp %690 : vector<8x128xi32> to vector<8x128xf32>
    %c144_252 = arith.constant 144 : index
    %c0_253 = arith.constant 0 : index
    %692 = vector.load %arg11[%c144_252, %c0_253] : memref<200x128xf32, #tpu.memory_space<vmem>>, vector<8x128xf32>
    tpu.vector_store %arg11[%c144_252, %c0_253], %691 {strides = array<i32>} : memref<200x128xf32, #tpu.memory_space<vmem>>, vector<8x128xf32>,
    %693 = vector.extract_strided_slice %387 {offsets = [152, 0], sizes = [8, 128], strides = [1, 1]} : vector<200x128xf32> to vector<8x128xf32>
    %cst_254 = arith.constant 1.000000e+00 : f32
    %694 = vector.broadcast %cst_254 : f32 to vector<8x128xf32>
    %695 = arith.cmpf ogt, %687, %694 : vector<8x128xf32>
    %696 = arith.extui %695 : vector<8x128xi1> to vector<8x128xi32>
    %697 = arith.sitofp %696 : vector<8x128xi32> to vector<8x128xf32>
    %cst_255 = arith.constant 0.899999976 : f32
    %698 = vector.broadcast %cst_255 : f32 to vector<8x128xf32>
    %699 = arith.mulf %698, %687 : vector<8x128xf32>
    %700 = arith.addf %699, %693 : vector<8x128xf32>
    %cst_256 = arith.constant 1.000000e+00 : f32
    %701 = vector.broadcast %cst_256 : f32 to vector<8x128xf32>
    %702 = arith.mulf %697, %701 : vector<8x128xf32>
    %703 = arith.subf %700, %702 : vector<8x128xf32>
    %cst_257 = arith.constant 1.000000e+00 : f32
    %704 = vector.broadcast %cst_257 : f32 to vector<8x128xf32>
    %705 = arith.cmpf ogt, %703, %704 : vector<8x128xf32>
    %706 = arith.extui %705 : vector<8x128xi1> to vector<8x128xi32>
    %707 = arith.sitofp %706 : vector<8x128xi32> to vector<8x128xf32>
    %c152_258 = arith.constant 152 : index
    %c0_259 = arith.constant 0 : index
    %708 = vector.load %arg11[%c152_258, %c0_259] : memref<200x128xf32, #tpu.memory_space<vmem>>, vector<8x128xf32>
    tpu.vector_store %arg11[%c152_258, %c0_259], %707 {strides = array<i32>} : memref<200x128xf32, #tpu.memory_space<vmem>>, vector<8x128xf32>,
    %709 = vector.extract_strided_slice %387 {offsets = [160, 0], sizes = [8, 128], strides = [1, 1]} : vector<200x128xf32> to vector<8x128xf32>
    %cst_260 = arith.constant 1.000000e+00 : f32
    %710 = vector.broadcast %cst_260 : f32 to vector<8x128xf32>
    %711 = arith.cmpf ogt, %703, %710 : vector<8x128xf32>
    %712 = arith.extui %711 : vector<8x128xi1> to vector<8x128xi32>
    %713 = arith.sitofp %712 : vector<8x128xi32> to vector<8x128xf32>
    %cst_261 = arith.constant 0.899999976 : f32
    %714 = vector.broadcast %cst_261 : f32 to vector<8x128xf32>
    %715 = arith.mulf %714, %703 : vector<8x128xf32>
    %716 = arith.addf %715, %709 : vector<8x128xf32>
    %cst_262 = arith.constant 1.000000e+00 : f32
    %717 = vector.broadcast %cst_262 : f32 to vector<8x128xf32>
    %718 = arith.mulf %713, %717 : vector<8x128xf32>
    %719 = arith.subf %716, %718 : vector<8x128xf32>
    %cst_263 = arith.constant 1.000000e+00 : f32
    %720 = vector.broadcast %cst_263 : f32 to vector<8x128xf32>
    %721 = arith.cmpf ogt, %719, %720 : vector<8x128xf32>
    %722 = arith.extui %721 : vector<8x128xi1> to vector<8x128xi32>
    %723 = arith.sitofp %722 : vector<8x128xi32> to vector<8x128xf32>
    %c160_264 = arith.constant 160 : index
    %c0_265 = arith.constant 0 : index
    %724 = vector.load %arg11[%c160_264, %c0_265] : memref<200x128xf32, #tpu.memory_space<vmem>>, vector<8x128xf32>
    tpu.vector_store %arg11[%c160_264, %c0_265], %723 {strides = array<i32>} : memref<200x128xf32, #tpu.memory_space<vmem>>, vector<8x128xf32>,
    %725 = vector.extract_strided_slice %387 {offsets = [168, 0], sizes = [8, 128], strides = [1, 1]} : vector<200x128xf32> to vector<8x128xf32>
    %cst_266 = arith.constant 1.000000e+00 : f32
    %726 = vector.broadcast %cst_266 : f32 to vector<8x128xf32>
    %727 = arith.cmpf ogt, %719, %726 : vector<8x128xf32>
    %728 = arith.extui %727 : vector<8x128xi1> to vector<8x128xi32>
    %729 = arith.sitofp %728 : vector<8x128xi32> to vector<8x128xf32>
    %cst_267 = arith.constant 0.899999976 : f32
    %730 = vector.broadcast %cst_267 : f32 to vector<8x128xf32>
    %731 = arith.mulf %730, %719 : vector<8x128xf32>
    %732 = arith.addf %731, %725 : vector<8x128xf32>
    %cst_268 = arith.constant 1.000000e+00 : f32
    %733 = vector.broadcast %cst_268 : f32 to vector<8x128xf32>
    %734 = arith.mulf %729, %733 : vector<8x128xf32>
    %735 = arith.subf %732, %734 : vector<8x128xf32>
    %cst_269 = arith.constant 1.000000e+00 : f32
    %736 = vector.broadcast %cst_269 : f32 to vector<8x128xf32>
    %737 = arith.cmpf ogt, %735, %736 : vector<8x128xf32>
    %738 = arith.extui %737 : vector<8x128xi1> to vector<8x128xi32>
    %739 = arith.sitofp %738 : vector<8x128xi32> to vector<8x128xf32>
    %c168_270 = arith.constant 168 : index
    %c0_271 = arith.constant 0 : index
    %740 = vector.load %arg11[%c168_270, %c0_271] : memref<200x128xf32, #tpu.memory_space<vmem>>, vector<8x128xf32>
    tpu.vector_store %arg11[%c168_270, %c0_271], %739 {strides = array<i32>} : memref<200x128xf32, #tpu.memory_space<vmem>>, vector<8x128xf32>,
    %741 = vector.extract_strided_slice %387 {offsets = [176, 0], sizes = [8, 128], strides = [1, 1]} : vector<200x128xf32> to vector<8x128xf32>
    %cst_272 = arith.constant 1.000000e+00 : f32
    %742 = vector.broadcast %cst_272 : f32 to vector<8x128xf32>
    %743 = arith.cmpf ogt, %735, %742 : vector<8x128xf32>
    %744 = arith.extui %743 : vector<8x128xi1> to vector<8x128xi32>
    %745 = arith.sitofp %744 : vector<8x128xi32> to vector<8x128xf32>
    %cst_273 = arith.constant 0.899999976 : f32
    %746 = vector.broadcast %cst_273 : f32 to vector<8x128xf32>
    %747 = arith.mulf %746, %735 : vector<8x128xf32>
    %748 = arith.addf %747, %741 : vector<8x128xf32>
    %cst_274 = arith.constant 1.000000e+00 : f32
    %749 = vector.broadcast %cst_274 : f32 to vector<8x128xf32>
    %750 = arith.mulf %745, %749 : vector<8x128xf32>
    %751 = arith.subf %748, %750 : vector<8x128xf32>
    %cst_275 = arith.constant 1.000000e+00 : f32
    %752 = vector.broadcast %cst_275 : f32 to vector<8x128xf32>
    %753 = arith.cmpf ogt, %751, %752 : vector<8x128xf32>
    %754 = arith.extui %753 : vector<8x128xi1> to vector<8x128xi32>
    %755 = arith.sitofp %754 : vector<8x128xi32> to vector<8x128xf32>
    %c176_276 = arith.constant 176 : index
    %c0_277 = arith.constant 0 : index
    %756 = vector.load %arg11[%c176_276, %c0_277] : memref<200x128xf32, #tpu.memory_space<vmem>>, vector<8x128xf32>
    tpu.vector_store %arg11[%c176_276, %c0_277], %755 {strides = array<i32>} : memref<200x128xf32, #tpu.memory_space<vmem>>, vector<8x128xf32>,
    %757 = vector.extract_strided_slice %387 {offsets = [184, 0], sizes = [8, 128], strides = [1, 1]} : vector<200x128xf32> to vector<8x128xf32>
    %cst_278 = arith.constant 1.000000e+00 : f32
    %758 = vector.broadcast %cst_278 : f32 to vector<8x128xf32>
    %759 = arith.cmpf ogt, %751, %758 : vector<8x128xf32>
    %760 = arith.extui %759 : vector<8x128xi1> to vector<8x128xi32>
    %761 = arith.sitofp %760 : vector<8x128xi32> to vector<8x128xf32>
    %cst_279 = arith.constant 0.899999976 : f32
    %762 = vector.broadcast %cst_279 : f32 to vector<8x128xf32>
    %763 = arith.mulf %762, %751 : vector<8x128xf32>
    %764 = arith.addf %763, %757 : vector<8x128xf32>
    %cst_280 = arith.constant 1.000000e+00 : f32
    %765 = vector.broadcast %cst_280 : f32 to vector<8x128xf32>
    %766 = arith.mulf %761, %765 : vector<8x128xf32>
    %767 = arith.subf %764, %766 : vector<8x128xf32>
    %cst_281 = arith.constant 1.000000e+00 : f32
    %768 = vector.broadcast %cst_281 : f32 to vector<8x128xf32>
    %769 = arith.cmpf ogt, %767, %768 : vector<8x128xf32>
    %770 = arith.extui %769 : vector<8x128xi1> to vector<8x128xi32>
    %771 = arith.sitofp %770 : vector<8x128xi32> to vector<8x128xf32>
    %c184_282 = arith.constant 184 : index
    %c0_283 = arith.constant 0 : index
    %772 = vector.load %arg11[%c184_282, %c0_283] : memref<200x128xf32, #tpu.memory_space<vmem>>, vector<8x128xf32>
    tpu.vector_store %arg11[%c184_282, %c0_283], %771 {strides = array<i32>} : memref<200x128xf32, #tpu.memory_space<vmem>>, vector<8x128xf32>,
    %773 = vector.extract_strided_slice %387 {offsets = [192, 0], sizes = [8, 128], strides = [1, 1]} : vector<200x128xf32> to vector<8x128xf32>
    %cst_284 = arith.constant 1.000000e+00 : f32
    %774 = vector.broadcast %cst_284 : f32 to vector<8x128xf32>
    %775 = arith.cmpf ogt, %767, %774 : vector<8x128xf32>
    %776 = arith.extui %775 : vector<8x128xi1> to vector<8x128xi32>
    %777 = arith.sitofp %776 : vector<8x128xi32> to vector<8x128xf32>
    %cst_285 = arith.constant 0.899999976 : f32
    %778 = vector.broadcast %cst_285 : f32 to vector<8x128xf32>
    %779 = arith.mulf %778, %767 : vector<8x128xf32>
    %780 = arith.addf %779, %773 : vector<8x128xf32>
    %cst_286 = arith.constant 1.000000e+00 : f32
    %781 = vector.broadcast %cst_286 : f32 to vector<8x128xf32>
    %782 = arith.mulf %777, %781 : vector<8x128xf32>
    %783 = arith.subf %780, %782 : vector<8x128xf32>
    %cst_287 = arith.constant 1.000000e+00 : f32
    %784 = vector.broadcast %cst_287 : f32 to vector<8x128xf32>
    %785 = arith.cmpf ogt, %783, %784 : vector<8x128xf32>
    %786 = arith.extui %785 : vector<8x128xi1> to vector<8x128xi32>
    %787 = arith.sitofp %786 : vector<8x128xi32> to vector<8x128xf32>
    %c192_288 = arith.constant 192 : index
    %c0_289 = arith.constant 0 : index
    %788 = vector.load %arg11[%c192_288, %c0_289] : memref<200x128xf32, #tpu.memory_space<vmem>>, vector<8x128xf32>
    tpu.vector_store %arg11[%c192_288, %c0_289], %787 {strides = array<i32>} : memref<200x128xf32, #tpu.memory_space<vmem>>, vector<8x128xf32>,
    %c0_290 = arith.constant 0 : index
    %c0_291 = arith.constant 0 : index
    %789 = vector.load %arg11[%c0_290, %c0_291] : memref<200x128xf32, #tpu.memory_space<vmem>>, vector<200x128xf32>
    %c0_292 = arith.constant 0 : index
    %c0_293 = arith.constant 0 : index
    %790 = vector.load %arg6[%c0_292, %c0_293] : memref<128x128xf32, #tpu.memory_space<vmem>>, vector<128x128xf32>
    %cst_294 = arith.constant dense<0.000000e+00> : vector<200x128xf32>
    %791 = tpu.matmul %789, %790, %cst_294 {dimension_numbers = #tpu.dot_dimension_numbers<[1], [0], [0], [1], [0, 0, 1, 1], [], []>} : vector<200x128xf32>, vector<128x128xf32>, vector<200x128xf32> -> vector<200x128xf32>
    %c0_295 = arith.constant 0 : index
    %c0_296 = arith.constant 0 : index
    %792 = vector.load %arg7[%c0_295, %c0_296] : memref<1x128xf32, #tpu.memory_space<vmem>>, vector<1x128xf32>
    %793 = vector.broadcast %792 : vector<1x128xf32> to vector<200x128xf32>
    %794 = arith.addf %791, %793 : vector<200x128xf32>
    %cst_297 = arith.constant 0.000000e+00 : f32
    %795 = vector.broadcast %cst_297 : f32 to vector<8x128xf32>
    %796 = vector.extract_strided_slice %794 {offsets = [0, 0], sizes = [8, 128], strides = [1, 1]} : vector<200x128xf32> to vector<8x128xf32>
    %cst_298 = arith.constant 1.000000e+00 : f32
    %797 = vector.broadcast %cst_298 : f32 to vector<8x128xf32>
    %798 = arith.cmpf ogt, %795, %797 : vector<8x128xf32>
    %799 = arith.extui %798 : vector<8x128xi1> to vector<8x128xi32>
    %800 = arith.sitofp %799 : vector<8x128xi32> to vector<8x128xf32>
    %cst_299 = arith.constant 0.899999976 : f32
    %801 = vector.broadcast %cst_299 : f32 to vector<8x128xf32>
    %802 = arith.mulf %801, %795 : vector<8x128xf32>
    %803 = arith.addf %802, %796 : vector<8x128xf32>
    %cst_300 = arith.constant 1.000000e+00 : f32
    %804 = vector.broadcast %cst_300 : f32 to vector<8x128xf32>
    %805 = arith.mulf %800, %804 : vector<8x128xf32>
    %806 = arith.subf %803, %805 : vector<8x128xf32>
    %cst_301 = arith.constant 1.000000e+00 : f32
    %807 = vector.broadcast %cst_301 : f32 to vector<8x128xf32>
    %808 = arith.cmpf ogt, %806, %807 : vector<8x128xf32>
    %809 = arith.extui %808 : vector<8x128xi1> to vector<8x128xi32>
    %810 = arith.sitofp %809 : vector<8x128xi32> to vector<8x128xf32>
    %c0_302 = arith.constant 0 : index
    %c0_303 = arith.constant 0 : index
    %c0_304 = arith.constant 0 : index
    %811 = vector.load %arg8[%c0_302, %c0_303, %c0_304] : memref<25x8x128xf32, #tpu.memory_space<vmem>>, vector<1x8x128xf32>
    %812 = vector.shape_cast %811 : vector<1x8x128xf32> to vector<8x128xf32>
    %813 = vector.shape_cast %810 : vector<8x128xf32> to vector<1x8x128xf32>
    tpu.vector_store %arg8[%c0_302, %c0_303, %c0_304], %813 {strides = array<i32>} : memref<25x8x128xf32, #tpu.memory_space<vmem>>, vector<1x8x128xf32>,
    %c0_305 = arith.constant 0 : index
    %c0_306 = arith.constant 0 : index
    %c0_307 = arith.constant 0 : index
    %814 = vector.load %arg9[%c0_305, %c0_306, %c0_307] : memref<25x8x128xf32, #tpu.memory_space<vmem>>, vector<1x8x128xf32>
    %815 = vector.shape_cast %814 : vector<1x8x128xf32> to vector<8x128xf32>
    %816 = vector.shape_cast %806 : vector<8x128xf32> to vector<1x8x128xf32>
    tpu.vector_store %arg9[%c0_305, %c0_306, %c0_307], %816 {strides = array<i32>} : memref<25x8x128xf32, #tpu.memory_space<vmem>>, vector<1x8x128xf32>,
    %817 = vector.extract_strided_slice %794 {offsets = [8, 0], sizes = [8, 128], strides = [1, 1]} : vector<200x128xf32> to vector<8x128xf32>
    %cst_308 = arith.constant 1.000000e+00 : f32
    %818 = vector.broadcast %cst_308 : f32 to vector<8x128xf32>
    %819 = arith.cmpf ogt, %806, %818 : vector<8x128xf32>
    %820 = arith.extui %819 : vector<8x128xi1> to vector<8x128xi32>
    %821 = arith.sitofp %820 : vector<8x128xi32> to vector<8x128xf32>
    %cst_309 = arith.constant 0.899999976 : f32
    %822 = vector.broadcast %cst_309 : f32 to vector<8x128xf32>
    %823 = arith.mulf %822, %806 : vector<8x128xf32>
    %824 = arith.addf %823, %817 : vector<8x128xf32>
    %cst_310 = arith.constant 1.000000e+00 : f32
    %825 = vector.broadcast %cst_310 : f32 to vector<8x128xf32>
    %826 = arith.mulf %821, %825 : vector<8x128xf32>
    %827 = arith.subf %824, %826 : vector<8x128xf32>
    %cst_311 = arith.constant 1.000000e+00 : f32
    %828 = vector.broadcast %cst_311 : f32 to vector<8x128xf32>
    %829 = arith.cmpf ogt, %827, %828 : vector<8x128xf32>
    %830 = arith.extui %829 : vector<8x128xi1> to vector<8x128xi32>
    %831 = arith.sitofp %830 : vector<8x128xi32> to vector<8x128xf32>
    %c1 = arith.constant 1 : index
    %c0_312 = arith.constant 0 : index
    %c0_313 = arith.constant 0 : index
    %832 = vector.load %arg8[%c1, %c0_312, %c0_313] : memref<25x8x128xf32, #tpu.memory_space<vmem>>, vector<1x8x128xf32>
    %833 = vector.shape_cast %832 : vector<1x8x128xf32> to vector<8x128xf32>
    %834 = vector.shape_cast %831 : vector<8x128xf32> to vector<1x8x128xf32>
    tpu.vector_store %arg8[%c1, %c0_312, %c0_313], %834 {strides = array<i32>} : memref<25x8x128xf32, #tpu.memory_space<vmem>>, vector<1x8x128xf32>,
    %c1_314 = arith.constant 1 : index
    %c0_315 = arith.constant 0 : index
    %c0_316 = arith.constant 0 : index
    %835 = vector.load %arg9[%c1_314, %c0_315, %c0_316] : memref<25x8x128xf32, #tpu.memory_space<vmem>>, vector<1x8x128xf32>
    %836 = vector.shape_cast %835 : vector<1x8x128xf32> to vector<8x128xf32>
    %837 = vector.shape_cast %827 : vector<8x128xf32> to vector<1x8x128xf32>
    tpu.vector_store %arg9[%c1_314, %c0_315, %c0_316], %837 {strides = array<i32>} : memref<25x8x128xf32, #tpu.memory_space<vmem>>, vector<1x8x128xf32>,
    %838 = vector.extract_strided_slice %794 {offsets = [16, 0], sizes = [8, 128], strides = [1, 1]} : vector<200x128xf32> to vector<8x128xf32>
    %cst_317 = arith.constant 1.000000e+00 : f32
    %839 = vector.broadcast %cst_317 : f32 to vector<8x128xf32>
    %840 = arith.cmpf ogt, %827, %839 : vector<8x128xf32>
    %841 = arith.extui %840 : vector<8x128xi1> to vector<8x128xi32>
    %842 = arith.sitofp %841 : vector<8x128xi32> to vector<8x128xf32>
    %cst_318 = arith.constant 0.899999976 : f32
    %843 = vector.broadcast %cst_318 : f32 to vector<8x128xf32>
    %844 = arith.mulf %843, %827 : vector<8x128xf32>
    %845 = arith.addf %844, %838 : vector<8x128xf32>
    %cst_319 = arith.constant 1.000000e+00 : f32
    %846 = vector.broadcast %cst_319 : f32 to vector<8x128xf32>
    %847 = arith.mulf %842, %846 : vector<8x128xf32>
    %848 = arith.subf %845, %847 : vector<8x128xf32>
    %cst_320 = arith.constant 1.000000e+00 : f32
    %849 = vector.broadcast %cst_320 : f32 to vector<8x128xf32>
    %850 = arith.cmpf ogt, %848, %849 : vector<8x128xf32>
    %851 = arith.extui %850 : vector<8x128xi1> to vector<8x128xi32>
    %852 = arith.sitofp %851 : vector<8x128xi32> to vector<8x128xf32>
    %c2 = arith.constant 2 : index
    %c0_321 = arith.constant 0 : index
    %c0_322 = arith.constant 0 : index
    %853 = vector.load %arg8[%c2, %c0_321, %c0_322] : memref<25x8x128xf32, #tpu.memory_space<vmem>>, vector<1x8x128xf32>
    %854 = vector.shape_cast %853 : vector<1x8x128xf32> to vector<8x128xf32>
    %855 = vector.shape_cast %852 : vector<8x128xf32> to vector<1x8x128xf32>
    tpu.vector_store %arg8[%c2, %c0_321, %c0_322], %855 {strides = array<i32>} : memref<25x8x128xf32, #tpu.memory_space<vmem>>, vector<1x8x128xf32>,
    %c2_323 = arith.constant 2 : index
    %c0_324 = arith.constant 0 : index
    %c0_325 = arith.constant 0 : index
    %856 = vector.load %arg9[%c2_323, %c0_324, %c0_325] : memref<25x8x128xf32, #tpu.memory_space<vmem>>, vector<1x8x128xf32>
    %857 = vector.shape_cast %856 : vector<1x8x128xf32> to vector<8x128xf32>
    %858 = vector.shape_cast %848 : vector<8x128xf32> to vector<1x8x128xf32>
    tpu.vector_store %arg9[%c2_323, %c0_324, %c0_325], %858 {strides = array<i32>} : memref<25x8x128xf32, #tpu.memory_space<vmem>>, vector<1x8x128xf32>,
    %859 = vector.extract_strided_slice %794 {offsets = [24, 0], sizes = [8, 128], strides = [1, 1]} : vector<200x128xf32> to vector<8x128xf32>
    %cst_326 = arith.constant 1.000000e+00 : f32
    %860 = vector.broadcast %cst_326 : f32 to vector<8x128xf32>
    %861 = arith.cmpf ogt, %848, %860 : vector<8x128xf32>
    %862 = arith.extui %861 : vector<8x128xi1> to vector<8x128xi32>
    %863 = arith.sitofp %862 : vector<8x128xi32> to vector<8x128xf32>
    %cst_327 = arith.constant 0.899999976 : f32
    %864 = vector.broadcast %cst_327 : f32 to vector<8x128xf32>
    %865 = arith.mulf %864, %848 : vector<8x128xf32>
    %866 = arith.addf %865, %859 : vector<8x128xf32>
    %cst_328 = arith.constant 1.000000e+00 : f32
    %867 = vector.broadcast %cst_328 : f32 to vector<8x128xf32>
    %868 = arith.mulf %863, %867 : vector<8x128xf32>
    %869 = arith.subf %866, %868 : vector<8x128xf32>
    %cst_329 = arith.constant 1.000000e+00 : f32
    %870 = vector.broadcast %cst_329 : f32 to vector<8x128xf32>
    %871 = arith.cmpf ogt, %869, %870 : vector<8x128xf32>
    %872 = arith.extui %871 : vector<8x128xi1> to vector<8x128xi32>
    %873 = arith.sitofp %872 : vector<8x128xi32> to vector<8x128xf32>
    %c3 = arith.constant 3 : index
    %c0_330 = arith.constant 0 : index
    %c0_331 = arith.constant 0 : index
    %874 = vector.load %arg8[%c3, %c0_330, %c0_331] : memref<25x8x128xf32, #tpu.memory_space<vmem>>, vector<1x8x128xf32>
    %875 = vector.shape_cast %874 : vector<1x8x128xf32> to vector<8x128xf32>
    %876 = vector.shape_cast %873 : vector<8x128xf32> to vector<1x8x128xf32>
    tpu.vector_store %arg8[%c3, %c0_330, %c0_331], %876 {strides = array<i32>} : memref<25x8x128xf32, #tpu.memory_space<vmem>>, vector<1x8x128xf32>,
    %c3_332 = arith.constant 3 : index
    %c0_333 = arith.constant 0 : index
    %c0_334 = arith.constant 0 : index
    %877 = vector.load %arg9[%c3_332, %c0_333, %c0_334] : memref<25x8x128xf32, #tpu.memory_space<vmem>>, vector<1x8x128xf32>
    %878 = vector.shape_cast %877 : vector<1x8x128xf32> to vector<8x128xf32>
    %879 = vector.shape_cast %869 : vector<8x128xf32> to vector<1x8x128xf32>
    tpu.vector_store %arg9[%c3_332, %c0_333, %c0_334], %879 {strides = array<i32>} : memref<25x8x128xf32, #tpu.memory_space<vmem>>, vector<1x8x128xf32>,
    %880 = vector.extract_strided_slice %794 {offsets = [32, 0], sizes = [8, 128], strides = [1, 1]} : vector<200x128xf32> to vector<8x128xf32>
    %cst_335 = arith.constant 1.000000e+00 : f32
    %881 = vector.broadcast %cst_335 : f32 to vector<8x128xf32>
    %882 = arith.cmpf ogt, %869, %881 : vector<8x128xf32>
    %883 = arith.extui %882 : vector<8x128xi1> to vector<8x128xi32>
    %884 = arith.sitofp %883 : vector<8x128xi32> to vector<8x128xf32>
    %cst_336 = arith.constant 0.899999976 : f32
    %885 = vector.broadcast %cst_336 : f32 to vector<8x128xf32>
    %886 = arith.mulf %885, %869 : vector<8x128xf32>
    %887 = arith.addf %886, %880 : vector<8x128xf32>
    %cst_337 = arith.constant 1.000000e+00 : f32
    %888 = vector.broadcast %cst_337 : f32 to vector<8x128xf32>
    %889 = arith.mulf %884, %888 : vector<8x128xf32>
    %890 = arith.subf %887, %889 : vector<8x128xf32>
    %cst_338 = arith.constant 1.000000e+00 : f32
    %891 = vector.broadcast %cst_338 : f32 to vector<8x128xf32>
    %892 = arith.cmpf ogt, %890, %891 : vector<8x128xf32>
    %893 = arith.extui %892 : vector<8x128xi1> to vector<8x128xi32>
    %894 = arith.sitofp %893 : vector<8x128xi32> to vector<8x128xf32>
    %c4 = arith.constant 4 : index
    %c0_339 = arith.constant 0 : index
    %c0_340 = arith.constant 0 : index
    %895 = vector.load %arg8[%c4, %c0_339, %c0_340] : memref<25x8x128xf32, #tpu.memory_space<vmem>>, vector<1x8x128xf32>
    %896 = vector.shape_cast %895 : vector<1x8x128xf32> to vector<8x128xf32>
    %897 = vector.shape_cast %894 : vector<8x128xf32> to vector<1x8x128xf32>
    tpu.vector_store %arg8[%c4, %c0_339, %c0_340], %897 {strides = array<i32>} : memref<25x8x128xf32, #tpu.memory_space<vmem>>, vector<1x8x128xf32>,
    %c4_341 = arith.constant 4 : index
    %c0_342 = arith.constant 0 : index
    %c0_343 = arith.constant 0 : index
    %898 = vector.load %arg9[%c4_341, %c0_342, %c0_343] : memref<25x8x128xf32, #tpu.memory_space<vmem>>, vector<1x8x128xf32>
    %899 = vector.shape_cast %898 : vector<1x8x128xf32> to vector<8x128xf32>
    %900 = vector.shape_cast %890 : vector<8x128xf32> to vector<1x8x128xf32>
    tpu.vector_store %arg9[%c4_341, %c0_342, %c0_343], %900 {strides = array<i32>} : memref<25x8x128xf32, #tpu.memory_space<vmem>>, vector<1x8x128xf32>,
    %901 = vector.extract_strided_slice %794 {offsets = [40, 0], sizes = [8, 128], strides = [1, 1]} : vector<200x128xf32> to vector<8x128xf32>
    %cst_344 = arith.constant 1.000000e+00 : f32
    %902 = vector.broadcast %cst_344 : f32 to vector<8x128xf32>
    %903 = arith.cmpf ogt, %890, %902 : vector<8x128xf32>
    %904 = arith.extui %903 : vector<8x128xi1> to vector<8x128xi32>
    %905 = arith.sitofp %904 : vector<8x128xi32> to vector<8x128xf32>
    %cst_345 = arith.constant 0.899999976 : f32
    %906 = vector.broadcast %cst_345 : f32 to vector<8x128xf32>
    %907 = arith.mulf %906, %890 : vector<8x128xf32>
    %908 = arith.addf %907, %901 : vector<8x128xf32>
    %cst_346 = arith.constant 1.000000e+00 : f32
    %909 = vector.broadcast %cst_346 : f32 to vector<8x128xf32>
    %910 = arith.mulf %905, %909 : vector<8x128xf32>
    %911 = arith.subf %908, %910 : vector<8x128xf32>
    %cst_347 = arith.constant 1.000000e+00 : f32
    %912 = vector.broadcast %cst_347 : f32 to vector<8x128xf32>
    %913 = arith.cmpf ogt, %911, %912 : vector<8x128xf32>
    %914 = arith.extui %913 : vector<8x128xi1> to vector<8x128xi32>
    %915 = arith.sitofp %914 : vector<8x128xi32> to vector<8x128xf32>
    %c5 = arith.constant 5 : index
    %c0_348 = arith.constant 0 : index
    %c0_349 = arith.constant 0 : index
    %916 = vector.load %arg8[%c5, %c0_348, %c0_349] : memref<25x8x128xf32, #tpu.memory_space<vmem>>, vector<1x8x128xf32>
    %917 = vector.shape_cast %916 : vector<1x8x128xf32> to vector<8x128xf32>
    %918 = vector.shape_cast %915 : vector<8x128xf32> to vector<1x8x128xf32>
    tpu.vector_store %arg8[%c5, %c0_348, %c0_349], %918 {strides = array<i32>} : memref<25x8x128xf32, #tpu.memory_space<vmem>>, vector<1x8x128xf32>,
    %c5_350 = arith.constant 5 : index
    %c0_351 = arith.constant 0 : index
    %c0_352 = arith.constant 0 : index
    %919 = vector.load %arg9[%c5_350, %c0_351, %c0_352] : memref<25x8x128xf32, #tpu.memory_space<vmem>>, vector<1x8x128xf32>
    %920 = vector.shape_cast %919 : vector<1x8x128xf32> to vector<8x128xf32>
    %921 = vector.shape_cast %911 : vector<8x128xf32> to vector<1x8x128xf32>
    tpu.vector_store %arg9[%c5_350, %c0_351, %c0_352], %921 {strides = array<i32>} : memref<25x8x128xf32, #tpu.memory_space<vmem>>, vector<1x8x128xf32>,
    %922 = vector.extract_strided_slice %794 {offsets = [48, 0], sizes = [8, 128], strides = [1, 1]} : vector<200x128xf32> to vector<8x128xf32>
    %cst_353 = arith.constant 1.000000e+00 : f32
    %923 = vector.broadcast %cst_353 : f32 to vector<8x128xf32>
    %924 = arith.cmpf ogt, %911, %923 : vector<8x128xf32>
    %925 = arith.extui %924 : vector<8x128xi1> to vector<8x128xi32>
    %926 = arith.sitofp %925 : vector<8x128xi32> to vector<8x128xf32>
    %cst_354 = arith.constant 0.899999976 : f32
    %927 = vector.broadcast %cst_354 : f32 to vector<8x128xf32>
    %928 = arith.mulf %927, %911 : vector<8x128xf32>
    %929 = arith.addf %928, %922 : vector<8x128xf32>
    %cst_355 = arith.constant 1.000000e+00 : f32
    %930 = vector.broadcast %cst_355 : f32 to vector<8x128xf32>
    %931 = arith.mulf %926, %930 : vector<8x128xf32>
    %932 = arith.subf %929, %931 : vector<8x128xf32>
    %cst_356 = arith.constant 1.000000e+00 : f32
    %933 = vector.broadcast %cst_356 : f32 to vector<8x128xf32>
    %934 = arith.cmpf ogt, %932, %933 : vector<8x128xf32>
    %935 = arith.extui %934 : vector<8x128xi1> to vector<8x128xi32>
    %936 = arith.sitofp %935 : vector<8x128xi32> to vector<8x128xf32>
    %c6 = arith.constant 6 : index
    %c0_357 = arith.constant 0 : index
    %c0_358 = arith.constant 0 : index
    %937 = vector.load %arg8[%c6, %c0_357, %c0_358] : memref<25x8x128xf32, #tpu.memory_space<vmem>>, vector<1x8x128xf32>
    %938 = vector.shape_cast %937 : vector<1x8x128xf32> to vector<8x128xf32>
    %939 = vector.shape_cast %936 : vector<8x128xf32> to vector<1x8x128xf32>
    tpu.vector_store %arg8[%c6, %c0_357, %c0_358], %939 {strides = array<i32>} : memref<25x8x128xf32, #tpu.memory_space<vmem>>, vector<1x8x128xf32>,
    %c6_359 = arith.constant 6 : index
    %c0_360 = arith.constant 0 : index
    %c0_361 = arith.constant 0 : index
    %940 = vector.load %arg9[%c6_359, %c0_360, %c0_361] : memref<25x8x128xf32, #tpu.memory_space<vmem>>, vector<1x8x128xf32>
    %941 = vector.shape_cast %940 : vector<1x8x128xf32> to vector<8x128xf32>
    %942 = vector.shape_cast %932 : vector<8x128xf32> to vector<1x8x128xf32>
    tpu.vector_store %arg9[%c6_359, %c0_360, %c0_361], %942 {strides = array<i32>} : memref<25x8x128xf32, #tpu.memory_space<vmem>>, vector<1x8x128xf32>,
    %943 = vector.extract_strided_slice %794 {offsets = [56, 0], sizes = [8, 128], strides = [1, 1]} : vector<200x128xf32> to vector<8x128xf32>
    %cst_362 = arith.constant 1.000000e+00 : f32
    %944 = vector.broadcast %cst_362 : f32 to vector<8x128xf32>
    %945 = arith.cmpf ogt, %932, %944 : vector<8x128xf32>
    %946 = arith.extui %945 : vector<8x128xi1> to vector<8x128xi32>
    %947 = arith.sitofp %946 : vector<8x128xi32> to vector<8x128xf32>
    %cst_363 = arith.constant 0.899999976 : f32
    %948 = vector.broadcast %cst_363 : f32 to vector<8x128xf32>
    %949 = arith.mulf %948, %932 : vector<8x128xf32>
    %950 = arith.addf %949, %943 : vector<8x128xf32>
    %cst_364 = arith.constant 1.000000e+00 : f32
    %951 = vector.broadcast %cst_364 : f32 to vector<8x128xf32>
    %952 = arith.mulf %947, %951 : vector<8x128xf32>
    %953 = arith.subf %950, %952 : vector<8x128xf32>
    %cst_365 = arith.constant 1.000000e+00 : f32
    %954 = vector.broadcast %cst_365 : f32 to vector<8x128xf32>
    %955 = arith.cmpf ogt, %953, %954 : vector<8x128xf32>
    %956 = arith.extui %955 : vector<8x128xi1> to vector<8x128xi32>
    %957 = arith.sitofp %956 : vector<8x128xi32> to vector<8x128xf32>
    %c7 = arith.constant 7 : index
    %c0_366 = arith.constant 0 : index
    %c0_367 = arith.constant 0 : index
    %958 = vector.load %arg8[%c7, %c0_366, %c0_367] : memref<25x8x128xf32, #tpu.memory_space<vmem>>, vector<1x8x128xf32>
    %959 = vector.shape_cast %958 : vector<1x8x128xf32> to vector<8x128xf32>
    %960 = vector.shape_cast %957 : vector<8x128xf32> to vector<1x8x128xf32>
    tpu.vector_store %arg8[%c7, %c0_366, %c0_367], %960 {strides = array<i32>} : memref<25x8x128xf32, #tpu.memory_space<vmem>>, vector<1x8x128xf32>,
    %c7_368 = arith.constant 7 : index
    %c0_369 = arith.constant 0 : index
    %c0_370 = arith.constant 0 : index
    %961 = vector.load %arg9[%c7_368, %c0_369, %c0_370] : memref<25x8x128xf32, #tpu.memory_space<vmem>>, vector<1x8x128xf32>
    %962 = vector.shape_cast %961 : vector<1x8x128xf32> to vector<8x128xf32>
    %963 = vector.shape_cast %953 : vector<8x128xf32> to vector<1x8x128xf32>
    tpu.vector_store %arg9[%c7_368, %c0_369, %c0_370], %963 {strides = array<i32>} : memref<25x8x128xf32, #tpu.memory_space<vmem>>, vector<1x8x128xf32>,
    %964 = vector.extract_strided_slice %794 {offsets = [64, 0], sizes = [8, 128], strides = [1, 1]} : vector<200x128xf32> to vector<8x128xf32>
    %cst_371 = arith.constant 1.000000e+00 : f32
    %965 = vector.broadcast %cst_371 : f32 to vector<8x128xf32>
    %966 = arith.cmpf ogt, %953, %965 : vector<8x128xf32>
    %967 = arith.extui %966 : vector<8x128xi1> to vector<8x128xi32>
    %968 = arith.sitofp %967 : vector<8x128xi32> to vector<8x128xf32>
    %cst_372 = arith.constant 0.899999976 : f32
    %969 = vector.broadcast %cst_372 : f32 to vector<8x128xf32>
    %970 = arith.mulf %969, %953 : vector<8x128xf32>
    %971 = arith.addf %970, %964 : vector<8x128xf32>
    %cst_373 = arith.constant 1.000000e+00 : f32
    %972 = vector.broadcast %cst_373 : f32 to vector<8x128xf32>
    %973 = arith.mulf %968, %972 : vector<8x128xf32>
    %974 = arith.subf %971, %973 : vector<8x128xf32>
    %cst_374 = arith.constant 1.000000e+00 : f32
    %975 = vector.broadcast %cst_374 : f32 to vector<8x128xf32>
    %976 = arith.cmpf ogt, %974, %975 : vector<8x128xf32>
    %977 = arith.extui %976 : vector<8x128xi1> to vector<8x128xi32>
    %978 = arith.sitofp %977 : vector<8x128xi32> to vector<8x128xf32>
    %c8_375 = arith.constant 8 : index
    %c0_376 = arith.constant 0 : index
    %c0_377 = arith.constant 0 : index
    %979 = vector.load %arg8[%c8_375, %c0_376, %c0_377] : memref<25x8x128xf32, #tpu.memory_space<vmem>>, vector<1x8x128xf32>
    %980 = vector.shape_cast %979 : vector<1x8x128xf32> to vector<8x128xf32>
    %981 = vector.shape_cast %978 : vector<8x128xf32> to vector<1x8x128xf32>
    tpu.vector_store %arg8[%c8_375, %c0_376, %c0_377], %981 {strides = array<i32>} : memref<25x8x128xf32, #tpu.memory_space<vmem>>, vector<1x8x128xf32>,
    %c8_378 = arith.constant 8 : index
    %c0_379 = arith.constant 0 : index
    %c0_380 = arith.constant 0 : index
    %982 = vector.load %arg9[%c8_378, %c0_379, %c0_380] : memref<25x8x128xf32, #tpu.memory_space<vmem>>, vector<1x8x128xf32>
    %983 = vector.shape_cast %982 : vector<1x8x128xf32> to vector<8x128xf32>
    %984 = vector.shape_cast %974 : vector<8x128xf32> to vector<1x8x128xf32>
    tpu.vector_store %arg9[%c8_378, %c0_379, %c0_380], %984 {strides = array<i32>} : memref<25x8x128xf32, #tpu.memory_space<vmem>>, vector<1x8x128xf32>,
    %985 = vector.extract_strided_slice %794 {offsets = [72, 0], sizes = [8, 128], strides = [1, 1]} : vector<200x128xf32> to vector<8x128xf32>
    %cst_381 = arith.constant 1.000000e+00 : f32
    %986 = vector.broadcast %cst_381 : f32 to vector<8x128xf32>
    %987 = arith.cmpf ogt, %974, %986 : vector<8x128xf32>
    %988 = arith.extui %987 : vector<8x128xi1> to vector<8x128xi32>
    %989 = arith.sitofp %988 : vector<8x128xi32> to vector<8x128xf32>
    %cst_382 = arith.constant 0.899999976 : f32
    %990 = vector.broadcast %cst_382 : f32 to vector<8x128xf32>
    %991 = arith.mulf %990, %974 : vector<8x128xf32>
    %992 = arith.addf %991, %985 : vector<8x128xf32>
    %cst_383 = arith.constant 1.000000e+00 : f32
    %993 = vector.broadcast %cst_383 : f32 to vector<8x128xf32>
    %994 = arith.mulf %989, %993 : vector<8x128xf32>
    %995 = arith.subf %992, %994 : vector<8x128xf32>
    %cst_384 = arith.constant 1.000000e+00 : f32
    %996 = vector.broadcast %cst_384 : f32 to vector<8x128xf32>
    %997 = arith.cmpf ogt, %995, %996 : vector<8x128xf32>
    %998 = arith.extui %997 : vector<8x128xi1> to vector<8x128xi32>
    %999 = arith.sitofp %998 : vector<8x128xi32> to vector<8x128xf32>
    %c9 = arith.constant 9 : index
    %c0_385 = arith.constant 0 : index
    %c0_386 = arith.constant 0 : index
    %1000 = vector.load %arg8[%c9, %c0_385, %c0_386] : memref<25x8x128xf32, #tpu.memory_space<vmem>>, vector<1x8x128xf32>
    %1001 = vector.shape_cast %1000 : vector<1x8x128xf32> to vector<8x128xf32>
    %1002 = vector.shape_cast %999 : vector<8x128xf32> to vector<1x8x128xf32>
    tpu.vector_store %arg8[%c9, %c0_385, %c0_386], %1002 {strides = array<i32>} : memref<25x8x128xf32, #tpu.memory_space<vmem>>, vector<1x8x128xf32>,
    %c9_387 = arith.constant 9 : index
    %c0_388 = arith.constant 0 : index
    %c0_389 = arith.constant 0 : index
    %1003 = vector.load %arg9[%c9_387, %c0_388, %c0_389] : memref<25x8x128xf32, #tpu.memory_space<vmem>>, vector<1x8x128xf32>
    %1004 = vector.shape_cast %1003 : vector<1x8x128xf32> to vector<8x128xf32>
    %1005 = vector.shape_cast %995 : vector<8x128xf32> to vector<1x8x128xf32>
    tpu.vector_store %arg9[%c9_387, %c0_388, %c0_389], %1005 {strides = array<i32>} : memref<25x8x128xf32, #tpu.memory_space<vmem>>, vector<1x8x128xf32>,
    %1006 = vector.extract_strided_slice %794 {offsets = [80, 0], sizes = [8, 128], strides = [1, 1]} : vector<200x128xf32> to vector<8x128xf32>
    %cst_390 = arith.constant 1.000000e+00 : f32
    %1007 = vector.broadcast %cst_390 : f32 to vector<8x128xf32>
    %1008 = arith.cmpf ogt, %995, %1007 : vector<8x128xf32>
    %1009 = arith.extui %1008 : vector<8x128xi1> to vector<8x128xi32>
    %1010 = arith.sitofp %1009 : vector<8x128xi32> to vector<8x128xf32>
    %cst_391 = arith.constant 0.899999976 : f32
    %1011 = vector.broadcast %cst_391 : f32 to vector<8x128xf32>
    %1012 = arith.mulf %1011, %995 : vector<8x128xf32>
    %1013 = arith.addf %1012, %1006 : vector<8x128xf32>
    %cst_392 = arith.constant 1.000000e+00 : f32
    %1014 = vector.broadcast %cst_392 : f32 to vector<8x128xf32>
    %1015 = arith.mulf %1010, %1014 : vector<8x128xf32>
    %1016 = arith.subf %1013, %1015 : vector<8x128xf32>
    %cst_393 = arith.constant 1.000000e+00 : f32
    %1017 = vector.broadcast %cst_393 : f32 to vector<8x128xf32>
    %1018 = arith.cmpf ogt, %1016, %1017 : vector<8x128xf32>
    %1019 = arith.extui %1018 : vector<8x128xi1> to vector<8x128xi32>
    %1020 = arith.sitofp %1019 : vector<8x128xi32> to vector<8x128xf32>
    %c10 = arith.constant 10 : index
    %c0_394 = arith.constant 0 : index
    %c0_395 = arith.constant 0 : index
    %1021 = vector.load %arg8[%c10, %c0_394, %c0_395] : memref<25x8x128xf32, #tpu.memory_space<vmem>>, vector<1x8x128xf32>
    %1022 = vector.shape_cast %1021 : vector<1x8x128xf32> to vector<8x128xf32>
    %1023 = vector.shape_cast %1020 : vector<8x128xf32> to vector<1x8x128xf32>
    tpu.vector_store %arg8[%c10, %c0_394, %c0_395], %1023 {strides = array<i32>} : memref<25x8x128xf32, #tpu.memory_space<vmem>>, vector<1x8x128xf32>,
    %c10_396 = arith.constant 10 : index
    %c0_397 = arith.constant 0 : index
    %c0_398 = arith.constant 0 : index
    %1024 = vector.load %arg9[%c10_396, %c0_397, %c0_398] : memref<25x8x128xf32, #tpu.memory_space<vmem>>, vector<1x8x128xf32>
    %1025 = vector.shape_cast %1024 : vector<1x8x128xf32> to vector<8x128xf32>
    %1026 = vector.shape_cast %1016 : vector<8x128xf32> to vector<1x8x128xf32>
    tpu.vector_store %arg9[%c10_396, %c0_397, %c0_398], %1026 {strides = array<i32>} : memref<25x8x128xf32, #tpu.memory_space<vmem>>, vector<1x8x128xf32>,
    %1027 = vector.extract_strided_slice %794 {offsets = [88, 0], sizes = [8, 128], strides = [1, 1]} : vector<200x128xf32> to vector<8x128xf32>
    %cst_399 = arith.constant 1.000000e+00 : f32
    %1028 = vector.broadcast %cst_399 : f32 to vector<8x128xf32>
    %1029 = arith.cmpf ogt, %1016, %1028 : vector<8x128xf32>
    %1030 = arith.extui %1029 : vector<8x128xi1> to vector<8x128xi32>
    %1031 = arith.sitofp %1030 : vector<8x128xi32> to vector<8x128xf32>
    %cst_400 = arith.constant 0.899999976 : f32
    %1032 = vector.broadcast %cst_400 : f32 to vector<8x128xf32>
    %1033 = arith.mulf %1032, %1016 : vector<8x128xf32>
    %1034 = arith.addf %1033, %1027 : vector<8x128xf32>
    %cst_401 = arith.constant 1.000000e+00 : f32
    %1035 = vector.broadcast %cst_401 : f32 to vector<8x128xf32>
    %1036 = arith.mulf %1031, %1035 : vector<8x128xf32>
    %1037 = arith.subf %1034, %1036 : vector<8x128xf32>
    %cst_402 = arith.constant 1.000000e+00 : f32
    %1038 = vector.broadcast %cst_402 : f32 to vector<8x128xf32>
    %1039 = arith.cmpf ogt, %1037, %1038 : vector<8x128xf32>
    %1040 = arith.extui %1039 : vector<8x128xi1> to vector<8x128xi32>
    %1041 = arith.sitofp %1040 : vector<8x128xi32> to vector<8x128xf32>
    %c11 = arith.constant 11 : index
    %c0_403 = arith.constant 0 : index
    %c0_404 = arith.constant 0 : index
    %1042 = vector.load %arg8[%c11, %c0_403, %c0_404] : memref<25x8x128xf32, #tpu.memory_space<vmem>>, vector<1x8x128xf32>
    %1043 = vector.shape_cast %1042 : vector<1x8x128xf32> to vector<8x128xf32>
    %1044 = vector.shape_cast %1041 : vector<8x128xf32> to vector<1x8x128xf32>
    tpu.vector_store %arg8[%c11, %c0_403, %c0_404], %1044 {strides = array<i32>} : memref<25x8x128xf32, #tpu.memory_space<vmem>>, vector<1x8x128xf32>,
    %c11_405 = arith.constant 11 : index
    %c0_406 = arith.constant 0 : index
    %c0_407 = arith.constant 0 : index
    %1045 = vector.load %arg9[%c11_405, %c0_406, %c0_407] : memref<25x8x128xf32, #tpu.memory_space<vmem>>, vector<1x8x128xf32>
    %1046 = vector.shape_cast %1045 : vector<1x8x128xf32> to vector<8x128xf32>
    %1047 = vector.shape_cast %1037 : vector<8x128xf32> to vector<1x8x128xf32>
    tpu.vector_store %arg9[%c11_405, %c0_406, %c0_407], %1047 {strides = array<i32>} : memref<25x8x128xf32, #tpu.memory_space<vmem>>, vector<1x8x128xf32>,
    %1048 = vector.extract_strided_slice %794 {offsets = [96, 0], sizes = [8, 128], strides = [1, 1]} : vector<200x128xf32> to vector<8x128xf32>
    %cst_408 = arith.constant 1.000000e+00 : f32
    %1049 = vector.broadcast %cst_408 : f32 to vector<8x128xf32>
    %1050 = arith.cmpf ogt, %1037, %1049 : vector<8x128xf32>
    %1051 = arith.extui %1050 : vector<8x128xi1> to vector<8x128xi32>
    %1052 = arith.sitofp %1051 : vector<8x128xi32> to vector<8x128xf32>
    %cst_409 = arith.constant 0.899999976 : f32
    %1053 = vector.broadcast %cst_409 : f32 to vector<8x128xf32>
    %1054 = arith.mulf %1053, %1037 : vector<8x128xf32>
    %1055 = arith.addf %1054, %1048 : vector<8x128xf32>
    %cst_410 = arith.constant 1.000000e+00 : f32
    %1056 = vector.broadcast %cst_410 : f32 to vector<8x128xf32>
    %1057 = arith.mulf %1052, %1056 : vector<8x128xf32>
    %1058 = arith.subf %1055, %1057 : vector<8x128xf32>
    %cst_411 = arith.constant 1.000000e+00 : f32
    %1059 = vector.broadcast %cst_411 : f32 to vector<8x128xf32>
    %1060 = arith.cmpf ogt, %1058, %1059 : vector<8x128xf32>
    %1061 = arith.extui %1060 : vector<8x128xi1> to vector<8x128xi32>
    %1062 = arith.sitofp %1061 : vector<8x128xi32> to vector<8x128xf32>
    %c12 = arith.constant 12 : index
    %c0_412 = arith.constant 0 : index
    %c0_413 = arith.constant 0 : index
    %1063 = vector.load %arg8[%c12, %c0_412, %c0_413] : memref<25x8x128xf32, #tpu.memory_space<vmem>>, vector<1x8x128xf32>
    %1064 = vector.shape_cast %1063 : vector<1x8x128xf32> to vector<8x128xf32>
    %1065 = vector.shape_cast %1062 : vector<8x128xf32> to vector<1x8x128xf32>
    tpu.vector_store %arg8[%c12, %c0_412, %c0_413], %1065 {strides = array<i32>} : memref<25x8x128xf32, #tpu.memory_space<vmem>>, vector<1x8x128xf32>,
    %c12_414 = arith.constant 12 : index
    %c0_415 = arith.constant 0 : index
    %c0_416 = arith.constant 0 : index
    %1066 = vector.load %arg9[%c12_414, %c0_415, %c0_416] : memref<25x8x128xf32, #tpu.memory_space<vmem>>, vector<1x8x128xf32>
    %1067 = vector.shape_cast %1066 : vector<1x8x128xf32> to vector<8x128xf32>
    %1068 = vector.shape_cast %1058 : vector<8x128xf32> to vector<1x8x128xf32>
    tpu.vector_store %arg9[%c12_414, %c0_415, %c0_416], %1068 {strides = array<i32>} : memref<25x8x128xf32, #tpu.memory_space<vmem>>, vector<1x8x128xf32>,
    %1069 = vector.extract_strided_slice %794 {offsets = [104, 0], sizes = [8, 128], strides = [1, 1]} : vector<200x128xf32> to vector<8x128xf32>
    %cst_417 = arith.constant 1.000000e+00 : f32
    %1070 = vector.broadcast %cst_417 : f32 to vector<8x128xf32>
    %1071 = arith.cmpf ogt, %1058, %1070 : vector<8x128xf32>
    %1072 = arith.extui %1071 : vector<8x128xi1> to vector<8x128xi32>
    %1073 = arith.sitofp %1072 : vector<8x128xi32> to vector<8x128xf32>
    %cst_418 = arith.constant 0.899999976 : f32
    %1074 = vector.broadcast %cst_418 : f32 to vector<8x128xf32>
    %1075 = arith.mulf %1074, %1058 : vector<8x128xf32>
    %1076 = arith.addf %1075, %1069 : vector<8x128xf32>
    %cst_419 = arith.constant 1.000000e+00 : f32
    %1077 = vector.broadcast %cst_419 : f32 to vector<8x128xf32>
    %1078 = arith.mulf %1073, %1077 : vector<8x128xf32>
    %1079 = arith.subf %1076, %1078 : vector<8x128xf32>
    %cst_420 = arith.constant 1.000000e+00 : f32
    %1080 = vector.broadcast %cst_420 : f32 to vector<8x128xf32>
    %1081 = arith.cmpf ogt, %1079, %1080 : vector<8x128xf32>
    %1082 = arith.extui %1081 : vector<8x128xi1> to vector<8x128xi32>
    %1083 = arith.sitofp %1082 : vector<8x128xi32> to vector<8x128xf32>
    %c13 = arith.constant 13 : index
    %c0_421 = arith.constant 0 : index
    %c0_422 = arith.constant 0 : index
    %1084 = vector.load %arg8[%c13, %c0_421, %c0_422] : memref<25x8x128xf32, #tpu.memory_space<vmem>>, vector<1x8x128xf32>
    %1085 = vector.shape_cast %1084 : vector<1x8x128xf32> to vector<8x128xf32>
    %1086 = vector.shape_cast %1083 : vector<8x128xf32> to vector<1x8x128xf32>
    tpu.vector_store %arg8[%c13, %c0_421, %c0_422], %1086 {strides = array<i32>} : memref<25x8x128xf32, #tpu.memory_space<vmem>>, vector<1x8x128xf32>,
    %c13_423 = arith.constant 13 : index
    %c0_424 = arith.constant 0 : index
    %c0_425 = arith.constant 0 : index
    %1087 = vector.load %arg9[%c13_423, %c0_424, %c0_425] : memref<25x8x128xf32, #tpu.memory_space<vmem>>, vector<1x8x128xf32>
    %1088 = vector.shape_cast %1087 : vector<1x8x128xf32> to vector<8x128xf32>
    %1089 = vector.shape_cast %1079 : vector<8x128xf32> to vector<1x8x128xf32>
    tpu.vector_store %arg9[%c13_423, %c0_424, %c0_425], %1089 {strides = array<i32>} : memref<25x8x128xf32, #tpu.memory_space<vmem>>, vector<1x8x128xf32>,
    %1090 = vector.extract_strided_slice %794 {offsets = [112, 0], sizes = [8, 128], strides = [1, 1]} : vector<200x128xf32> to vector<8x128xf32>
    %cst_426 = arith.constant 1.000000e+00 : f32
    %1091 = vector.broadcast %cst_426 : f32 to vector<8x128xf32>
    %1092 = arith.cmpf ogt, %1079, %1091 : vector<8x128xf32>
    %1093 = arith.extui %1092 : vector<8x128xi1> to vector<8x128xi32>
    %1094 = arith.sitofp %1093 : vector<8x128xi32> to vector<8x128xf32>
    %cst_427 = arith.constant 0.899999976 : f32
    %1095 = vector.broadcast %cst_427 : f32 to vector<8x128xf32>
    %1096 = arith.mulf %1095, %1079 : vector<8x128xf32>
    %1097 = arith.addf %1096, %1090 : vector<8x128xf32>
    %cst_428 = arith.constant 1.000000e+00 : f32
    %1098 = vector.broadcast %cst_428 : f32 to vector<8x128xf32>
    %1099 = arith.mulf %1094, %1098 : vector<8x128xf32>
    %1100 = arith.subf %1097, %1099 : vector<8x128xf32>
    %cst_429 = arith.constant 1.000000e+00 : f32
    %1101 = vector.broadcast %cst_429 : f32 to vector<8x128xf32>
    %1102 = arith.cmpf ogt, %1100, %1101 : vector<8x128xf32>
    %1103 = arith.extui %1102 : vector<8x128xi1> to vector<8x128xi32>
    %1104 = arith.sitofp %1103 : vector<8x128xi32> to vector<8x128xf32>
    %c14 = arith.constant 14 : index
    %c0_430 = arith.constant 0 : index
    %c0_431 = arith.constant 0 : index
    %1105 = vector.load %arg8[%c14, %c0_430, %c0_431] : memref<25x8x128xf32, #tpu.memory_space<vmem>>, vector<1x8x128xf32>
    %1106 = vector.shape_cast %1105 : vector<1x8x128xf32> to vector<8x128xf32>
    %1107 = vector.shape_cast %1104 : vector<8x128xf32> to vector<1x8x128xf32>
    tpu.vector_store %arg8[%c14, %c0_430, %c0_431], %1107 {strides = array<i32>} : memref<25x8x128xf32, #tpu.memory_space<vmem>>, vector<1x8x128xf32>,
    %c14_432 = arith.constant 14 : index
    %c0_433 = arith.constant 0 : index
    %c0_434 = arith.constant 0 : index
    %1108 = vector.load %arg9[%c14_432, %c0_433, %c0_434] : memref<25x8x128xf32, #tpu.memory_space<vmem>>, vector<1x8x128xf32>
    %1109 = vector.shape_cast %1108 : vector<1x8x128xf32> to vector<8x128xf32>
    %1110 = vector.shape_cast %1100 : vector<8x128xf32> to vector<1x8x128xf32>
    tpu.vector_store %arg9[%c14_432, %c0_433, %c0_434], %1110 {strides = array<i32>} : memref<25x8x128xf32, #tpu.memory_space<vmem>>, vector<1x8x128xf32>,
    %1111 = vector.extract_strided_slice %794 {offsets = [120, 0], sizes = [8, 128], strides = [1, 1]} : vector<200x128xf32> to vector<8x128xf32>
    %cst_435 = arith.constant 1.000000e+00 : f32
    %1112 = vector.broadcast %cst_435 : f32 to vector<8x128xf32>
    %1113 = arith.cmpf ogt, %1100, %1112 : vector<8x128xf32>
    %1114 = arith.extui %1113 : vector<8x128xi1> to vector<8x128xi32>
    %1115 = arith.sitofp %1114 : vector<8x128xi32> to vector<8x128xf32>
    %cst_436 = arith.constant 0.899999976 : f32
    %1116 = vector.broadcast %cst_436 : f32 to vector<8x128xf32>
    %1117 = arith.mulf %1116, %1100 : vector<8x128xf32>
    %1118 = arith.addf %1117, %1111 : vector<8x128xf32>
    %cst_437 = arith.constant 1.000000e+00 : f32
    %1119 = vector.broadcast %cst_437 : f32 to vector<8x128xf32>
    %1120 = arith.mulf %1115, %1119 : vector<8x128xf32>
    %1121 = arith.subf %1118, %1120 : vector<8x128xf32>
    %cst_438 = arith.constant 1.000000e+00 : f32
    %1122 = vector.broadcast %cst_438 : f32 to vector<8x128xf32>
    %1123 = arith.cmpf ogt, %1121, %1122 : vector<8x128xf32>
    %1124 = arith.extui %1123 : vector<8x128xi1> to vector<8x128xi32>
    %1125 = arith.sitofp %1124 : vector<8x128xi32> to vector<8x128xf32>
    %c15 = arith.constant 15 : index
    %c0_439 = arith.constant 0 : index
    %c0_440 = arith.constant 0 : index
    %1126 = vector.load %arg8[%c15, %c0_439, %c0_440] : memref<25x8x128xf32, #tpu.memory_space<vmem>>, vector<1x8x128xf32>
    %1127 = vector.shape_cast %1126 : vector<1x8x128xf32> to vector<8x128xf32>
    %1128 = vector.shape_cast %1125 : vector<8x128xf32> to vector<1x8x128xf32>
    tpu.vector_store %arg8[%c15, %c0_439, %c0_440], %1128 {strides = array<i32>} : memref<25x8x128xf32, #tpu.memory_space<vmem>>, vector<1x8x128xf32>,
    %c15_441 = arith.constant 15 : index
    %c0_442 = arith.constant 0 : index
    %c0_443 = arith.constant 0 : index
    %1129 = vector.load %arg9[%c15_441, %c0_442, %c0_443] : memref<25x8x128xf32, #tpu.memory_space<vmem>>, vector<1x8x128xf32>
    %1130 = vector.shape_cast %1129 : vector<1x8x128xf32> to vector<8x128xf32>
    %1131 = vector.shape_cast %1121 : vector<8x128xf32> to vector<1x8x128xf32>
    tpu.vector_store %arg9[%c15_441, %c0_442, %c0_443], %1131 {strides = array<i32>} : memref<25x8x128xf32, #tpu.memory_space<vmem>>, vector<1x8x128xf32>,
    %1132 = vector.extract_strided_slice %794 {offsets = [128, 0], sizes = [8, 128], strides = [1, 1]} : vector<200x128xf32> to vector<8x128xf32>
    %cst_444 = arith.constant 1.000000e+00 : f32
    %1133 = vector.broadcast %cst_444 : f32 to vector<8x128xf32>
    %1134 = arith.cmpf ogt, %1121, %1133 : vector<8x128xf32>
    %1135 = arith.extui %1134 : vector<8x128xi1> to vector<8x128xi32>
    %1136 = arith.sitofp %1135 : vector<8x128xi32> to vector<8x128xf32>
    %cst_445 = arith.constant 0.899999976 : f32
    %1137 = vector.broadcast %cst_445 : f32 to vector<8x128xf32>
    %1138 = arith.mulf %1137, %1121 : vector<8x128xf32>
    %1139 = arith.addf %1138, %1132 : vector<8x128xf32>
    %cst_446 = arith.constant 1.000000e+00 : f32
    %1140 = vector.broadcast %cst_446 : f32 to vector<8x128xf32>
    %1141 = arith.mulf %1136, %1140 : vector<8x128xf32>
    %1142 = arith.subf %1139, %1141 : vector<8x128xf32>
    %cst_447 = arith.constant 1.000000e+00 : f32
    %1143 = vector.broadcast %cst_447 : f32 to vector<8x128xf32>
    %1144 = arith.cmpf ogt, %1142, %1143 : vector<8x128xf32>
    %1145 = arith.extui %1144 : vector<8x128xi1> to vector<8x128xi32>
    %1146 = arith.sitofp %1145 : vector<8x128xi32> to vector<8x128xf32>
    %c16_448 = arith.constant 16 : index
    %c0_449 = arith.constant 0 : index
    %c0_450 = arith.constant 0 : index
    %1147 = vector.load %arg8[%c16_448, %c0_449, %c0_450] : memref<25x8x128xf32, #tpu.memory_space<vmem>>, vector<1x8x128xf32>
    %1148 = vector.shape_cast %1147 : vector<1x8x128xf32> to vector<8x128xf32>
    %1149 = vector.shape_cast %1146 : vector<8x128xf32> to vector<1x8x128xf32>
    tpu.vector_store %arg8[%c16_448, %c0_449, %c0_450], %1149 {strides = array<i32>} : memref<25x8x128xf32, #tpu.memory_space<vmem>>, vector<1x8x128xf32>,
    %c16_451 = arith.constant 16 : index
    %c0_452 = arith.constant 0 : index
    %c0_453 = arith.constant 0 : index
    %1150 = vector.load %arg9[%c16_451, %c0_452, %c0_453] : memref<25x8x128xf32, #tpu.memory_space<vmem>>, vector<1x8x128xf32>
    %1151 = vector.shape_cast %1150 : vector<1x8x128xf32> to vector<8x128xf32>
    %1152 = vector.shape_cast %1142 : vector<8x128xf32> to vector<1x8x128xf32>
    tpu.vector_store %arg9[%c16_451, %c0_452, %c0_453], %1152 {strides = array<i32>} : memref<25x8x128xf32, #tpu.memory_space<vmem>>, vector<1x8x128xf32>,
    %1153 = vector.extract_strided_slice %794 {offsets = [136, 0], sizes = [8, 128], strides = [1, 1]} : vector<200x128xf32> to vector<8x128xf32>
    %cst_454 = arith.constant 1.000000e+00 : f32
    %1154 = vector.broadcast %cst_454 : f32 to vector<8x128xf32>
    %1155 = arith.cmpf ogt, %1142, %1154 : vector<8x128xf32>
    %1156 = arith.extui %1155 : vector<8x128xi1> to vector<8x128xi32>
    %1157 = arith.sitofp %1156 : vector<8x128xi32> to vector<8x128xf32>
    %cst_455 = arith.constant 0.899999976 : f32
    %1158 = vector.broadcast %cst_455 : f32 to vector<8x128xf32>
    %1159 = arith.mulf %1158, %1142 : vector<8x128xf32>
    %1160 = arith.addf %1159, %1153 : vector<8x128xf32>
    %cst_456 = arith.constant 1.000000e+00 : f32
    %1161 = vector.broadcast %cst_456 : f32 to vector<8x128xf32>
    %1162 = arith.mulf %1157, %1161 : vector<8x128xf32>
    %1163 = arith.subf %1160, %1162 : vector<8x128xf32>
    %cst_457 = arith.constant 1.000000e+00 : f32
    %1164 = vector.broadcast %cst_457 : f32 to vector<8x128xf32>
    %1165 = arith.cmpf ogt, %1163, %1164 : vector<8x128xf32>
    %1166 = arith.extui %1165 : vector<8x128xi1> to vector<8x128xi32>
    %1167 = arith.sitofp %1166 : vector<8x128xi32> to vector<8x128xf32>
    %c17 = arith.constant 17 : index
    %c0_458 = arith.constant 0 : index
    %c0_459 = arith.constant 0 : index
    %1168 = vector.load %arg8[%c17, %c0_458, %c0_459] : memref<25x8x128xf32, #tpu.memory_space<vmem>>, vector<1x8x128xf32>
    %1169 = vector.shape_cast %1168 : vector<1x8x128xf32> to vector<8x128xf32>
    %1170 = vector.shape_cast %1167 : vector<8x128xf32> to vector<1x8x128xf32>
    tpu.vector_store %arg8[%c17, %c0_458, %c0_459], %1170 {strides = array<i32>} : memref<25x8x128xf32, #tpu.memory_space<vmem>>, vector<1x8x128xf32>,
    %c17_460 = arith.constant 17 : index
    %c0_461 = arith.constant 0 : index
    %c0_462 = arith.constant 0 : index
    %1171 = vector.load %arg9[%c17_460, %c0_461, %c0_462] : memref<25x8x128xf32, #tpu.memory_space<vmem>>, vector<1x8x128xf32>
    %1172 = vector.shape_cast %1171 : vector<1x8x128xf32> to vector<8x128xf32>
    %1173 = vector.shape_cast %1163 : vector<8x128xf32> to vector<1x8x128xf32>
    tpu.vector_store %arg9[%c17_460, %c0_461, %c0_462], %1173 {strides = array<i32>} : memref<25x8x128xf32, #tpu.memory_space<vmem>>, vector<1x8x128xf32>,
    %1174 = vector.extract_strided_slice %794 {offsets = [144, 0], sizes = [8, 128], strides = [1, 1]} : vector<200x128xf32> to vector<8x128xf32>
    %cst_463 = arith.constant 1.000000e+00 : f32
    %1175 = vector.broadcast %cst_463 : f32 to vector<8x128xf32>
    %1176 = arith.cmpf ogt, %1163, %1175 : vector<8x128xf32>
    %1177 = arith.extui %1176 : vector<8x128xi1> to vector<8x128xi32>
    %1178 = arith.sitofp %1177 : vector<8x128xi32> to vector<8x128xf32>
    %cst_464 = arith.constant 0.899999976 : f32
    %1179 = vector.broadcast %cst_464 : f32 to vector<8x128xf32>
    %1180 = arith.mulf %1179, %1163 : vector<8x128xf32>
    %1181 = arith.addf %1180, %1174 : vector<8x128xf32>
    %cst_465 = arith.constant 1.000000e+00 : f32
    %1182 = vector.broadcast %cst_465 : f32 to vector<8x128xf32>
    %1183 = arith.mulf %1178, %1182 : vector<8x128xf32>
    %1184 = arith.subf %1181, %1183 : vector<8x128xf32>
    %cst_466 = arith.constant 1.000000e+00 : f32
    %1185 = vector.broadcast %cst_466 : f32 to vector<8x128xf32>
    %1186 = arith.cmpf ogt, %1184, %1185 : vector<8x128xf32>
    %1187 = arith.extui %1186 : vector<8x128xi1> to vector<8x128xi32>
    %1188 = arith.sitofp %1187 : vector<8x128xi32> to vector<8x128xf32>
    %c18 = arith.constant 18 : index
    %c0_467 = arith.constant 0 : index
    %c0_468 = arith.constant 0 : index
    %1189 = vector.load %arg8[%c18, %c0_467, %c0_468] : memref<25x8x128xf32, #tpu.memory_space<vmem>>, vector<1x8x128xf32>
    %1190 = vector.shape_cast %1189 : vector<1x8x128xf32> to vector<8x128xf32>
    %1191 = vector.shape_cast %1188 : vector<8x128xf32> to vector<1x8x128xf32>
    tpu.vector_store %arg8[%c18, %c0_467, %c0_468], %1191 {strides = array<i32>} : memref<25x8x128xf32, #tpu.memory_space<vmem>>, vector<1x8x128xf32>,
    %c18_469 = arith.constant 18 : index
    %c0_470 = arith.constant 0 : index
    %c0_471 = arith.constant 0 : index
    %1192 = vector.load %arg9[%c18_469, %c0_470, %c0_471] : memref<25x8x128xf32, #tpu.memory_space<vmem>>, vector<1x8x128xf32>
    %1193 = vector.shape_cast %1192 : vector<1x8x128xf32> to vector<8x128xf32>
    %1194 = vector.shape_cast %1184 : vector<8x128xf32> to vector<1x8x128xf32>
    tpu.vector_store %arg9[%c18_469, %c0_470, %c0_471], %1194 {strides = array<i32>} : memref<25x8x128xf32, #tpu.memory_space<vmem>>, vector<1x8x128xf32>,
    %1195 = vector.extract_strided_slice %794 {offsets = [152, 0], sizes = [8, 128], strides = [1, 1]} : vector<200x128xf32> to vector<8x128xf32>
    %cst_472 = arith.constant 1.000000e+00 : f32
    %1196 = vector.broadcast %cst_472 : f32 to vector<8x128xf32>
    %1197 = arith.cmpf ogt, %1184, %1196 : vector<8x128xf32>
    %1198 = arith.extui %1197 : vector<8x128xi1> to vector<8x128xi32>
    %1199 = arith.sitofp %1198 : vector<8x128xi32> to vector<8x128xf32>
    %cst_473 = arith.constant 0.899999976 : f32
    %1200 = vector.broadcast %cst_473 : f32 to vector<8x128xf32>
    %1201 = arith.mulf %1200, %1184 : vector<8x128xf32>
    %1202 = arith.addf %1201, %1195 : vector<8x128xf32>
    %cst_474 = arith.constant 1.000000e+00 : f32
    %1203 = vector.broadcast %cst_474 : f32 to vector<8x128xf32>
    %1204 = arith.mulf %1199, %1203 : vector<8x128xf32>
    %1205 = arith.subf %1202, %1204 : vector<8x128xf32>
    %cst_475 = arith.constant 1.000000e+00 : f32
    %1206 = vector.broadcast %cst_475 : f32 to vector<8x128xf32>
    %1207 = arith.cmpf ogt, %1205, %1206 : vector<8x128xf32>
    %1208 = arith.extui %1207 : vector<8x128xi1> to vector<8x128xi32>
    %1209 = arith.sitofp %1208 : vector<8x128xi32> to vector<8x128xf32>
    %c19 = arith.constant 19 : index
    %c0_476 = arith.constant 0 : index
    %c0_477 = arith.constant 0 : index
    %1210 = vector.load %arg8[%c19, %c0_476, %c0_477] : memref<25x8x128xf32, #tpu.memory_space<vmem>>, vector<1x8x128xf32>
    %1211 = vector.shape_cast %1210 : vector<1x8x128xf32> to vector<8x128xf32>
    %1212 = vector.shape_cast %1209 : vector<8x128xf32> to vector<1x8x128xf32>
    tpu.vector_store %arg8[%c19, %c0_476, %c0_477], %1212 {strides = array<i32>} : memref<25x8x128xf32, #tpu.memory_space<vmem>>, vector<1x8x128xf32>,
    %c19_478 = arith.constant 19 : index
    %c0_479 = arith.constant 0 : index
    %c0_480 = arith.constant 0 : index
    %1213 = vector.load %arg9[%c19_478, %c0_479, %c0_480] : memref<25x8x128xf32, #tpu.memory_space<vmem>>, vector<1x8x128xf32>
    %1214 = vector.shape_cast %1213 : vector<1x8x128xf32> to vector<8x128xf32>
    %1215 = vector.shape_cast %1205 : vector<8x128xf32> to vector<1x8x128xf32>
    tpu.vector_store %arg9[%c19_478, %c0_479, %c0_480], %1215 {strides = array<i32>} : memref<25x8x128xf32, #tpu.memory_space<vmem>>, vector<1x8x128xf32>,
    %1216 = vector.extract_strided_slice %794 {offsets = [160, 0], sizes = [8, 128], strides = [1, 1]} : vector<200x128xf32> to vector<8x128xf32>
    %cst_481 = arith.constant 1.000000e+00 : f32
    %1217 = vector.broadcast %cst_481 : f32 to vector<8x128xf32>
    %1218 = arith.cmpf ogt, %1205, %1217 : vector<8x128xf32>
    %1219 = arith.extui %1218 : vector<8x128xi1> to vector<8x128xi32>
    %1220 = arith.sitofp %1219 : vector<8x128xi32> to vector<8x128xf32>
    %cst_482 = arith.constant 0.899999976 : f32
    %1221 = vector.broadcast %cst_482 : f32 to vector<8x128xf32>
    %1222 = arith.mulf %1221, %1205 : vector<8x128xf32>
    %1223 = arith.addf %1222, %1216 : vector<8x128xf32>
    %cst_483 = arith.constant 1.000000e+00 : f32
    %1224 = vector.broadcast %cst_483 : f32 to vector<8x128xf32>
    %1225 = arith.mulf %1220, %1224 : vector<8x128xf32>
    %1226 = arith.subf %1223, %1225 : vector<8x128xf32>
    %cst_484 = arith.constant 1.000000e+00 : f32
    %1227 = vector.broadcast %cst_484 : f32 to vector<8x128xf32>
    %1228 = arith.cmpf ogt, %1226, %1227 : vector<8x128xf32>
    %1229 = arith.extui %1228 : vector<8x128xi1> to vector<8x128xi32>
    %1230 = arith.sitofp %1229 : vector<8x128xi32> to vector<8x128xf32>
    %c20 = arith.constant 20 : index
    %c0_485 = arith.constant 0 : index
    %c0_486 = arith.constant 0 : index
    %1231 = vector.load %arg8[%c20, %c0_485, %c0_486] : memref<25x8x128xf32, #tpu.memory_space<vmem>>, vector<1x8x128xf32>
    %1232 = vector.shape_cast %1231 : vector<1x8x128xf32> to vector<8x128xf32>
    %1233 = vector.shape_cast %1230 : vector<8x128xf32> to vector<1x8x128xf32>
    tpu.vector_store %arg8[%c20, %c0_485, %c0_486], %1233 {strides = array<i32>} : memref<25x8x128xf32, #tpu.memory_space<vmem>>, vector<1x8x128xf32>,
    %c20_487 = arith.constant 20 : index
    %c0_488 = arith.constant 0 : index
    %c0_489 = arith.constant 0 : index
    %1234 = vector.load %arg9[%c20_487, %c0_488, %c0_489] : memref<25x8x128xf32, #tpu.memory_space<vmem>>, vector<1x8x128xf32>
    %1235 = vector.shape_cast %1234 : vector<1x8x128xf32> to vector<8x128xf32>
    %1236 = vector.shape_cast %1226 : vector<8x128xf32> to vector<1x8x128xf32>
    tpu.vector_store %arg9[%c20_487, %c0_488, %c0_489], %1236 {strides = array<i32>} : memref<25x8x128xf32, #tpu.memory_space<vmem>>, vector<1x8x128xf32>,
    %1237 = vector.extract_strided_slice %794 {offsets = [168, 0], sizes = [8, 128], strides = [1, 1]} : vector<200x128xf32> to vector<8x128xf32>
    %cst_490 = arith.constant 1.000000e+00 : f32
    %1238 = vector.broadcast %cst_490 : f32 to vector<8x128xf32>
    %1239 = arith.cmpf ogt, %1226, %1238 : vector<8x128xf32>
    %1240 = arith.extui %1239 : vector<8x128xi1> to vector<8x128xi32>
    %1241 = arith.sitofp %1240 : vector<8x128xi32> to vector<8x128xf32>
    %cst_491 = arith.constant 0.899999976 : f32
    %1242 = vector.broadcast %cst_491 : f32 to vector<8x128xf32>
    %1243 = arith.mulf %1242, %1226 : vector<8x128xf32>
    %1244 = arith.addf %1243, %1237 : vector<8x128xf32>
    %cst_492 = arith.constant 1.000000e+00 : f32
    %1245 = vector.broadcast %cst_492 : f32 to vector<8x128xf32>
    %1246 = arith.mulf %1241, %1245 : vector<8x128xf32>
    %1247 = arith.subf %1244, %1246 : vector<8x128xf32>
    %cst_493 = arith.constant 1.000000e+00 : f32
    %1248 = vector.broadcast %cst_493 : f32 to vector<8x128xf32>
    %1249 = arith.cmpf ogt, %1247, %1248 : vector<8x128xf32>
    %1250 = arith.extui %1249 : vector<8x128xi1> to vector<8x128xi32>
    %1251 = arith.sitofp %1250 : vector<8x128xi32> to vector<8x128xf32>
    %c21 = arith.constant 21 : index
    %c0_494 = arith.constant 0 : index
    %c0_495 = arith.constant 0 : index
    %1252 = vector.load %arg8[%c21, %c0_494, %c0_495] : memref<25x8x128xf32, #tpu.memory_space<vmem>>, vector<1x8x128xf32>
    %1253 = vector.shape_cast %1252 : vector<1x8x128xf32> to vector<8x128xf32>
    %1254 = vector.shape_cast %1251 : vector<8x128xf32> to vector<1x8x128xf32>
    tpu.vector_store %arg8[%c21, %c0_494, %c0_495], %1254 {strides = array<i32>} : memref<25x8x128xf32, #tpu.memory_space<vmem>>, vector<1x8x128xf32>,
    %c21_496 = arith.constant 21 : index
    %c0_497 = arith.constant 0 : index
    %c0_498 = arith.constant 0 : index
    %1255 = vector.load %arg9[%c21_496, %c0_497, %c0_498] : memref<25x8x128xf32, #tpu.memory_space<vmem>>, vector<1x8x128xf32>
    %1256 = vector.shape_cast %1255 : vector<1x8x128xf32> to vector<8x128xf32>
    %1257 = vector.shape_cast %1247 : vector<8x128xf32> to vector<1x8x128xf32>
    tpu.vector_store %arg9[%c21_496, %c0_497, %c0_498], %1257 {strides = array<i32>} : memref<25x8x128xf32, #tpu.memory_space<vmem>>, vector<1x8x128xf32>,
    %1258 = vector.extract_strided_slice %794 {offsets = [176, 0], sizes = [8, 128], strides = [1, 1]} : vector<200x128xf32> to vector<8x128xf32>
    %cst_499 = arith.constant 1.000000e+00 : f32
    %1259 = vector.broadcast %cst_499 : f32 to vector<8x128xf32>
    %1260 = arith.cmpf ogt, %1247, %1259 : vector<8x128xf32>
    %1261 = arith.extui %1260 : vector<8x128xi1> to vector<8x128xi32>
    %1262 = arith.sitofp %1261 : vector<8x128xi32> to vector<8x128xf32>
    %cst_500 = arith.constant 0.899999976 : f32
    %1263 = vector.broadcast %cst_500 : f32 to vector<8x128xf32>
    %1264 = arith.mulf %1263, %1247 : vector<8x128xf32>
    %1265 = arith.addf %1264, %1258 : vector<8x128xf32>
    %cst_501 = arith.constant 1.000000e+00 : f32
    %1266 = vector.broadcast %cst_501 : f32 to vector<8x128xf32>
    %1267 = arith.mulf %1262, %1266 : vector<8x128xf32>
    %1268 = arith.subf %1265, %1267 : vector<8x128xf32>
    %cst_502 = arith.constant 1.000000e+00 : f32
    %1269 = vector.broadcast %cst_502 : f32 to vector<8x128xf32>
    %1270 = arith.cmpf ogt, %1268, %1269 : vector<8x128xf32>
    %1271 = arith.extui %1270 : vector<8x128xi1> to vector<8x128xi32>
    %1272 = arith.sitofp %1271 : vector<8x128xi32> to vector<8x128xf32>
    %c22 = arith.constant 22 : index
    %c0_503 = arith.constant 0 : index
    %c0_504 = arith.constant 0 : index
    %1273 = vector.load %arg8[%c22, %c0_503, %c0_504] : memref<25x8x128xf32, #tpu.memory_space<vmem>>, vector<1x8x128xf32>
    %1274 = vector.shape_cast %1273 : vector<1x8x128xf32> to vector<8x128xf32>
    %1275 = vector.shape_cast %1272 : vector<8x128xf32> to vector<1x8x128xf32>
    tpu.vector_store %arg8[%c22, %c0_503, %c0_504], %1275 {strides = array<i32>} : memref<25x8x128xf32, #tpu.memory_space<vmem>>, vector<1x8x128xf32>,
    %c22_505 = arith.constant 22 : index
    %c0_506 = arith.constant 0 : index
    %c0_507 = arith.constant 0 : index
    %1276 = vector.load %arg9[%c22_505, %c0_506, %c0_507] : memref<25x8x128xf32, #tpu.memory_space<vmem>>, vector<1x8x128xf32>
    %1277 = vector.shape_cast %1276 : vector<1x8x128xf32> to vector<8x128xf32>
    %1278 = vector.shape_cast %1268 : vector<8x128xf32> to vector<1x8x128xf32>
    tpu.vector_store %arg9[%c22_505, %c0_506, %c0_507], %1278 {strides = array<i32>} : memref<25x8x128xf32, #tpu.memory_space<vmem>>, vector<1x8x128xf32>,
    %1279 = vector.extract_strided_slice %794 {offsets = [184, 0], sizes = [8, 128], strides = [1, 1]} : vector<200x128xf32> to vector<8x128xf32>
    %cst_508 = arith.constant 1.000000e+00 : f32
    %1280 = vector.broadcast %cst_508 : f32 to vector<8x128xf32>
    %1281 = arith.cmpf ogt, %1268, %1280 : vector<8x128xf32>
    %1282 = arith.extui %1281 : vector<8x128xi1> to vector<8x128xi32>
    %1283 = arith.sitofp %1282 : vector<8x128xi32> to vector<8x128xf32>
    %cst_509 = arith.constant 0.899999976 : f32
    %1284 = vector.broadcast %cst_509 : f32 to vector<8x128xf32>
    %1285 = arith.mulf %1284, %1268 : vector<8x128xf32>
    %1286 = arith.addf %1285, %1279 : vector<8x128xf32>
    %cst_510 = arith.constant 1.000000e+00 : f32
    %1287 = vector.broadcast %cst_510 : f32 to vector<8x128xf32>
    %1288 = arith.mulf %1283, %1287 : vector<8x128xf32>
    %1289 = arith.subf %1286, %1288 : vector<8x128xf32>
    %cst_511 = arith.constant 1.000000e+00 : f32
    %1290 = vector.broadcast %cst_511 : f32 to vector<8x128xf32>
    %1291 = arith.cmpf ogt, %1289, %1290 : vector<8x128xf32>
    %1292 = arith.extui %1291 : vector<8x128xi1> to vector<8x128xi32>
    %1293 = arith.sitofp %1292 : vector<8x128xi32> to vector<8x128xf32>
    %c23 = arith.constant 23 : index
    %c0_512 = arith.constant 0 : index
    %c0_513 = arith.constant 0 : index
    %1294 = vector.load %arg8[%c23, %c0_512, %c0_513] : memref<25x8x128xf32, #tpu.memory_space<vmem>>, vector<1x8x128xf32>
    %1295 = vector.shape_cast %1294 : vector<1x8x128xf32> to vector<8x128xf32>
    %1296 = vector.shape_cast %1293 : vector<8x128xf32> to vector<1x8x128xf32>
    tpu.vector_store %arg8[%c23, %c0_512, %c0_513], %1296 {strides = array<i32>} : memref<25x8x128xf32, #tpu.memory_space<vmem>>, vector<1x8x128xf32>,
    %c23_514 = arith.constant 23 : index
    %c0_515 = arith.constant 0 : index
    %c0_516 = arith.constant 0 : index
    %1297 = vector.load %arg9[%c23_514, %c0_515, %c0_516] : memref<25x8x128xf32, #tpu.memory_space<vmem>>, vector<1x8x128xf32>
    %1298 = vector.shape_cast %1297 : vector<1x8x128xf32> to vector<8x128xf32>
    %1299 = vector.shape_cast %1289 : vector<8x128xf32> to vector<1x8x128xf32>
    tpu.vector_store %arg9[%c23_514, %c0_515, %c0_516], %1299 {strides = array<i32>} : memref<25x8x128xf32, #tpu.memory_space<vmem>>, vector<1x8x128xf32>,
    %1300 = vector.extract_strided_slice %794 {offsets = [192, 0], sizes = [8, 128], strides = [1, 1]} : vector<200x128xf32> to vector<8x128xf32>
    %cst_517 = arith.constant 1.000000e+00 : f32
    %1301 = vector.broadcast %cst_517 : f32 to vector<8x128xf32>
    %1302 = arith.cmpf ogt, %1289, %1301 : vector<8x128xf32>
    %1303 = arith.extui %1302 : vector<8x128xi1> to vector<8x128xi32>
    %1304 = arith.sitofp %1303 : vector<8x128xi32> to vector<8x128xf32>
    %cst_518 = arith.constant 0.899999976 : f32
    %1305 = vector.broadcast %cst_518 : f32 to vector<8x128xf32>
    %1306 = arith.mulf %1305, %1289 : vector<8x128xf32>
    %1307 = arith.addf %1306, %1300 : vector<8x128xf32>
    %cst_519 = arith.constant 1.000000e+00 : f32
    %1308 = vector.broadcast %cst_519 : f32 to vector<8x128xf32>
    %1309 = arith.mulf %1304, %1308 : vector<8x128xf32>
    %1310 = arith.subf %1307, %1309 : vector<8x128xf32>
    %cst_520 = arith.constant 1.000000e+00 : f32
    %1311 = vector.broadcast %cst_520 : f32 to vector<8x128xf32>
    %1312 = arith.cmpf ogt, %1310, %1311 : vector<8x128xf32>
    %1313 = arith.extui %1312 : vector<8x128xi1> to vector<8x128xi32>
    %1314 = arith.sitofp %1313 : vector<8x128xi32> to vector<8x128xf32>
    %c24_521 = arith.constant 24 : index
    %c0_522 = arith.constant 0 : index
    %c0_523 = arith.constant 0 : index
    %1315 = vector.load %arg8[%c24_521, %c0_522, %c0_523] : memref<25x8x128xf32, #tpu.memory_space<vmem>>, vector<1x8x128xf32>
    %1316 = vector.shape_cast %1315 : vector<1x8x128xf32> to vector<8x128xf32>
    %1317 = vector.shape_cast %1314 : vector<8x128xf32> to vector<1x8x128xf32>
    tpu.vector_store %arg8[%c24_521, %c0_522, %c0_523], %1317 {strides = array<i32>} : memref<25x8x128xf32, #tpu.memory_space<vmem>>, vector<1x8x128xf32>,
    %c24_524 = arith.constant 24 : index
    %c0_525 = arith.constant 0 : index
    %c0_526 = arith.constant 0 : index
    %1318 = vector.load %arg9[%c24_524, %c0_525, %c0_526] : memref<25x8x128xf32, #tpu.memory_space<vmem>>, vector<1x8x128xf32>
    %1319 = vector.shape_cast %1318 : vector<1x8x128xf32> to vector<8x128xf32>
    %1320 = vector.shape_cast %1310 : vector<8x128xf32> to vector<1x8x128xf32>
    tpu.vector_store %arg9[%c24_524, %c0_525, %c0_526], %1320 {strides = array<i32>} : memref<25x8x128xf32, #tpu.memory_space<vmem>>, vector<1x8x128xf32>,
    return
  }
  func.func @transform_0(%arg0: i32) -> (i32, i32) {
    %c0_i32 = arith.constant 0 : i32
    %c0_i32_0 = arith.constant 0 : i32
    return %arg0, %c0_i32 : i32, i32
  }
  func.func @transform_1(%arg0: i32) -> (i32, i32) {
    %c0_i32 = arith.constant 0 : i32
    %c0_i32_0 = arith.constant 0 : i32
    %c0_i32_1 = arith.constant 0 : i32
    return %c0_i32, %c0_i32_0 : i32, i32
  }
  func.func @transform_2(%arg0: i32) -> (i32, i32) {
    %c0_i32 = arith.constant 0 : i32
    %c0_i32_0 = arith.constant 0 : i32
    %c0_i32_1 = arith.constant 0 : i32
    return %c0_i32, %c0_i32_0 : i32, i32
  }
  func.func @transform_3(%arg0: i32) -> (i32, i32) {
    %c0_i32 = arith.constant 0 : i32
    %c0_i32_0 = arith.constant 0 : i32
    %c0_i32_1 = arith.constant 0 : i32
    return %c0_i32, %c0_i32_0 : i32, i32
  }
  func.func @transform_4(%arg0: i32) -> (i32, i32) {
    %c0_i32 = arith.constant 0 : i32
    %c0_i32_0 = arith.constant 0 : i32
    %c0_i32_1 = arith.constant 0 : i32
    return %c0_i32, %c0_i32_0 : i32, i32
  }
  func.func @transform_5(%arg0: i32) -> (i32, i32) {
    %c0_i32 = arith.constant 0 : i32
    %c0_i32_0 = arith.constant 0 : i32
    %c0_i32_1 = arith.constant 0 : i32
    return %c0_i32, %c0_i32_0 : i32, i32
  }
  func.func @transform_6(%arg0: i32) -> (i32, i32) {
    %c0_i32 = arith.constant 0 : i32
    %c0_i32_0 = arith.constant 0 : i32
    %c0_i32_1 = arith.constant 0 : i32
    return %c0_i32, %c0_i32_0 : i32, i32
  }
  func.func @transform_7(%arg0: i32) -> (i32, i32, i32) {
    %c0_i32 = arith.constant 0 : i32
    %c0_i32_0 = arith.constant 0 : i32
    %c0_i32_1 = arith.constant 0 : i32
    return %c0_i32, %arg0, %c0_i32_0 : i32, i32, i32
  }
  func.func @transform_8(%arg0: i32) -> (i32, i32, i32) {
    %c0_i32 = arith.constant 0 : i32
    %c0_i32_0 = arith.constant 0 : i32
    %c0_i32_1 = arith.constant 0 : i32
    return %c0_i32, %arg0, %c0_i32_0 : i32, i32, i32
  }
}

</mosaic_0001>

<bundles_post_ra>
// kernel: tpu_custom_call.1
= control target key start
LH: loop header
LB: loop body
LE: loop exit
PB: predicated region body
PF: predicated region fallthrough
CT: control target
= control target key end

     0   :  { %14 = vsyncpa [#allocation5], 0  ;;  %s2400_s0 = inlined_call_operand.hbm [shape: f32[8,16], index: 0, kind: input, shape index: {}]   ;;  %s2401_s1 = inlined_call_operand.hbm [shape: f32[16,128], index: 1, kind: input, shape index: {}]   ;;  %s2402_s2 = inlined_call_operand.vmem [shape: f32[1,128], index: 2, kind: input, shape index: {}]   ;;  %s2403_s3 = inlined_call_operand.hbm [shape: f32[128,128], index: 3, kind: input, shape index: {}]   ;;  %s2404_s4 = inlined_call_operand.vmem [shape: f32[1,128], index: 4, kind: input, shape index: {}]   ;;  %s2405_s5 = inlined_call_operand.hbm [shape: f32[128,128], index: 5, kind: input, shape index: {}]   ;;  %s2406_s6 = inlined_call_operand.vmem [shape: f32[1,128], index: 6, kind: input, shape index: {}]   ;;  %s2407_s7 = inlined_call_operand.hbm [shape: f32[25,8,128], index: 7, kind: output, shape index: {0}]   ;;  %s2408_s8 = inlined_call_operand.hbm [shape: f32[25,8,128], index: 8, kind: output, shape index: {1}]  }
   0x1   :  { %15 = vsyncpa [#allocation8], 0 }
   0x2   :  { %16 = vsyncpa [#allocation11], 0 }
   0x3   :  { %17 = vsyncpa [#allocation6], 0 }
   0x4   :  { %18 = vsyncpa [#allocation14], 0  ;;  %s1916_s27 = smov [#allocation7]   ;;  %s1774_s9 = scalar_lea.hbm %s2401_s1, 256 }
   0x5   :  { %s34_s28 = sshll.u32 %s1916_s27, 4  ;;  %p1775_p0 = scmp.ne.s32.totalorder %s2401_s1, %s1774_s9  ;;  %s35_s28 = int_to_ptr.vmem [resolvable:$true] %s34_s28 }
   0x6   :  { %p1778_p1 = scmp.lt.u32.totalorder %s1774_s9, %s2401_s1 }
   0x8   :  { %p1780_p2 = pnand %p1778_p1, %p1775_p0 }
   0xa   :  { %1783 = shalt.err (!%p1780_p2)
}
   0xb   :  { %s1784_s14 = scalar_lea.vmem %s35_s28, 256  ;;  %p1789_p4 = scmp.lt.s32.totalorder %s35_s28, %s35_s28 }
   0xc   :  { %p1785_p3 = scmp.ne.s32.totalorder %s35_s28, %s1784_s14  ;;  %p1790_p5 = scmp.lt.s32.totalorder %s1784_s14, %s1784_s14 }
   0xe   :  { %p1791_p6 = por %p1790_p5, %p1789_p4 }
  0x10   :  { %p1792_p7 = pnand %p1791_p6, %p1785_p3 }
  0x12   :  { %1795 = shalt.err (!%p1792_p7)
}
  0x13   :  { %s1917_s15 = smov 128   ;;  %s1918_s16 = smov 8  }
  0x14   :  { %40 = dma.hbm_to_vmem [thread:$0]  %s2401_s1, 256, %s35_s28, [#allocation8], %s1917_s15, %s1917_s15, %s1918_s16  }
  0x15   :  { %s1919_s19 = smov [#allocation4]   ;;  %s1920_s21 = smov [#allocation9]  }
  0x16   :  { %s25_s20 = sshll.u32 %s1919_s19, 4  ;;  %s48_s22 = sshll.u32 %s1920_s21, 4  ;;  %s26_s20 = int_to_ptr.vmem [resolvable:$true] %s25_s20  ;;  %s49_s22 = int_to_ptr.vmem [resolvable:$true] %s48_s22 }
  0x17   :  { %s1796_s25 = scalar_lea.hbm %s2400_s0, 128 }
  0x18   :  { %p1797_p8 = scmp.ne.s32.totalorder %s2400_s0, %s1796_s25  ;;  %p1800_p9 = scmp.lt.u32.totalorder %s1796_s25, %s2400_s0 }
  0x1a   :  { %p1802_p10 = pnand %p1800_p9, %p1797_p8 }
  0x1c   :  { %1805 = shalt.err (!%p1802_p10)
}
  0x1d   :  { %s1806_s1 = scalar_lea.vmem %s26_s20, 128  ;;  %p1811_p12 = scmp.lt.s32.totalorder %s26_s20, %s26_s20 }
  0x1e   :  { %p1807_p11 = scmp.ne.s32.totalorder %s26_s20, %s1806_s1  ;;  %p1812_p13 = scmp.lt.s32.totalorder %s1806_s1, %s1806_s1 }
  0x20   :  { %p1813_p0 = por %p1812_p13, %p1811_p12 }
  0x22   :  { %p1814_p1 = pnand %p1813_p0, %p1807_p11 }
  0x24   :  { %1817 = shalt.err (!%p1814_p1)
}
  0x25   :  { %28 = dma.hbm_to_vmem [thread:$0]  %s2400_s0, 128, %s26_s20, [#allocation5]  }
  0x26   :  { %s1818_s12 = scalar_lea.hbm %s2403_s3, 2048 }
  0x27   :  { %p1819_p2 = scmp.ne.s32.totalorder %s2403_s3, %s1818_s12  ;;  %p1822_p3 = scmp.lt.u32.totalorder %s1818_s12, %s2403_s3 }
  0x29   :  { %p1824_p4 = pnand %p1822_p3, %p1819_p2 }
  0x2b   :  { %1827 = shalt.err (!%p1824_p4)
}
  0x2c   :  { %s1828_s19 = scalar_lea.vmem %s49_s22, 2048  ;;  %p1833_p6 = scmp.lt.s32.totalorder %s49_s22, %s49_s22 }
  0x2d   :  { %p1829_p5 = scmp.ne.s32.totalorder %s49_s22, %s1828_s19  ;;  %p1834_p7 = scmp.lt.s32.totalorder %s1828_s19, %s1828_s19 }
  0x2f   :  { %p1835_p8 = por %p1834_p7, %p1833_p6 }
  0x31   :  { %p1836_p9 = pnand %p1835_p8, %p1829_p5 }
  0x33   :  { %1839 = shalt.err (!%p1836_p9)
}
  0x34   :  { %54 = dma.hbm_to_vmem [thread:$0]  %s2403_s3, 2048, %s49_s22, [#allocation8], %s1917_s15, %s1917_s15, %s1918_s16  }
  0x35   :  { %s1921_s21 = smov [#allocation10]   ;;  %s1840_s26 = scalar_lea.hbm %s2405_s5, 2048 }
  0x36   :  { %s62_s23 = sshll.u32 %s1921_s21, 4  ;;  %p1841_p10 = scmp.ne.s32.totalorder %s2405_s5, %s1840_s26  ;;  %s63_s23 = int_to_ptr.vmem [resolvable:$true] %s62_s23 }
  0x37   :  { %p1844_p11 = scmp.lt.u32.totalorder %s1840_s26, %s2405_s5 }
  0x39   :  { %p1846_p12 = pnand %p1844_p11, %p1841_p10 }
  0x3b   :  { %1849 = shalt.err (!%p1846_p12)
}
  0x3c   :  { %s1850_s28 = scalar_lea.vmem %s63_s23, 2048  ;;  %p1855_p0 = scmp.lt.s32.totalorder %s63_s23, %s63_s23 }
  0x3d   :  { %p1851_p13 = scmp.ne.s32.totalorder %s63_s23, %s1850_s28  ;;  %p1856_p1 = scmp.lt.s32.totalorder %s1850_s28, %s1850_s28 }
  0x3f   :  { %p1857_p2 = por %p1856_p1, %p1855_p0 }
  0x41   :  { %p1858_p3 = pnand %p1857_p2, %p1851_p13 }
  0x43   :  { %1861 = shalt.err (!%p1858_p3)
}
  0x44   :  { %68 = dma.hbm_to_vmem [thread:$0]  %s2405_s5, 2048, %s63_s23, [#allocation11], %s1917_s15, %s1917_s15, %s1918_s16  }
  0x45   :  { %1906 = dma.done.wait [#allocation5], 128  }
  0x46   :  { %1907 = vsyncadd [#allocation5], 4294967168 }
  0x47   :  { %1908 = dma.done.wait [#allocation8], 2304  }
  0x48   :  { %1909 = vsyncadd [#allocation8], 4294964992 }
  0x49   :  { %1910 = dma.done.wait [#allocation11], 2048  }
  0x4a   :  { %1911 = vsyncadd [#allocation11], 4294965248  ;;  %v1922_v0 = vmov 0.0|0.0   ;;  %vm1923_vm0 = vmmov 0   ;;  %v1924_v1 = vmov 0.0   ;;  %v84_v2 = vld [vmem:[#allocation7] sm:$0xff] }
  0x4b   :  { %1711 = vmatprep.subr.bf16.mxu0 %v1922_v0  ;;  %1494 = vmatprep.mubr.msk.f32.mxu0 %vm1923_vm0, %v1924_v1  ;;  %v85_v3 = vld [vmem:[#allocation7 + $0x8] sm:$0xff]  ;;  %v369_v5 = vld [vmem:[#allocation9] sm:$0xff]  ;;  %v370_v6 = vld [vmem:[#allocation9 + $0x8] sm:$0xff]  ;;  %vm93_vm1 = vcmask 130048   ;;  %v1925_v35 = vmov 1.0   ;;  %s1927_s13 = smov [#allocation12]  }
  0x4c   :  { %1714 = vmatprep.subr.bf16.mxu1 %v1922_v0  ;;  %1529 = vmatprep.mubr.msk.f32.mxu1 %vm1923_vm0, %v1924_v1  ;;  %v1712_v4 = vpack.c.bf16 %v85_v3, %v84_v2  ;;  %v371_v7 = vld [vmem:[#allocation9 + $0x10] sm:$0xff]  ;;  %v1715_v8 = vpack.c.bf16 %v370_v6, %v369_v5  ;;  %v372_v9 = vld [vmem:[#allocation9 + $0x18] sm:$0xff]  ;;  %v83_v10 = vld [vmem:[#allocation4] sm:$0xff]  ;;  %s1246_s14 = sshll.u32 %s1927_s13, 4  ;;  %s2362_s14 = int_to_ptr.vmem [resolvable:$true] %s1246_s14 }
  0x4d   :  { %v1718_v11 = vpack.c.bf16 %v372_v9, %v371_v7  ;;  %v373_v12 = vld [vmem:[#allocation9 + $0x20] sm:$0xff]  ;;  %v374_v13 = vld [vmem:[#allocation9 + $0x28] sm:$0xff]  ;;  %v375_v15 = vld [vmem:[#allocation9 + $0x30] sm:$0xff] }
  0x4e   :  { %1713 = vmatpush3.bf16.msra.mxu0 %v1712_v4  ;;  %1716 = vmatpush3.bf16.msra.mxu1 %v1715_v8  ;;  %v1721_v14 = vpack.c.bf16 %v374_v13, %v373_v12  ;;  %v376_v16 = vld [vmem:[#allocation9 + $0x38] sm:$0xff]  ;;  %v377_v18 = vld [vmem:[#allocation9 + $0x40] sm:$0xff]  ;;  %v378_v19 = vld [vmem:[#allocation9 + $0x48] sm:$0xff] }
  0x4f   :  { %1738 = vmatprep.subr.bf16.mxu0 %v1922_v0  ;;  %1717 = vmatprep.subr.bf16.mxu1 %v1922_v0  ;;  %v1724_v17 = vpack.c.bf16 %v376_v16, %v375_v15  ;;  %v1727_v20 = vpack.c.bf16 %v378_v19, %v377_v18  ;;  %v379_v21 = vld [vmem:[#allocation9 + $0x50] sm:$0xff]  ;;  %v380_v22 = vld [vmem:[#allocation9 + $0x58] sm:$0xff]  ;;  %v381_v24 = vld [vmem:[#allocation9 + $0x60] sm:$0xff] }
  0x50   :  { %v1730_v23 = vpack.c.bf16 %v380_v22, %v379_v21  ;;  %v382_v25 = vld [vmem:[#allocation9 + $0x68] sm:$0xff]  ;;  %v383_v27 = vld [vmem:[#allocation9 + $0x70] sm:$0xff]  ;;  %v384_v28 = vld [vmem:[#allocation9 + $0x78] sm:$0xff] }
  0x51   :  { %1495 = vmatmul.mubr.msk.f32.vlgmr.msra.gmra.mrb[0].mxu0 %vm93_vm1, %v83_v10  ;;  %v1733_v26 = vpack.c.bf16 %v382_v25, %v381_v24  ;;  %v1736_v29 = vpack.c.bf16 %v384_v28, %v383_v27  ;;  %v1276_v30 = vld [vmem:[%s2402_s2] ss:$0 sm:$0xff]  ;;  %v781_v47 = vld [vmem:[#allocation10] sm:$0xff]  ;;  %v783_v49 = vld [vmem:[#allocation10 + $0x10] sm:$0xff] }
  0x52   :  { %1636 = vmatprep.mubr.msk.f32.mxu0 %vm1923_vm0, %v1924_v1  ;;  %1719 = vmatpush3.bf16.msra.mxu1 %v1718_v11  ;;  %v782_v48 = vld [vmem:[#allocation10 + $0x8] sm:$0xff]  ;;  %v784_v52 = vld [vmem:[#allocation10 + $0x18] sm:$0xff]  ;;  %v785_v56 = vld [vmem:[#allocation10 + $0x20] sm:$0xff] }
  0x53   :  { %1720 = vmatprep.subr.bf16.mxu1 %v1922_v0  ;;  %v1739_v51 = vpack.c.bf16 %v782_v48, %v781_v47  ;;  %v1742_v54 = vpack.c.bf16 %v784_v52, %v783_v49  ;;  %v786_v57 = vld [vmem:[#allocation10 + $0x28] sm:$0xff]  ;;  %v787_v61 = vld [vmem:[#allocation10 + $0x30] sm:$0xff]  ;;  %v788_v62 = vld [vmem:[#allocation10 + $0x38] sm:$0xff] }
  0x54   :  { %v1745_v60 = vpack.c.bf16 %v786_v57, %v785_v56  ;;  %v1748_v4 = vpack.c.bf16 %v788_v62, %v787_v61  ;;  %v789_v5 = vld [vmem:[#allocation10 + $0x40] sm:$0xff]  ;;  %v790_v6 = vld [vmem:[#allocation10 + $0x48] sm:$0xff]  ;;  %v791_v11 = vld [vmem:[#allocation10 + $0x50] sm:$0xff] }
  0x55   :  { %1740 = vmatpush3.bf16.msra.mxu0 %v1739_v51  ;;  %v1751_v9 = vpack.c.bf16 %v790_v6, %v789_v5  ;;  %v792_v12 = vld [vmem:[#allocation10 + $0x58] sm:$0xff]  ;;  %v793_v16 = vld [vmem:[#allocation10 + $0x60] sm:$0xff]  ;;  %v795_v51 = vld [vmem:[#allocation10 + $0x70] sm:$0xff] }
  0x56   :  { %1722 = vmatpush3.bf16.msra.mxu1 %v1721_v14  ;;  %1741 = vmatprep.subr.bf16.mxu0 %v1922_v0  ;;  %v1754_v15 = vpack.c.bf16 %v792_v12, %v791_v11  ;;  %v796_v52 = vld [vmem:[#allocation10 + $0x78] sm:$0xff] }
  0x57   :  { %1723 = vmatprep.subr.bf16.mxu1 %v1922_v0 }
  0x59   :  { %1743 = vmatpush3.bf16.msra.mxu0 %v1742_v54 }
  0x5a   :  { %1725 = vmatpush3.bf16.msra.mxu1 %v1724_v17  ;;  %1744 = vmatprep.subr.bf16.mxu0 %v1922_v0  ;;  %v794_v17 = vld [vmem:[#allocation10 + $0x68] sm:$0xff] }
  0x5b   :  { %1726 = vmatprep.subr.bf16.mxu1 %v1922_v0  ;;  %v1757_v21 = vpack.c.bf16 %v794_v17, %v793_v16 }
  0x5d   :  { %1746 = vmatpush3.bf16.msra.mxu0 %v1745_v60 }
  0x5e   :  { %1728 = vmatpush3.bf16.msra.mxu1 %v1727_v20  ;;  %1747 = vmatprep.subr.bf16.mxu0 %v1922_v0 }
  0x5f   :  { %1729 = vmatprep.subr.bf16.mxu1 %v1922_v0 }
  0x61   :  { %1749 = vmatpush3.bf16.msra.mxu0 %v1748_v4 }
  0x62   :  { %1731 = vmatpush3.bf16.msra.mxu1 %v1730_v23  ;;  %1750 = vmatprep.subr.bf16.mxu0 %v1922_v0 }
  0x63   :  { %1732 = vmatprep.subr.bf16.mxu1 %v1922_v0 }
  0x65   :  { %1752 = vmatpush3.bf16.msra.mxu0 %v1751_v9 }
  0x66   :  { %1734 = vmatpush3.bf16.msra.mxu1 %v1733_v26  ;;  %1753 = vmatprep.subr.bf16.mxu0 %v1922_v0 }
  0x67   :  { %1735 = vmatprep.subr.bf16.mxu1 %v1922_v0 }
  0x69   :  { %1755 = vmatpush3.bf16.msra.mxu0 %v1754_v15 }
  0x6a   :  { %1737 = vmatpush3.bf16.msra.mxu1 %v1736_v29  ;;  %1756 = vmatprep.subr.bf16.mxu0 %v1922_v0 }
  0x6d   :  { %1758 = vmatpush3.bf16.msra.mxu0 %v1757_v21 }
  0x6e   :  { %1759 = vmatprep.subr.bf16.mxu0 %v1922_v0 }
 0x124   :  { %v163_v31 = vpop.f32.mrb[0].mxu0 }
 0x125   :  { %v2049_v32 = vadd.f32 %v1276_v30, %v163_v31  ;;  %v1496_v33 = vpop.f32.mrb[1].mxu0 }
 0x127   :  { %vm172_vm2 = vcmp.gt.f32.partialorder %v2049_v32, 1.0  ;;  %v176_v34 = vmul.f32 0.9, %v2049_v32 }
 0x128   :  { %1530 = vmatmul.mubr.msk.f32.vlgmr.msra.gmra.mrb[0].mxu1 %vm172_vm2, %v1925_v35  ;;  %v1278_v37 = vsel %vm172_vm2, 1.0, %v1924_v1 }
 0x129   :  { %1532 = vmatprep.mubr.msk.f32.mxu1 %vm1923_vm0, %v1924_v1  ;;  %v177_v36 = vadd.f32 %v176_v34, %v2049_v32 }
 0x12b   :  { %v178_v38 = vsub.f32 %v177_v36, %v1278_v37 }
 0x12d   :  { %vm179_vm3 = vcmp.gt.f32.partialorder %v178_v38, 1.0  ;;  %v183_v39 = vmul.f32 0.9, %v178_v38 }
 0x12e   :  { %1533 = vmatmul.mubr.msk.f32.gmra.mrb[2].mxu1 %vm179_vm3, %v1925_v35  ;;  %v1279_v41 = vsel %vm179_vm3, 1.0, %v1924_v1 }
 0x12f   :  { %1535 = vmatprep.mubr.msk.f32.mxu1 %vm1923_vm0, %v1924_v1  ;;  %v184_v40 = vadd.f32 %v183_v39, %v2049_v32 }
 0x131   :  { %v185_v42 = vsub.f32 %v184_v40, %v1279_v41 }
 0x133   :  { %vm186_vm4 = vcmp.gt.f32.partialorder %v185_v42, 1.0  ;;  %v190_v43 = vmul.f32 0.9, %v185_v42 }
 0x134   :  { %1536 = vmatmul.mubr.msk.f32.gmra.mrb[4].mxu1 %vm186_vm4, %v1925_v35  ;;  %v1280_v45 = vsel %vm186_vm4, 1.0, %v1924_v1 }
 0x135   :  { %1538 = vmatprep.mubr.msk.f32.mxu1 %vm1923_vm0, %v1924_v1  ;;  %v191_v44 = vadd.f32 %v190_v43, %v2049_v32 }
 0x137   :  { %v192_v46 = vsub.f32 %v191_v44, %v1280_v45 }
 0x139   :  { %vm193_vm5 = vcmp.gt.f32.partialorder %v192_v46, 1.0  ;;  %v197_v50 = vmul.f32 0.9, %v192_v46 }
 0x13a   :  { %1539 = vmatmul.mubr.msk.f32.gmra.mrb[6].mxu1 %vm193_vm5, %v1925_v35  ;;  %v1281_v55 = vsel %vm193_vm5, 1.0, %v1924_v1 }
 0x13b   :  { %1541 = vmatprep.mubr.msk.f32.mxu1 %vm1923_vm0, %v1924_v1  ;;  %v198_v53 = vadd.f32 %v197_v50, %v2049_v32 }
 0x13d   :  { %v199_v58 = vsub.f32 %v198_v53, %v1281_v55  ;;  %v1760_v53 = vpack.c.bf16 %v796_v52, %v795_v51 }
 0x13f   :  { %vm200_vm6 = vcmp.gt.f32.partialorder %v199_v58, 1.0  ;;  %v204_v59 = vmul.f32 0.9, %v199_v58  ;;  %1761 = vmatpush3.bf16.msra.mxu0 %v1760_v53 }
 0x140   :  { %1542 = vmatmul.mubr.msk.f32.gmra.mrb[8].mxu1 %vm200_vm6, %v1925_v35  ;;  %v1282_v2 = vsel %vm200_vm6, 1.0, %v1924_v1 }
 0x141   :  { %1544 = vmatprep.mubr.msk.f32.mxu1 %vm1923_vm0, %v1924_v1  ;;  %v205_v63 = vadd.f32 %v204_v59, %v2049_v32 }
 0x143   :  { %v206_v3 = vsub.f32 %v205_v63, %v1282_v2 }
 0x145   :  { %vm207_vm7 = vcmp.gt.f32.partialorder %v206_v3, 1.0  ;;  %v211_v7 = vmul.f32 0.9, %v206_v3 }
 0x146   :  { %1545 = vmatmul.mubr.msk.f32.gmra.mrb[10].mxu1 %vm207_vm7, %v1925_v35  ;;  %v1283_v10 = vsel %vm207_vm7, 1.0, %v1924_v1 }
 0x147   :  { %1547 = vmatprep.mubr.msk.f32.mxu1 %vm1923_vm0, %v1924_v1  ;;  %v212_v8 = vadd.f32 %v211_v7, %v2049_v32 }
 0x149   :  { %v213_v13 = vsub.f32 %v212_v8, %v1283_v10 }
 0x14b   :  { %vm214_vm8 = vcmp.gt.f32.partialorder %v213_v13, 1.0  ;;  %v218_v14 = vmul.f32 0.9, %v213_v13 }
 0x14c   :  { %1548 = vmatmul.mubr.msk.f32.gmra.mrb[12].mxu1 %vm214_vm8, %v1925_v35  ;;  %v1284_v19 = vsel %vm214_vm8, 1.0, %v1924_v1 }
 0x14d   :  { %1550 = vmatprep.mubr.msk.f32.mxu1 %vm1923_vm0, %v1924_v1  ;;  %v219_v18 = vadd.f32 %v218_v14, %v2049_v32 }
 0x14f   :  { %v220_v20 = vsub.f32 %v219_v18, %v1284_v19 }
 0x151   :  { %vm221_vm9 = vcmp.gt.f32.partialorder %v220_v20, 1.0  ;;  %v225_v22 = vmul.f32 0.9, %v220_v20 }
 0x152   :  { %1551 = vmatmul.mubr.msk.f32.gmra.mrb[14].mxu1 %vm221_vm9, %v1925_v35  ;;  %v1285_v24 = vsel %vm221_vm9, 1.0, %v1924_v1 }
 0x153   :  { %1553 = vmatprep.mubr.msk.f32.mxu1 %vm1923_vm0, %v1924_v1  ;;  %v226_v23 = vadd.f32 %v225_v22, %v2049_v32 }
 0x155   :  { %v227_v25 = vsub.f32 %v226_v23, %v1285_v24 }
 0x157   :  { %vm228_vm10 = vcmp.gt.f32.partialorder %v227_v25, 1.0  ;;  %v232_v26 = vmul.f32 0.9, %v227_v25 }
 0x158   :  { %1554 = vmatmul.mubr.msk.f32.gmra.mrb[16].mxu1 %vm228_vm10, %v1925_v35  ;;  %v1286_v28 = vsel %vm228_vm10, 1.0, %v1924_v1 }
 0x159   :  { %1556 = vmatprep.mubr.msk.f32.mxu1 %vm1923_vm0, %v1924_v1  ;;  %v233_v27 = vadd.f32 %v232_v26, %v2049_v32 }
 0x15b   :  { %v234_v29 = vsub.f32 %v233_v27, %v1286_v28 }
 0x15d   :  { %vm235_vm11 = vcmp.gt.f32.partialorder %v234_v29, 1.0  ;;  %v239_v30 = vmul.f32 0.9, %v234_v29 }
 0x15e   :  { %1557 = vmatmul.mubr.msk.f32.gmra.mrb[18].mxu1 %vm235_vm11, %v1925_v35  ;;  %v1287_v31 = vsel %vm235_vm11, 1.0, %v1924_v1 }
 0x15f   :  { %1559 = vmatprep.mubr.msk.f32.mxu1 %vm1923_vm0, %v1924_v1  ;;  %v240_v0 = vadd.f32 %v239_v30, %v2049_v32 }
 0x161   :  { %v241_v33 = vsub.f32 %v240_v0, %v1287_v31  ;;  %v2184_v31 = vld [vmem:[%s2404_s4] ss:$0 sm:$0xff] }
 0x163   :  { %vm242_vm12 = vcmp.gt.f32.partialorder %v241_v33, 1.0  ;;  %v246_v34 = vmul.f32 0.9, %v241_v33 }
 0x164   :  { %1560 = vmatmul.mubr.msk.f32.gmra.mrb[20].mxu1 %vm242_vm12, %v1925_v35  ;;  %v1288_v37 = vsel %vm242_vm12, 1.0, %v1924_v1 }
 0x165   :  { %1562 = vmatprep.mubr.msk.f32.mxu1 %vm1923_vm0, %v1924_v1  ;;  %v247_v36 = vadd.f32 %v246_v34, %v2049_v32 }
 0x167   :  { %v248_v38 = vsub.f32 %v247_v36, %v1288_v37 }
 0x169   :  { %vm249_vm13 = vcmp.gt.f32.partialorder %v248_v38, 1.0  ;;  %v253_v39 = vmul.f32 0.9, %v248_v38 }
 0x16a   :  { %1563 = vmatmul.mubr.msk.f32.gmra.mrb[22].mxu1 %vm249_vm13, %v1925_v35  ;;  %v1289_v41 = vsel %vm249_vm13, 1.0, %v1924_v1 }
 0x16b   :  { %1565 = vmatprep.mubr.msk.f32.mxu1 %vm1923_vm0, %v1924_v1  ;;  %v254_v40 = vadd.f32 %v253_v39, %v2049_v32 }
 0x16d   :  { %v255_v42 = vsub.f32 %v254_v40, %v1289_v41 }
 0x16f   :  { %vm256_vm14 = vcmp.gt.f32.partialorder %v255_v42, 1.0  ;;  %v260_v43 = vmul.f32 0.9, %v255_v42 }
 0x170   :  { %1566 = vmatmul.mubr.msk.f32.gmra.mrb[24].mxu1 %vm256_vm14, %v1925_v35  ;;  %v1290_v45 = vsel %vm256_vm14, 1.0, %v1924_v1 }
 0x171   :  { %1568 = vmatprep.mubr.msk.f32.mxu1 %vm1923_vm0, %v1924_v1  ;;  %v261_v44 = vadd.f32 %v260_v43, %v2049_v32 }
 0x173   :  { %v262_v46 = vsub.f32 %v261_v44, %v1290_v45 }
 0x175   :  { %vm263_vm15 = vcmp.gt.f32.partialorder %v262_v46, 1.0  ;;  %v267_v47 = vmul.f32 0.9, %v262_v46 }
 0x176   :  { %1569 = vmatmul.mubr.msk.f32.gmra.mrb[26].mxu1 %vm263_vm15, %v1925_v35  ;;  %v1291_v49 = vsel %vm263_vm15, 1.0, %v1924_v1 }
 0x177   :  { %1571 = vmatprep.mubr.msk.f32.mxu1 %vm1923_vm0, %v1924_v1  ;;  %v268_v48 = vadd.f32 %v267_v47, %v2049_v32 }
 0x179   :  { %v269_v50 = vsub.f32 %v268_v48, %v1291_v49 }
 0x17b   :  { %vm270_vm1 = vcmp.gt.f32.partialorder %v269_v50, 1.0  ;;  %v274_v54 = vmul.f32 0.9, %v269_v50 }
 0x17c   :  { %1572 = vmatmul.mubr.msk.f32.gmra.mrb[28].mxu1 %vm270_vm1, %v1925_v35  ;;  %v1292_v56 = vsel %vm270_vm1, 1.0, %v1924_v1 }
 0x17d   :  { %1574 = vmatprep.mubr.msk.f32.mxu1 %vm1923_vm0, %v1924_v1  ;;  %v275_v55 = vadd.f32 %v274_v54, %v2049_v32 }
 0x17f   :  { %v276_v57 = vsub.f32 %v275_v55, %v1292_v56 }
 0x181   :  { %vm277_vm2 = vcmp.gt.f32.partialorder %v276_v57, 1.0  ;;  %v281_v58 = vmul.f32 0.9, %v276_v57 }
 0x182   :  { %1575 = vmatmul.mubr.msk.f32.gmra.mrb[30].mxu1 %vm277_vm2, %v1925_v35  ;;  %v1293_v60 = vsel %vm277_vm2, 1.0, %v1924_v1 }
 0x183   :  { %1577 = vmatprep.mubr.msk.f32.mxu1 %vm1923_vm0, %v1924_v1  ;;  %v282_v59 = vadd.f32 %v281_v58, %v2049_v32 }
 0x185   :  { %v283_v61 = vsub.f32 %v282_v59, %v1293_v60 }
 0x187   :  { %vm284_vm3 = vcmp.gt.f32.partialorder %v283_v61, 1.0  ;;  %v288_v62 = vmul.f32 0.9, %v283_v61 }
 0x188   :  { %1578 = vmatmul.mubr.msk.f32.gmra.mrb[32].mxu1 %vm284_vm3, %v1925_v35  ;;  %v1294_v2 = vsel %vm284_vm3, 1.0, %v1924_v1 }
 0x189   :  { %1580 = vmatprep.mubr.msk.f32.mxu1 %vm1923_vm0, %v1924_v1  ;;  %v289_v63 = vadd.f32 %v288_v62, %v2049_v32 }
 0x18b   :  { %v290_v3 = vsub.f32 %v289_v63, %v1294_v2 }
 0x18d   :  { %vm291_vm4 = vcmp.gt.f32.partialorder %v290_v3, 1.0  ;;  %v295_v4 = vmul.f32 0.9, %v290_v3 }
 0x18e   :  { %1581 = vmatmul.mubr.msk.f32.gmra.mrb[34].mxu1 %vm291_vm4, %v1925_v35  ;;  %v1295_v6 = vsel %vm291_vm4, 1.0, %v1924_v1 }
 0x18f   :  { %1583 = vmatprep.mubr.msk.f32.mxu1 %vm1923_vm0, %v1924_v1  ;;  %v296_v5 = vadd.f32 %v295_v4, %v2049_v32 }
 0x191   :  { %v297_v7 = vsub.f32 %v296_v5, %v1295_v6 }
 0x193   :  { %vm298_vm5 = vcmp.gt.f32.partialorder %v297_v7, 1.0  ;;  %v302_v8 = vmul.f32 0.9, %v297_v7 }
 0x194   :  { %1584 = vmatmul.mubr.msk.f32.gmra.mrb[36].mxu1 %vm298_vm5, %v1925_v35  ;;  %v1296_v10 = vsel %vm298_vm5, 1.0, %v1924_v1 }
 0x195   :  { %1586 = vmatprep.mubr.msk.f32.mxu1 %vm1923_vm0, %v1924_v1  ;;  %v303_v9 = vadd.f32 %v302_v8, %v2049_v32 }
 0x197   :  { %v304_v11 = vsub.f32 %v303_v9, %v1296_v10 }
 0x199   :  { %vm305_vm6 = vcmp.gt.f32.partialorder %v304_v11, 1.0  ;;  %v309_v12 = vmul.f32 0.9, %v304_v11 }
 0x19a   :  { %1587 = vmatmul.mubr.msk.f32.gmra.mrb[38].mxu1 %vm305_vm6, %v1925_v35  ;;  %v1297_v14 = vsel %vm305_vm6, 1.0, %v1924_v1 }
 0x19b   :  { %1589 = vmatprep.mubr.msk.f32.mxu1 %vm1923_vm0, %v1924_v1  ;;  %v310_v13 = vadd.f32 %v309_v12, %v2049_v32 }
 0x19d   :  { %v311_v15 = vsub.f32 %v310_v13, %v1297_v14 }
 0x19f   :  { %vm312_vm7 = vcmp.gt.f32.partialorder %v311_v15, 1.0  ;;  %v316_v16 = vmul.f32 0.9, %v311_v15 }
 0x1a0   :  { %1590 = vmatmul.mubr.msk.f32.gmra.mrb[40].mxu1 %vm312_vm7, %v1925_v35  ;;  %v1298_v18 = vsel %vm312_vm7, 1.0, %v1924_v1 }
 0x1a1   :  { %1592 = vmatprep.mubr.msk.f32.mxu1 %vm1923_vm0, %v1924_v1  ;;  %v317_v17 = vadd.f32 %v316_v16, %v2049_v32 }
 0x1a3   :  { %v318_v19 = vsub.f32 %v317_v17, %v1298_v18 }
 0x1a5   :  { %vm319_vm8 = vcmp.gt.f32.partialorder %v318_v19, 1.0  ;;  %v323_v20 = vmul.f32 0.9, %v318_v19 }
 0x1a6   :  { %1593 = vmatmul.mubr.msk.f32.gmra.mrb[42].mxu1 %vm319_vm8, %v1925_v35  ;;  %v1299_v22 = vsel %vm319_vm8, 1.0, %v1924_v1 }
 0x1a7   :  { %1595 = vmatprep.mubr.msk.f32.mxu1 %vm1923_vm0, %v1924_v1  ;;  %v324_v21 = vadd.f32 %v323_v20, %v2049_v32 }
 0x1a9   :  { %v325_v23 = vsub.f32 %v324_v21, %v1299_v22 }
 0x1ab   :  { %vm326_vm9 = vcmp.gt.f32.partialorder %v325_v23, 1.0  ;;  %v330_v24 = vmul.f32 0.9, %v325_v23 }
 0x1ac   :  { %1596 = vmatmul.mubr.msk.f32.gmra.mrb[44].mxu1 %vm326_vm9, %v1925_v35  ;;  %v1300_v26 = vsel %vm326_vm9, 1.0, %v1924_v1 }
 0x1ad   :  { %1598 = vmatprep.mubr.msk.f32.mxu1 %vm1923_vm0, %v1924_v1  ;;  %v331_v25 = vadd.f32 %v330_v24, %v2049_v32 }
 0x1af   :  { %v332_v27 = vsub.f32 %v331_v25, %v1300_v26 }
 0x1b1   :  { %vm333_vm10 = vcmp.gt.f32.partialorder %v332_v27, 1.0  ;;  %v337_v28 = vmul.f32 0.9, %v332_v27 }
 0x1b2   :  { %1599 = vmatmul.mubr.msk.f32.gmra.mrb[46].mxu1 %vm333_vm10, %v1925_v35  ;;  %v1301_v30 = vsel %vm333_vm10, 1.0, %v1924_v1 }
 0x1b3   :  { %1601 = vmatprep.mubr.msk.f32.mxu1 %vm1923_vm0, %v1924_v1  ;;  %v338_v29 = vadd.f32 %v337_v28, %v2049_v32 }
 0x1b5   :  { %v339_v0 = vsub.f32 %v338_v29, %v1301_v30 }
 0x1b7   :  { %vm340_vm11 = vcmp.gt.f32.partialorder %v339_v0, 1.0 }
 0x1b8   :  { %1602 = vmatmul.mubr.msk.f32.gmra.mrb[48].mxu1 %vm340_vm11, %v1925_v35 }
 0x1fb   :  { %v458_v33 = vpop.f32.mrb[0].mxu1 }
 0x1fc   :  { %v459_v34 = vadd.f32 %v2184_v31, %v458_v33  ;;  %v1531_v36 = vpop.f32.mrb[1].mxu1 }
 0x1fe   :  { %vm584_vm12 = vcmp.gt.f32.partialorder %v459_v34, 1.0  ;;  %v588_v37 = vmul.f32 0.9, %v459_v34 }
 0x1ff   :  { %1637 = vmatmul.mubr.msk.f32.vlgmr.msra.gmra.mrb[2].mxu0 %vm584_vm12, %v1925_v35  ;;  %v1304_v41 = vsel %vm584_vm12, 1.0, %v1924_v1 }
 0x200   :  { %1639 = vmatprep.mubr.msk.f32.mxu0 %vm1923_vm0, %v1924_v1 }
 0x201   :  { %v463_v32 = vpop.f32.mrb[2].mxu1 }
 0x202   :  { %v464_v38 = vadd.f32 %v2184_v31, %v463_v32  ;;  %v1534_v39 = vpop.f32.mrb[3].mxu1 }
 0x204   :  { %v589_v40 = vadd.f32 %v588_v37, %v464_v38 }
 0x206   :  { %v590_v42 = vsub.f32 %v589_v40, %v1304_v41 }
 0x207   :  { %v468_v43 = vpop.f32.mrb[4].mxu1 }
 0x208   :  { %v469_v44 = vadd.f32 %v2184_v31, %v468_v43  ;;  %v595_v45 = vmul.f32 0.9, %v590_v42  ;;  %v1537_v46 = vpop.f32.mrb[5].mxu1  ;;  %vm591_vm13 = vcmp.gt.f32.partialorder %v590_v42, 1.0 }
 0x209   :  { %1640 = vmatmul.mubr.msk.f32.gmra.mrb[4].mxu0 %vm591_vm13, %v1925_v35  ;;  %v1305_v48 = vsel %vm591_vm13, 1.0, %v1924_v1 }
 0x20a   :  { %v596_v47 = vadd.f32 %v595_v45, %v469_v44  ;;  %1642 = vmatprep.mubr.msk.f32.mxu0 %vm1923_vm0, %v1924_v1 }
 0x20c   :  { %v597_v49 = vsub.f32 %v596_v47, %v1305_v48 }
 0x20d   :  { %v473_v50 = vpop.f32.mrb[6].mxu1 }
 0x20e   :  { %v474_v51 = vadd.f32 %v2184_v31, %v473_v50  ;;  %v602_v52 = vmul.f32 0.9, %v597_v49  ;;  %v1540_v53 = vpop.f32.mrb[7].mxu1  ;;  %vm598_vm14 = vcmp.gt.f32.partialorder %v597_v49, 1.0 }
 0x20f   :  { %1643 = vmatmul.mubr.msk.f32.gmra.mrb[6].mxu0 %vm598_vm14, %v1925_v35  ;;  %v1306_v55 = vsel %vm598_vm14, 1.0, %v1924_v1 }
 0x210   :  { %v603_v54 = vadd.f32 %v602_v52, %v474_v51  ;;  %1645 = vmatprep.mubr.msk.f32.mxu0 %vm1923_vm0, %v1924_v1 }
 0x212   :  { %v604_v56 = vsub.f32 %v603_v54, %v1306_v55 }
 0x213   :  { %v478_v57 = vpop.f32.mrb[8].mxu1 }
 0x214   :  { %v479_v58 = vadd.f32 %v2184_v31, %v478_v57  ;;  %v609_v59 = vmul.f32 0.9, %v604_v56  ;;  %v1543_v60 = vpop.f32.mrb[9].mxu1  ;;  %vm605_vm15 = vcmp.gt.f32.partialorder %v604_v56, 1.0 }
 0x215   :  { %1646 = vmatmul.mubr.msk.f32.gmra.mrb[8].mxu0 %vm605_vm15, %v1925_v35  ;;  %v1307_v62 = vsel %vm605_vm15, 1.0, %v1924_v1 }
 0x216   :  { %v610_v61 = vadd.f32 %v609_v59, %v479_v58  ;;  %1648 = vmatprep.mubr.msk.f32.mxu0 %vm1923_vm0, %v1924_v1 }
 0x218   :  { %v611_v63 = vsub.f32 %v610_v61, %v1307_v62 }
 0x219   :  { %v483_v2 = vpop.f32.mrb[10].mxu1 }
 0x21a   :  { %v484_v3 = vadd.f32 %v2184_v31, %v483_v2  ;;  %v616_v4 = vmul.f32 0.9, %v611_v63  ;;  %v1546_v5 = vpop.f32.mrb[11].mxu1  ;;  %vm612_vm1 = vcmp.gt.f32.partialorder %v611_v63, 1.0 }
 0x21b   :  { %1649 = vmatmul.mubr.msk.f32.gmra.mrb[10].mxu0 %vm612_vm1, %v1925_v35  ;;  %v1308_v7 = vsel %vm612_vm1, 1.0, %v1924_v1 }
 0x21c   :  { %v617_v6 = vadd.f32 %v616_v4, %v484_v3  ;;  %1651 = vmatprep.mubr.msk.f32.mxu0 %vm1923_vm0, %v1924_v1 }
 0x21e   :  { %v618_v8 = vsub.f32 %v617_v6, %v1308_v7 }
 0x21f   :  { %v488_v9 = vpop.f32.mrb[12].mxu1 }
 0x220   :  { %v489_v10 = vadd.f32 %v2184_v31, %v488_v9  ;;  %v623_v11 = vmul.f32 0.9, %v618_v8  ;;  %v1549_v12 = vpop.f32.mrb[13].mxu1  ;;  %vm619_vm2 = vcmp.gt.f32.partialorder %v618_v8, 1.0 }
 0x221   :  { %1652 = vmatmul.mubr.msk.f32.gmra.mrb[12].mxu0 %vm619_vm2, %v1925_v35  ;;  %v1309_v14 = vsel %vm619_vm2, 1.0, %v1924_v1 }
 0x222   :  { %v624_v13 = vadd.f32 %v623_v11, %v489_v10  ;;  %1654 = vmatprep.mubr.msk.f32.mxu0 %vm1923_vm0, %v1924_v1 }
 0x224   :  { %v625_v15 = vsub.f32 %v624_v13, %v1309_v14 }
 0x225   :  { %v493_v16 = vpop.f32.mrb[14].mxu1 }
 0x226   :  { %v494_v17 = vadd.f32 %v2184_v31, %v493_v16  ;;  %v630_v18 = vmul.f32 0.9, %v625_v15  ;;  %v1552_v19 = vpop.f32.mrb[15].mxu1  ;;  %vm626_vm3 = vcmp.gt.f32.partialorder %v625_v15, 1.0 }
 0x227   :  { %1655 = vmatmul.mubr.msk.f32.gmra.mrb[14].mxu0 %vm626_vm3, %v1925_v35  ;;  %v1310_v21 = vsel %vm626_vm3, 1.0, %v1924_v1 }
 0x228   :  { %v631_v20 = vadd.f32 %v630_v18, %v494_v17  ;;  %1657 = vmatprep.mubr.msk.f32.mxu0 %vm1923_vm0, %v1924_v1 }
 0x22a   :  { %v632_v22 = vsub.f32 %v631_v20, %v1310_v21 }
 0x22b   :  { %v498_v23 = vpop.f32.mrb[16].mxu1 }
 0x22c   :  { %v499_v24 = vadd.f32 %v2184_v31, %v498_v23  ;;  %v637_v25 = vmul.f32 0.9, %v632_v22  ;;  %v1555_v26 = vpop.f32.mrb[17].mxu1  ;;  %vm633_vm4 = vcmp.gt.f32.partialorder %v632_v22, 1.0 }
 0x22d   :  { %1658 = vmatmul.mubr.msk.f32.gmra.mrb[16].mxu0 %vm633_vm4, %v1925_v35  ;;  %v1311_v28 = vsel %vm633_vm4, 1.0, %v1924_v1 }
 0x22e   :  { %v638_v27 = vadd.f32 %v637_v25, %v499_v24  ;;  %1660 = vmatprep.mubr.msk.f32.mxu0 %vm1923_vm0, %v1924_v1 }
 0x230   :  { %v639_v29 = vsub.f32 %v638_v27, %v1311_v28 }
 0x231   :  { %v503_v30 = vpop.f32.mrb[18].mxu1 }
 0x232   :  { %v504_v0 = vadd.f32 %v2184_v31, %v503_v30  ;;  %v644_v33 = vmul.f32 0.9, %v639_v29  ;;  %v1558_v34 = vpop.f32.mrb[19].mxu1  ;;  %vm640_vm5 = vcmp.gt.f32.partialorder %v639_v29, 1.0 }
 0x233   :  { %1661 = vmatmul.mubr.msk.f32.gmra.mrb[18].mxu0 %vm640_vm5, %v1925_v35  ;;  %v1312_v32 = vsel %vm640_vm5, 1.0, %v1924_v1 }
 0x234   :  { %v645_v36 = vadd.f32 %v644_v33, %v504_v0  ;;  %1663 = vmatprep.mubr.msk.f32.mxu0 %vm1923_vm0, %v1924_v1 }
 0x236   :  { %v646_v37 = vsub.f32 %v645_v36, %v1312_v32 }
 0x237   :  { %v508_v38 = vpop.f32.mrb[20].mxu1 }
 0x238   :  { %v509_v39 = vadd.f32 %v2184_v31, %v508_v38  ;;  %v651_v40 = vmul.f32 0.9, %v646_v37  ;;  %v1561_v41 = vpop.f32.mrb[21].mxu1  ;;  %vm647_vm6 = vcmp.gt.f32.partialorder %v646_v37, 1.0 }
 0x239   :  { %1664 = vmatmul.mubr.msk.f32.gmra.mrb[20].mxu0 %vm647_vm6, %v1925_v35  ;;  %v1313_v43 = vsel %vm647_vm6, 1.0, %v1924_v1 }
 0x23a   :  { %v652_v42 = vadd.f32 %v651_v40, %v509_v39  ;;  %1666 = vmatprep.mubr.msk.f32.mxu0 %vm1923_vm0, %v1924_v1 }
 0x23c   :  { %v653_v44 = vsub.f32 %v652_v42, %v1313_v43 }
 0x23d   :  { %v513_v45 = vpop.f32.mrb[22].mxu1 }
 0x23e   :  { %v514_v46 = vadd.f32 %v2184_v31, %v513_v45  ;;  %v658_v47 = vmul.f32 0.9, %v653_v44  ;;  %v1564_v48 = vpop.f32.mrb[23].mxu1  ;;  %vm654_vm7 = vcmp.gt.f32.partialorder %v653_v44, 1.0 }
 0x23f   :  { %1667 = vmatmul.mubr.msk.f32.gmra.mrb[22].mxu0 %vm654_vm7, %v1925_v35  ;;  %v1314_v50 = vsel %vm654_vm7, 1.0, %v1924_v1 }
 0x240   :  { %v659_v49 = vadd.f32 %v658_v47, %v514_v46  ;;  %1669 = vmatprep.mubr.msk.f32.mxu0 %vm1923_vm0, %v1924_v1 }
 0x242   :  { %v660_v51 = vsub.f32 %v659_v49, %v1314_v50 }
 0x243   :  { %v518_v52 = vpop.f32.mrb[24].mxu1 }
 0x244   :  { %v519_v53 = vadd.f32 %v2184_v31, %v518_v52  ;;  %v665_v54 = vmul.f32 0.9, %v660_v51  ;;  %v1567_v55 = vpop.f32.mrb[25].mxu1  ;;  %vm661_vm8 = vcmp.gt.f32.partialorder %v660_v51, 1.0 }
 0x245   :  { %1670 = vmatmul.mubr.msk.f32.gmra.mrb[24].mxu0 %vm661_vm8, %v1925_v35  ;;  %v1315_v57 = vsel %vm661_vm8, 1.0, %v1924_v1 }
 0x246   :  { %v666_v56 = vadd.f32 %v665_v54, %v519_v53  ;;  %1672 = vmatprep.mubr.msk.f32.mxu0 %vm1923_vm0, %v1924_v1 }
 0x248   :  { %v667_v58 = vsub.f32 %v666_v56, %v1315_v57 }
 0x249   :  { %v523_v59 = vpop.f32.mrb[26].mxu1 }
 0x24a   :  { %v524_v60 = vadd.f32 %v2184_v31, %v523_v59  ;;  %v672_v61 = vmul.f32 0.9, %v667_v58  ;;  %v1570_v62 = vpop.f32.mrb[27].mxu1  ;;  %vm668_vm9 = vcmp.gt.f32.partialorder %v667_v58, 1.0 }
 0x24b   :  { %1673 = vmatmul.mubr.msk.f32.gmra.mrb[26].mxu0 %vm668_vm9, %v1925_v35  ;;  %v1316_v2 = vsel %vm668_vm9, 1.0, %v1924_v1 }
 0x24c   :  { %v673_v63 = vadd.f32 %v672_v61, %v524_v60  ;;  %1675 = vmatprep.mubr.msk.f32.mxu0 %vm1923_vm0, %v1924_v1 }
 0x24e   :  { %v674_v3 = vsub.f32 %v673_v63, %v1316_v2 }
 0x24f   :  { %v528_v4 = vpop.f32.mrb[28].mxu1 }
 0x250   :  { %v529_v5 = vadd.f32 %v2184_v31, %v528_v4  ;;  %v679_v6 = vmul.f32 0.9, %v674_v3  ;;  %v1573_v7 = vpop.f32.mrb[29].mxu1  ;;  %vm675_vm10 = vcmp.gt.f32.partialorder %v674_v3, 1.0 }
 0x251   :  { %1676 = vmatmul.mubr.msk.f32.gmra.mrb[28].mxu0 %vm675_vm10, %v1925_v35  ;;  %v1317_v9 = vsel %vm675_vm10, 1.0, %v1924_v1 }
 0x252   :  { %v680_v8 = vadd.f32 %v679_v6, %v529_v5  ;;  %1678 = vmatprep.mubr.msk.f32.mxu0 %vm1923_vm0, %v1924_v1 }
 0x254   :  { %v681_v10 = vsub.f32 %v680_v8, %v1317_v9 }
 0x255   :  { %v533_v11 = vpop.f32.mrb[30].mxu1 }
 0x256   :  { %v534_v12 = vadd.f32 %v2184_v31, %v533_v11  ;;  %v686_v13 = vmul.f32 0.9, %v681_v10  ;;  %v1576_v14 = vpop.f32.mrb[31].mxu1  ;;  %vm682_vm11 = vcmp.gt.f32.partialorder %v681_v10, 1.0 }
 0x257   :  { %1679 = vmatmul.mubr.msk.f32.gmra.mrb[30].mxu0 %vm682_vm11, %v1925_v35  ;;  %v1318_v16 = vsel %vm682_vm11, 1.0, %v1924_v1 }
 0x258   :  { %v687_v15 = vadd.f32 %v686_v13, %v534_v12  ;;  %1681 = vmatprep.mubr.msk.f32.mxu0 %vm1923_vm0, %v1924_v1 }
 0x25a   :  { %v688_v17 = vsub.f32 %v687_v15, %v1318_v16 }
 0x25b   :  { %v538_v18 = vpop.f32.mrb[32].mxu1 }
 0x25c   :  { %v539_v19 = vadd.f32 %v2184_v31, %v538_v18  ;;  %v693_v20 = vmul.f32 0.9, %v688_v17  ;;  %v1579_v21 = vpop.f32.mrb[33].mxu1  ;;  %vm689_vm12 = vcmp.gt.f32.partialorder %v688_v17, 1.0 }
 0x25d   :  { %1682 = vmatmul.mubr.msk.f32.gmra.mrb[32].mxu0 %vm689_vm12, %v1925_v35  ;;  %v1319_v23 = vsel %vm689_vm12, 1.0, %v1924_v1 }
 0x25e   :  { %v694_v22 = vadd.f32 %v693_v20, %v539_v19  ;;  %1684 = vmatprep.mubr.msk.f32.mxu0 %vm1923_vm0, %v1924_v1  ;;  %v2311_v20 = vld [vmem:[%s2406_s6] ss:$0 sm:$0xff]  ;;  %s1926_s6 = smov [#allocation13]  }
 0x25f   :  { %s1258_s12 = sshll.u32 %s1926_s6, 4  ;;  %s1259_s12 = int_to_ptr.vmem [resolvable:$true] %s1258_s12 }
 0x260   :  { %v695_v24 = vsub.f32 %v694_v22, %v1319_v23  ;;  %s1862_s17 = scalar_lea.vmem %s1259_s12, 3200  ;;  %p1867_p5 = scmp.lt.s32.totalorder %s1259_s12, %s1259_s12 }
 0x261   :  { %v543_v25 = vpop.f32.mrb[34].mxu1  ;;  %p1863_p4 = scmp.ne.s32.totalorder %s1259_s12, %s1862_s17  ;;  %p1868_p6 = scmp.lt.s32.totalorder %s1862_s17, %s1862_s17 }
 0x262   :  { %v544_v26 = vadd.f32 %v2184_v31, %v543_v25  ;;  %v700_v27 = vmul.f32 0.9, %v695_v24  ;;  %v1582_v28 = vpop.f32.mrb[35].mxu1  ;;  %vm696_vm13 = vcmp.gt.f32.partialorder %v695_v24, 1.0 }
 0x263   :  { %1685 = vmatmul.mubr.msk.f32.gmra.mrb[34].mxu0 %vm696_vm13, %v1925_v35  ;;  %v1320_v30 = vsel %vm696_vm13, 1.0, %v1924_v1  ;;  %p1869_p7 = por %p1868_p6, %p1867_p5 }
 0x264   :  { %v701_v29 = vadd.f32 %v700_v27, %v544_v26  ;;  %1687 = vmatprep.mubr.msk.f32.mxu0 %vm1923_vm0, %v1924_v1 }
 0x265   :  { %p1870_p8 = pnand %p1869_p7, %p1863_p4 }
 0x266   :  { %v702_v0 = vsub.f32 %v701_v29, %v1320_v30 }
 0x267   :  { %v548_v33 = vpop.f32.mrb[36].mxu1 }
 0x268   :  { %v549_v34 = vadd.f32 %v2184_v31, %v548_v33  ;;  %v707_v36 = vmul.f32 0.9, %v702_v0  ;;  %v1585_v32 = vpop.f32.mrb[37].mxu1  ;;  %vm703_vm14 = vcmp.gt.f32.partialorder %v702_v0, 1.0 }
 0x269   :  { %1688 = vmatmul.mubr.msk.f32.gmra.mrb[36].mxu0 %vm703_vm14, %v1925_v35  ;;  %v1321_v38 = vsel %vm703_vm14, 1.0, %v1924_v1 }
 0x26a   :  { %v708_v37 = vadd.f32 %v707_v36, %v549_v34  ;;  %1690 = vmatprep.mubr.msk.f32.mxu0 %vm1923_vm0, %v1924_v1 }
 0x26c   :  { %v709_v39 = vsub.f32 %v708_v37, %v1321_v38 }
 0x26d   :  { %v553_v40 = vpop.f32.mrb[38].mxu1 }
 0x26e   :  { %v554_v41 = vadd.f32 %v2184_v31, %v553_v40  ;;  %v714_v42 = vmul.f32 0.9, %v709_v39  ;;  %v1588_v43 = vpop.f32.mrb[39].mxu1  ;;  %vm710_vm15 = vcmp.gt.f32.partialorder %v709_v39, 1.0 }
 0x26f   :  { %1691 = vmatmul.mubr.msk.f32.gmra.mrb[38].mxu0 %vm710_vm15, %v1925_v35  ;;  %v1322_v45 = vsel %vm710_vm15, 1.0, %v1924_v1 }
 0x270   :  { %v715_v44 = vadd.f32 %v714_v42, %v554_v41  ;;  %1693 = vmatprep.mubr.msk.f32.mxu0 %vm1923_vm0, %v1924_v1 }
 0x272   :  { %v716_v46 = vsub.f32 %v715_v44, %v1322_v45 }
 0x273   :  { %v558_v47 = vpop.f32.mrb[40].mxu1 }
 0x274   :  { %v559_v48 = vadd.f32 %v2184_v31, %v558_v47  ;;  %v721_v49 = vmul.f32 0.9, %v716_v46  ;;  %v1591_v50 = vpop.f32.mrb[41].mxu1  ;;  %vm717_vm1 = vcmp.gt.f32.partialorder %v716_v46, 1.0 }
 0x275   :  { %1694 = vmatmul.mubr.msk.f32.gmra.mrb[40].mxu0 %vm717_vm1, %v1925_v35  ;;  %v1323_v52 = vsel %vm717_vm1, 1.0, %v1924_v1 }
 0x276   :  { %v722_v51 = vadd.f32 %v721_v49, %v559_v48  ;;  %1696 = vmatprep.mubr.msk.f32.mxu0 %vm1923_vm0, %v1924_v1 }
 0x278   :  { %v723_v53 = vsub.f32 %v722_v51, %v1323_v52 }
 0x279   :  { %v563_v54 = vpop.f32.mrb[42].mxu1 }
 0x27a   :  { %v564_v55 = vadd.f32 %v2184_v31, %v563_v54  ;;  %v728_v56 = vmul.f32 0.9, %v723_v53  ;;  %v1594_v57 = vpop.f32.mrb[43].mxu1  ;;  %vm724_vm2 = vcmp.gt.f32.partialorder %v723_v53, 1.0 }
 0x27b   :  { %1697 = vmatmul.mubr.msk.f32.gmra.mrb[42].mxu0 %vm724_vm2, %v1925_v35  ;;  %v1324_v59 = vsel %vm724_vm2, 1.0, %v1924_v1 }
 0x27c   :  { %v729_v58 = vadd.f32 %v728_v56, %v564_v55  ;;  %1699 = vmatprep.mubr.msk.f32.mxu0 %vm1923_vm0, %v1924_v1 }
 0x27e   :  { %v730_v60 = vsub.f32 %v729_v58, %v1324_v59 }
 0x27f   :  { %v568_v61 = vpop.f32.mrb[44].mxu1 }
 0x280   :  { %v569_v62 = vadd.f32 %v2184_v31, %v568_v61  ;;  %v735_v63 = vmul.f32 0.9, %v730_v60  ;;  %v1597_v2 = vpop.f32.mrb[45].mxu1  ;;  %vm731_vm3 = vcmp.gt.f32.partialorder %v730_v60, 1.0 }
 0x281   :  { %1700 = vmatmul.mubr.msk.f32.gmra.mrb[44].mxu0 %vm731_vm3, %v1925_v35  ;;  %v1325_v4 = vsel %vm731_vm3, 1.0, %v1924_v1 }
 0x282   :  { %v736_v3 = vadd.f32 %v735_v63, %v569_v62  ;;  %1702 = vmatprep.mubr.msk.f32.mxu0 %vm1923_vm0, %v1924_v1 }
 0x284   :  { %v737_v5 = vsub.f32 %v736_v3, %v1325_v4 }
 0x285   :  { %v573_v6 = vpop.f32.mrb[46].mxu1 }
 0x286   :  { %v574_v7 = vadd.f32 %v2184_v31, %v573_v6  ;;  %v742_v8 = vmul.f32 0.9, %v737_v5  ;;  %v1600_v9 = vpop.f32.mrb[47].mxu1  ;;  %vm738_vm4 = vcmp.gt.f32.partialorder %v737_v5, 1.0 }
 0x287   :  { %1703 = vmatmul.mubr.msk.f32.gmra.mrb[46].mxu0 %vm738_vm4, %v1925_v35  ;;  %v1326_v11 = vsel %vm738_vm4, 1.0, %v1924_v1 }
 0x288   :  { %v743_v10 = vadd.f32 %v742_v8, %v574_v7  ;;  %1705 = vmatprep.mubr.msk.f32.mxu0 %vm1923_vm0, %v1924_v1 }
 0x28a   :  { %v744_v12 = vsub.f32 %v743_v10, %v1326_v11 }
 0x28b   :  { %v578_v13 = vpop.f32.mrb[48].mxu1 }
 0x28c   :  { %v579_v14 = vadd.f32 %v2184_v31, %v578_v13  ;;  %v749_v15 = vmul.f32 0.9, %v744_v12  ;;  %v1603_v16 = vpop.f32.mrb[49].mxu1  ;;  %vm745_vm5 = vcmp.gt.f32.partialorder %v744_v12, 1.0 }
 0x28d   :  { %1706 = vmatmul.mubr.msk.f32.gmra.mrb[48].mxu0 %vm745_vm5, %v1925_v35  ;;  %v1327_v18 = vsel %vm745_vm5, 1.0, %v1924_v1 }
 0x28e   :  { %v750_v17 = vadd.f32 %v749_v15, %v579_v14  ;;  %1708 = vmatprep.mubr.msk.f32.mxu0 %vm1923_vm0, %v1924_v1 }
 0x290   :  { %v751_v19 = vsub.f32 %v750_v17, %v1327_v18 }
 0x292   :  { %vm752_vm6 = vcmp.gt.f32.partialorder %v751_v19, 1.0 }
 0x293   :  { %1709 = vmatmul.mubr.msk.f32.gmra.mrb[50].mxu0 %vm752_vm6, %v1925_v35 }
 0x2d2   :  { %v870_v31 = vpop.f32.mrb[2].mxu0 }
 0x2d3   :  { %v871_v21 = vadd.f32 %v2311_v20, %v870_v31  ;;  %v1638_v22 = vpop.f32.mrb[3].mxu0 }
 0x2d5   :  { %vm996_vm7 = vcmp.gt.f32.partialorder %v871_v21, 1.0  ;;  %1000 = vst [vmem:[#allocation13] sm:$0xff] %v871_v21  ;;  %v1001_v26 = vmul.f32 0.9, %v871_v21 }
 0x2d6   :  { %v1330_v23 = vsel %vm996_vm7, 1.0, %v1924_v1 }
 0x2d7   :  { %999 = vst [vmem:[#allocation12] sm:$0xff] %v1330_v23 }
 0x2dc   :  { %v875_v24 = vpop.f32.mrb[4].mxu0 }
 0x2dd   :  { %v876_v25 = vadd.f32 %v2311_v20, %v875_v24  ;;  %v1641_v27 = vpop.f32.mrb[5].mxu0 }
 0x2df   :  { %v1002_v35 = vadd.f32 %v1001_v26, %v876_v25 }
 0x2e1   :  { %v1003_v28 = vsub.f32 %v1002_v35, %v1330_v23 }
 0x2e2   :  { %v880_v29 = vpop.f32.mrb[6].mxu0 }
 0x2e3   :  { %vm1004_vm0 = vcmp.gt.f32.partialorder %v1003_v28, 1.0  ;;  %1010 = vst [vmem:[#allocation13 + $0x8] sm:$0xff] %v1003_v28  ;;  %v881_v30 = vadd.f32 %v2311_v20, %v880_v29  ;;  %v1011_v0 = vmul.f32 0.9, %v1003_v28  ;;  %v1644_v33 = vpop.f32.mrb[7].mxu0 }
 0x2e4   :  { %v1331_v34 = vsel %vm1004_vm0, 1.0, %v1924_v1 }
 0x2e5   :  { %1008 = vst [vmem:[#allocation12 + $0x8] sm:$0xff] %v1331_v34  ;;  %v1012_v36 = vadd.f32 %v1011_v0, %v881_v30 }
 0x2e7   :  { %v1013_v32 = vsub.f32 %v1012_v36, %v1331_v34 }
 0x2e8   :  { %v885_v37 = vpop.f32.mrb[8].mxu0 }
 0x2e9   :  { %vm1014_vm8 = vcmp.gt.f32.partialorder %v1013_v32, 1.0  ;;  %1020 = vst [vmem:[#allocation13 + $0x10] sm:$0xff] %v1013_v32  ;;  %v886_v38 = vadd.f32 %v2311_v20, %v885_v37  ;;  %v1021_v39 = vmul.f32 0.9, %v1013_v32  ;;  %v1647_v40 = vpop.f32.mrb[9].mxu0 }
 0x2ea   :  { %v1332_v41 = vsel %vm1014_vm8, 1.0, %v1924_v1 }
 0x2eb   :  { %1018 = vst [vmem:[#allocation12 + $0x10] sm:$0xff] %v1332_v41  ;;  %v1022_v42 = vadd.f32 %v1021_v39, %v886_v38 }
 0x2ed   :  { %v1023_v43 = vsub.f32 %v1022_v42, %v1332_v41 }
 0x2ee   :  { %v890_v44 = vpop.f32.mrb[10].mxu0 }
 0x2ef   :  { %vm1024_vm9 = vcmp.gt.f32.partialorder %v1023_v43, 1.0  ;;  %1030 = vst [vmem:[#allocation13 + $0x18] sm:$0xff] %v1023_v43  ;;  %v891_v45 = vadd.f32 %v2311_v20, %v890_v44  ;;  %v1031_v46 = vmul.f32 0.9, %v1023_v43  ;;  %v1650_v47 = vpop.f32.mrb[11].mxu0 }
 0x2f0   :  { %v1333_v48 = vsel %vm1024_vm9, 1.0, %v1924_v1 }
 0x2f1   :  { %1028 = vst [vmem:[#allocation12 + $0x18] sm:$0xff] %v1333_v48  ;;  %v1032_v49 = vadd.f32 %v1031_v46, %v891_v45 }
 0x2f3   :  { %v1033_v50 = vsub.f32 %v1032_v49, %v1333_v48 }
 0x2f4   :  { %v895_v51 = vpop.f32.mrb[12].mxu0 }
 0x2f5   :  { %vm1034_vm10 = vcmp.gt.f32.partialorder %v1033_v50, 1.0  ;;  %1040 = vst [vmem:[#allocation13 + $0x20] sm:$0xff] %v1033_v50  ;;  %v896_v52 = vadd.f32 %v2311_v20, %v895_v51  ;;  %v1041_v53 = vmul.f32 0.9, %v1033_v50  ;;  %v1653_v54 = vpop.f32.mrb[13].mxu0 }
 0x2f6   :  { %v1334_v55 = vsel %vm1034_vm10, 1.0, %v1924_v1 }
 0x2f7   :  { %1038 = vst [vmem:[#allocation12 + $0x20] sm:$0xff] %v1334_v55  ;;  %v1042_v56 = vadd.f32 %v1041_v53, %v896_v52 }
 0x2f9   :  { %v1043_v57 = vsub.f32 %v1042_v56, %v1334_v55 }
 0x2fa   :  { %v900_v58 = vpop.f32.mrb[14].mxu0 }
 0x2fb   :  { %vm1044_vm11 = vcmp.gt.f32.partialorder %v1043_v57, 1.0  ;;  %1050 = vst [vmem:[#allocation13 + $0x28] sm:$0xff] %v1043_v57  ;;  %v901_v59 = vadd.f32 %v2311_v20, %v900_v58  ;;  %v1051_v60 = vmul.f32 0.9, %v1043_v57  ;;  %v1656_v61 = vpop.f32.mrb[15].mxu0 }
 0x2fc   :  { %v1335_v62 = vsel %vm1044_vm11, 1.0, %v1924_v1 }
 0x2fd   :  { %1048 = vst [vmem:[#allocation12 + $0x28] sm:$0xff] %v1335_v62  ;;  %v1052_v63 = vadd.f32 %v1051_v60, %v901_v59 }
 0x2ff   :  { %v1053_v2 = vsub.f32 %v1052_v63, %v1335_v62 }
 0x300   :  { %v905_v3 = vpop.f32.mrb[16].mxu0 }
 0x301   :  { %vm1054_vm12 = vcmp.gt.f32.partialorder %v1053_v2, 1.0  ;;  %1060 = vst [vmem:[#allocation13 + $0x30] sm:$0xff] %v1053_v2  ;;  %v906_v4 = vadd.f32 %v2311_v20, %v905_v3  ;;  %v1061_v5 = vmul.f32 0.9, %v1053_v2  ;;  %v1659_v6 = vpop.f32.mrb[17].mxu0 }
 0x302   :  { %v1336_v7 = vsel %vm1054_vm12, 1.0, %v1924_v1 }
 0x303   :  { %1058 = vst [vmem:[#allocation12 + $0x30] sm:$0xff] %v1336_v7  ;;  %v1062_v8 = vadd.f32 %v1061_v5, %v906_v4 }
 0x305   :  { %v1063_v9 = vsub.f32 %v1062_v8, %v1336_v7 }
 0x306   :  { %v910_v10 = vpop.f32.mrb[18].mxu0 }
 0x307   :  { %vm1064_vm13 = vcmp.gt.f32.partialorder %v1063_v9, 1.0  ;;  %1070 = vst [vmem:[#allocation13 + $0x38] sm:$0xff] %v1063_v9  ;;  %v911_v11 = vadd.f32 %v2311_v20, %v910_v10  ;;  %v1071_v12 = vmul.f32 0.9, %v1063_v9  ;;  %v1662_v13 = vpop.f32.mrb[19].mxu0 }
 0x308   :  { %v1337_v14 = vsel %vm1064_vm13, 1.0, %v1924_v1 }
 0x309   :  { %1068 = vst [vmem:[#allocation12 + $0x38] sm:$0xff] %v1337_v14  ;;  %v1072_v15 = vadd.f32 %v1071_v12, %v911_v11 }
 0x30b   :  { %v1073_v16 = vsub.f32 %v1072_v15, %v1337_v14 }
 0x30c   :  { %v915_v17 = vpop.f32.mrb[20].mxu0 }
 0x30d   :  { %vm1074_vm14 = vcmp.gt.f32.partialorder %v1073_v16, 1.0  ;;  %1080 = vst [vmem:[#allocation13 + $0x40] sm:$0xff] %v1073_v16  ;;  %v916_v18 = vadd.f32 %v2311_v20, %v915_v17  ;;  %v1081_v19 = vmul.f32 0.9, %v1073_v16  ;;  %v1665_v31 = vpop.f32.mrb[21].mxu0 }
 0x30e   :  { %v1338_v21 = vsel %vm1074_vm14, 1.0, %v1924_v1 }
 0x30f   :  { %1078 = vst [vmem:[#allocation12 + $0x40] sm:$0xff] %v1338_v21  ;;  %v1082_v22 = vadd.f32 %v1081_v19, %v916_v18 }
 0x311   :  { %v1083_v23 = vsub.f32 %v1082_v22, %v1338_v21 }
 0x312   :  { %v920_v24 = vpop.f32.mrb[22].mxu0 }
 0x313   :  { %vm1084_vm15 = vcmp.gt.f32.partialorder %v1083_v23, 1.0  ;;  %1090 = vst [vmem:[#allocation13 + $0x48] sm:$0xff] %v1083_v23  ;;  %v921_v25 = vadd.f32 %v2311_v20, %v920_v24  ;;  %v1091_v26 = vmul.f32 0.9, %v1083_v23  ;;  %v1668_v27 = vpop.f32.mrb[23].mxu0 }
 0x314   :  { %v1339_v35 = vsel %vm1084_vm15, 1.0, %v1924_v1 }
 0x315   :  { %v1092_v28 = vadd.f32 %v1091_v26, %v921_v25  ;;  %1088 = vst [vmem:[#allocation12 + $0x48] sm:$0xff] %v1339_v35 }
 0x317   :  { %v1093_v29 = vsub.f32 %v1092_v28, %v1339_v35 }
 0x318   :  { %v925_v30 = vpop.f32.mrb[24].mxu0 }
 0x319   :  { %1100 = vst [vmem:[#allocation13 + $0x50] sm:$0xff] %v1093_v29  ;;  %v926_v0 = vadd.f32 %v2311_v20, %v925_v30  ;;  %vm1094_vm1 = vcmp.gt.f32.partialorder %v1093_v29, 1.0  ;;  %v1101_v33 = vmul.f32 0.9, %v1093_v29  ;;  %v1671_v34 = vpop.f32.mrb[25].mxu0 }
 0x31a   :  { %v1340_v36 = vsel %vm1094_vm1, 1.0, %v1924_v1 }
 0x31b   :  { %1098 = vst [vmem:[#allocation12 + $0x50] sm:$0xff] %v1340_v36  ;;  %v1102_v32 = vadd.f32 %v1101_v33, %v926_v0 }
 0x31d   :  { %v1103_v37 = vsub.f32 %v1102_v32, %v1340_v36 }
 0x31e   :  { %v930_v38 = vpop.f32.mrb[26].mxu0 }
 0x31f   :  { %1110 = vst [vmem:[#allocation13 + $0x58] sm:$0xff] %v1103_v37  ;;  %v931_v39 = vadd.f32 %v2311_v20, %v930_v38  ;;  %vm1104_vm2 = vcmp.gt.f32.partialorder %v1103_v37, 1.0  ;;  %v1111_v40 = vmul.f32 0.9, %v1103_v37  ;;  %v1674_v41 = vpop.f32.mrb[27].mxu0 }
 0x320   :  { %v1341_v42 = vsel %vm1104_vm2, 1.0, %v1924_v1 }
 0x321   :  { %1108 = vst [vmem:[#allocation12 + $0x58] sm:$0xff] %v1341_v42  ;;  %v1112_v43 = vadd.f32 %v1111_v40, %v931_v39 }
 0x323   :  { %v1113_v44 = vsub.f32 %v1112_v43, %v1341_v42 }
 0x324   :  { %v935_v45 = vpop.f32.mrb[28].mxu0 }
 0x325   :  { %1120 = vst [vmem:[#allocation13 + $0x60] sm:$0xff] %v1113_v44  ;;  %v936_v46 = vadd.f32 %v2311_v20, %v935_v45  ;;  %vm1114_vm3 = vcmp.gt.f32.partialorder %v1113_v44, 1.0  ;;  %v1121_v47 = vmul.f32 0.9, %v1113_v44  ;;  %v1677_v48 = vpop.f32.mrb[29].mxu0 }
 0x326   :  { %v1342_v49 = vsel %vm1114_vm3, 1.0, %v1924_v1 }
 0x327   :  { %1118 = vst [vmem:[#allocation12 + $0x60] sm:$0xff] %v1342_v49  ;;  %v1122_v50 = vadd.f32 %v1121_v47, %v936_v46 }
 0x329   :  { %v1123_v51 = vsub.f32 %v1122_v50, %v1342_v49 }
 0x32a   :  { %v940_v52 = vpop.f32.mrb[30].mxu0 }
 0x32b   :  { %1130 = vst [vmem:[#allocation13 + $0x68] sm:$0xff] %v1123_v51  ;;  %v941_v53 = vadd.f32 %v2311_v20, %v940_v52  ;;  %vm1124_vm4 = vcmp.gt.f32.partialorder %v1123_v51, 1.0  ;;  %v1131_v54 = vmul.f32 0.9, %v1123_v51  ;;  %v1680_v55 = vpop.f32.mrb[31].mxu0 }
 0x32c   :  { %v1343_v56 = vsel %vm1124_vm4, 1.0, %v1924_v1 }
 0x32d   :  { %1128 = vst [vmem:[#allocation12 + $0x68] sm:$0xff] %v1343_v56  ;;  %v1132_v57 = vadd.f32 %v1131_v54, %v941_v53 }
 0x32f   :  { %v1133_v58 = vsub.f32 %v1132_v57, %v1343_v56 }
 0x330   :  { %v945_v59 = vpop.f32.mrb[32].mxu0 }
 0x331   :  { %1140 = vst [vmem:[#allocation13 + $0x70] sm:$0xff] %v1133_v58  ;;  %v946_v60 = vadd.f32 %v2311_v20, %v945_v59  ;;  %vm1134_vm5 = vcmp.gt.f32.partialorder %v1133_v58, 1.0  ;;  %v1141_v61 = vmul.f32 0.9, %v1133_v58  ;;  %v1683_v62 = vpop.f32.mrb[33].mxu0 }
 0x332   :  { %v1344_v63 = vsel %vm1134_vm5, 1.0, %v1924_v1 }
 0x333   :  { %1138 = vst [vmem:[#allocation12 + $0x70] sm:$0xff] %v1344_v63  ;;  %v1142_v2 = vadd.f32 %v1141_v61, %v946_v60 }
 0x335   :  { %v1143_v3 = vsub.f32 %v1142_v2, %v1344_v63 }
 0x336   :  { %v950_v4 = vpop.f32.mrb[34].mxu0 }
 0x337   :  { %1150 = vst [vmem:[#allocation13 + $0x78] sm:$0xff] %v1143_v3  ;;  %v951_v5 = vadd.f32 %v2311_v20, %v950_v4  ;;  %vm1144_vm6 = vcmp.gt.f32.partialorder %v1143_v3, 1.0  ;;  %v1151_v6 = vmul.f32 0.9, %v1143_v3  ;;  %v1686_v7 = vpop.f32.mrb[35].mxu0 }
 0x338   :  { %v1345_v8 = vsel %vm1144_vm6, 1.0, %v1924_v1 }
 0x339   :  { %1148 = vst [vmem:[#allocation12 + $0x78] sm:$0xff] %v1345_v8  ;;  %v1152_v9 = vadd.f32 %v1151_v6, %v951_v5 }
 0x33b   :  { %v1153_v10 = vsub.f32 %v1152_v9, %v1345_v8 }
 0x33c   :  { %v955_v11 = vpop.f32.mrb[36].mxu0 }
 0x33d   :  { %1160 = vst [vmem:[#allocation13 + $0x80] sm:$0xff] %v1153_v10  ;;  %v956_v12 = vadd.f32 %v2311_v20, %v955_v11  ;;  %vm1154_vm7 = vcmp.gt.f32.partialorder %v1153_v10, 1.0  ;;  %v1161_v13 = vmul.f32 0.9, %v1153_v10  ;;  %v1689_v14 = vpop.f32.mrb[37].mxu0 }
 0x33e   :  { %v1346_v15 = vsel %vm1154_vm7, 1.0, %v1924_v1 }
 0x33f   :  { %1158 = vst [vmem:[#allocation12 + $0x80] sm:$0xff] %v1346_v15  ;;  %v1162_v16 = vadd.f32 %v1161_v13, %v956_v12 }
 0x341   :  { %v1163_v17 = vsub.f32 %v1162_v16, %v1346_v15 }
 0x342   :  { %v960_v18 = vpop.f32.mrb[38].mxu0 }
 0x343   :  { %1170 = vst [vmem:[#allocation13 + $0x88] sm:$0xff] %v1163_v17  ;;  %v961_v19 = vadd.f32 %v2311_v20, %v960_v18  ;;  %vm1164_vm0 = vcmp.gt.f32.partialorder %v1163_v17, 1.0  ;;  %v1171_v31 = vmul.f32 0.9, %v1163_v17  ;;  %v1692_v21 = vpop.f32.mrb[39].mxu0 }
 0x344   :  { %v1347_v22 = vsel %vm1164_vm0, 1.0, %v1924_v1 }
 0x345   :  { %1168 = vst [vmem:[#allocation12 + $0x88] sm:$0xff] %v1347_v22  ;;  %v1172_v23 = vadd.f32 %v1171_v31, %v961_v19 }
 0x347   :  { %v1173_v24 = vsub.f32 %v1172_v23, %v1347_v22 }
 0x348   :  { %v965_v25 = vpop.f32.mrb[40].mxu0 }
 0x349   :  { %1180 = vst [vmem:[#allocation13 + $0x90] sm:$0xff] %v1173_v24  ;;  %v966_v26 = vadd.f32 %v2311_v20, %v965_v25  ;;  %vm1174_vm8 = vcmp.gt.f32.partialorder %v1173_v24, 1.0  ;;  %v1181_v27 = vmul.f32 0.9, %v1173_v24  ;;  %v1695_v35 = vpop.f32.mrb[41].mxu0 }
 0x34a   :  { %v1348_v28 = vsel %vm1174_vm8, 1.0, %v1924_v1 }
 0x34b   :  { %1178 = vst [vmem:[#allocation12 + $0x90] sm:$0xff] %v1348_v28  ;;  %v1182_v29 = vadd.f32 %v1181_v27, %v966_v26 }
 0x34d   :  { %v1183_v30 = vsub.f32 %v1182_v29, %v1348_v28 }
 0x34e   :  { %v970_v0 = vpop.f32.mrb[42].mxu0 }
 0x34f   :  { %1190 = vst [vmem:[#allocation13 + $0x98] sm:$0xff] %v1183_v30  ;;  %v971_v33 = vadd.f32 %v2311_v20, %v970_v0  ;;  %vm1184_vm9 = vcmp.gt.f32.partialorder %v1183_v30, 1.0  ;;  %v1191_v34 = vmul.f32 0.9, %v1183_v30  ;;  %v1698_v36 = vpop.f32.mrb[43].mxu0 }
 0x350   :  { %v1349_v32 = vsel %vm1184_vm9, 1.0, %v1924_v1 }
 0x351   :  { %1188 = vst [vmem:[#allocation12 + $0x98] sm:$0xff] %v1349_v32  ;;  %v1192_v37 = vadd.f32 %v1191_v34, %v971_v33 }
 0x353   :  { %v1193_v38 = vsub.f32 %v1192_v37, %v1349_v32 }
 0x354   :  { %v975_v39 = vpop.f32.mrb[44].mxu0 }
 0x355   :  { %1200 = vst [vmem:[#allocation13 + $0xa0] sm:$0xff] %v1193_v38  ;;  %v976_v40 = vadd.f32 %v2311_v20, %v975_v39  ;;  %vm1194_vm10 = vcmp.gt.f32.partialorder %v1193_v38, 1.0  ;;  %v1201_v41 = vmul.f32 0.9, %v1193_v38  ;;  %v1701_v42 = vpop.f32.mrb[45].mxu0 }
 0x356   :  { %v1350_v43 = vsel %vm1194_vm10, 1.0, %v1924_v1 }
 0x357   :  { %1198 = vst [vmem:[#allocation12 + $0xa0] sm:$0xff] %v1350_v43  ;;  %v1202_v44 = vadd.f32 %v1201_v41, %v976_v40 }
 0x359   :  { %v1203_v45 = vsub.f32 %v1202_v44, %v1350_v43 }
 0x35a   :  { %v980_v46 = vpop.f32.mrb[46].mxu0 }
 0x35b   :  { %1210 = vst [vmem:[#allocation13 + $0xa8] sm:$0xff] %v1203_v45  ;;  %v981_v47 = vadd.f32 %v2311_v20, %v980_v46  ;;  %vm1204_vm11 = vcmp.gt.f32.partialorder %v1203_v45, 1.0  ;;  %v1211_v48 = vmul.f32 0.9, %v1203_v45  ;;  %v1704_v49 = vpop.f32.mrb[47].mxu0 }
 0x35c   :  { %v1351_v50 = vsel %vm1204_vm11, 1.0, %v1924_v1 }
 0x35d   :  { %1208 = vst [vmem:[#allocation12 + $0xa8] sm:$0xff] %v1351_v50  ;;  %v1212_v51 = vadd.f32 %v1211_v48, %v981_v47 }
 0x35f   :  { %v1213_v52 = vsub.f32 %v1212_v51, %v1351_v50 }
 0x360   :  { %v985_v53 = vpop.f32.mrb[48].mxu0 }
 0x361   :  { %1220 = vst [vmem:[#allocation13 + $0xb0] sm:$0xff] %v1213_v52  ;;  %v986_v54 = vadd.f32 %v2311_v20, %v985_v53  ;;  %vm1214_vm12 = vcmp.gt.f32.partialorder %v1213_v52, 1.0  ;;  %v1221_v55 = vmul.f32 0.9, %v1213_v52  ;;  %v1707_v56 = vpop.f32.mrb[49].mxu0 }
 0x362   :  { %v1352_v57 = vsel %vm1214_vm12, 1.0, %v1924_v1 }
 0x363   :  { %1218 = vst [vmem:[#allocation12 + $0xb0] sm:$0xff] %v1352_v57  ;;  %v1222_v58 = vadd.f32 %v1221_v55, %v986_v54 }
 0x365   :  { %v1223_v59 = vsub.f32 %v1222_v58, %v1352_v57 }
 0x366   :  { %v990_v60 = vpop.f32.mrb[50].mxu0 }
 0x367   :  { %1230 = vst [vmem:[#allocation13 + $0xb8] sm:$0xff] %v1223_v59  ;;  %v991_v61 = vadd.f32 %v2311_v20, %v990_v60  ;;  %vm1224_vm13 = vcmp.gt.f32.partialorder %v1223_v59, 1.0  ;;  %v1231_v62 = vmul.f32 0.9, %v1223_v59  ;;  %v1710_v63 = vpop.f32.mrb[51].mxu0 }
 0x368   :  { %v1353_v2 = vsel %vm1224_vm13, 1.0, %v1924_v1 }
 0x369   :  { %1228 = vst [vmem:[#allocation12 + $0xb8] sm:$0xff] %v1353_v2  ;;  %v1232_v3 = vadd.f32 %v1231_v62, %v991_v61 }
 0x36b   :  { %v1233_v4 = vsub.f32 %v1232_v3, %v1353_v2 }
 0x36d   :  { %vm1234_vm14 = vcmp.gt.f32.partialorder %v1233_v4, 1.0  ;;  %1240 = vst [vmem:[#allocation13 + $0xc0] sm:$0xff] %v1233_v4 }
 0x36e   :  { %v1354_v5 = vsel %vm1234_vm14, 1.0, %v1924_v1 }
 0x36f   :  { %1873 = shalt.err (!%p1870_p8)
}
 0x370   :  { %s1874_s0 = scalar_lea.hbm %s2408_s8, 3200 }
 0x371   :  { %p1875_p9 = scmp.ne.s32.totalorder %s2408_s8, %s1874_s0  ;;  %p1878_p10 = scmp.lt.u32.totalorder %s1874_s0, %s2408_s8 }
 0x373   :  { %p1880_p11 = pnand %p1878_p10, %p1875_p9 }
 0x375   :  { %1883 = shalt.err (!%p1880_p11)
}
 0x376   :  { %1264 = dma.vmem_to_hbm [thread:$0]  %s1259_s12, 3200, %s2408_s8, [#allocation14], %s1917_s15, %s1917_s15, %s1918_s16   ;;  %1238 = vst [vmem:[#allocation12 + $0xc0] sm:$0xff] %v1354_v5 }
 0x377   :  { %s1884_s27 = scalar_lea.vmem %s2362_s14, 3200  ;;  %p1889_p13 = scmp.lt.s32.totalorder %s2362_s14, %s2362_s14 }
 0x378   :  { %p1885_p12 = scmp.ne.s32.totalorder %s2362_s14, %s1884_s27  ;;  %p1890_p0 = scmp.lt.s32.totalorder %s1884_s27, %s1884_s27 }
 0x37a   :  { %p1891_p1 = por %p1890_p0, %p1889_p13 }
 0x37c   :  { %p1892_p2 = pnand %p1891_p1, %p1885_p12 }
 0x37e   :  { %1895 = shalt.err (!%p1892_p2)
}
 0x37f   :  { %s1896_s1 = scalar_lea.hbm %s2407_s7, 3200 }
 0x380   :  { %p1897_p3 = scmp.ne.s32.totalorder %s2407_s7, %s1896_s1  ;;  %p1900_p4 = scmp.lt.u32.totalorder %s1896_s1, %s2407_s7 }
 0x382   :  { %p1902_p5 = pnand %p1900_p4, %p1897_p3 }
 0x384   :  { %1905 = shalt.err (!%p1902_p5)
}
 0x385   :  { %1252 = dma.vmem_to_hbm [thread:$0]  %s2362_s14, 3200, %s2407_s7, [#allocation6], %s1917_s15, %s1917_s15, %s1918_s16  }
 0x386   :  { %1912 = dma.done.wait [#allocation6], 3200  }
 0x387   :  { %1913 = vsyncadd [#allocation6], 4294964096 }
 0x388   :  { %1914 = dma.done.wait [#allocation14], 3200  }
 0x389   :  { %1915 = vsyncadd [#allocation14], 4294964096 }
 0x38a   :  { %1271 = vsyncpa [#allocation5], 1 }
 0x38b   :  { %1272 = vsyncpa [#allocation8], 1 }
 0x38c   :  { %1273 = vsyncpa [#allocation11], 1 }
 0x38d   :  { %1274 = vsyncpa [#allocation6], 1 }
 0x38e   :  { %1275 = vsyncpa [#allocation14], 1 }

</bundles_post_ra>
